<compile_context>
chip_gen: v5e
topology: v5e:2x2
jax: 0.10.0
libtpu: 0.0.40
codegen_flags: <defaults>
</compile_context>

<pallas_src>
import functools

import jax
import jax.numpy as jnp
from jax import lax
from jax.experimental import pallas as pl
from jax.experimental.pallas import tpu as pltpu

TILE_M_MAX = 512     # bigger tiles -> fewer grid steps, wider DMAs


def _round_up(x, m):
    return ((x + m - 1) // m) * m


# ----------------------------------------------------------------------------
# The single fused Pallas kernel:
#   o = max(x * scale + shift, floor) @ W + bias
# Handles BN+ReLU prologue, the conv matmul, bias, and (via K-packing in the
# wrapper) branch sums / residual adds — all in one pass over the activation.
# ----------------------------------------------------------------------------

@functools.lru_cache(maxsize=None)
def _fused_matmul_call(mb, kb, nb, tile_m):
    def kern(x_ref, scale_ref, shift_ref, floor_ref, w_ref, bias_ref, o_ref):
        v = x_ref[...] * scale_ref[...] + shift_ref[...]
        # floor == 0   -> ReLU (conv columns)
        # floor == -inf -> identity (skip-path columns)
        v = jnp.maximum(v, floor_ref[...])
        y = jnp.dot(v.astype(jnp.bfloat16), w_ref[...],
                    preferred_element_type=jnp.float32)
        o_ref[...] = y + bias_ref[...]

    return pl.pallas_call(
        kern,
        out_shape=jax.ShapeDtypeStruct((mb, nb), jnp.float32),
        grid=(mb // tile_m,),
        in_specs=[
            pl.BlockSpec((tile_m, kb), lambda i: (i, 0)),
            pl.BlockSpec((1, kb), lambda i: (0, 0)),
            pl.BlockSpec((1, kb), lambda i: (0, 0)),
            pl.BlockSpec((1, kb), lambda i: (0, 0)),
            pl.BlockSpec((kb, nb), lambda i: (0, 0)),
            pl.BlockSpec((1, nb), lambda i: (0, 0)),
        ],
        out_specs=pl.BlockSpec((tile_m, nb), lambda i: (i, 0)),
        compiler_params=pltpu.CompilerParams(
            dimension_semantics=("parallel",)),      # v7x megacore sharding
    )


def fused_bn_relu_matmul(xcol, stage, n_out):
    m, k = xcol.shape
    kb = stage["scale"].shape[-1]
    nb = stage["w"].shape[-1]
    tile_m = min(TILE_M_MAX, _round_up(m, 8))
    mb = _round_up(m, tile_m)
    xp = jnp.pad(xcol, ((0, mb - m), (0, kb - k)))
    out = _fused_matmul_call(mb, kb, nb, tile_m)(
        xp, stage["scale"], stage["shift"], stage["floor"],
        stage["w"], stage["bias"])
    return out[:m, :n_out]


# ----------------------------------------------------------------------------
# JAX glue: neutral padding + im2col (fused by XLA under the single jit)
# ----------------------------------------------------------------------------

def _neutral(bn):
    # value v with scale*v + shift == 0  ->  relu(bn(v)) == 0, i.e. the exact
    # equivalent of PyTorch's zero padding applied AFTER bn+relu.
    return jnp.where(bn["scale"] != 0.0, -bn["shift"] / bn["scale"], 0.0)


def _pad_neutral(x, ph, pw, neutral):
    if ph == 0 and pw == 0:
        return x
    return jnp.pad(x - neutral, ((0, 0), (ph, ph), (pw, pw), (0, 0))) + neutral


def _im2col(xpad, kh, kw, dh, dw, ho, wo):
    n, _, _, cin = xpad.shape
    cols = []
    for ky in range(kh):
        for kx in range(kw):
            patch = lax.slice(
                xpad,
                (0, ky * dh, kx * dw, 0),
                (n, ky * dh + ho, kx * dw + wo, cin))
            cols.append(patch)
    return jnp.concatenate(cols, axis=-1).reshape(n * ho * wo, kh * kw * cin)


# ----------------------------------------------------------------------------
# Parameter packing (done ONCE, outside the per-call path)
# ----------------------------------------------------------------------------

def _pad_pack(scale, shift, floor, w, bias):
    k, n = w.shape
    kb = _round_up(k, 128)
    nb = _round_up(n, 128)
    return {
        "scale": jnp.pad(scale, (0, kb - k)).reshape(1, kb),
        "shift": jnp.pad(shift, (0, kb - k)).reshape(1, kb),
        "floor": jnp.pad(floor, (0, kb - k)).reshape(1, kb),
        "w": jnp.pad(w, ((0, kb - k), (0, nb - n))).astype(jnp.bfloat16),
        "bias": jnp.pad(bias, (0, nb - n)).reshape(1, nb),
    }


def _pack_acblock(p, cin, cout):
    scale = jnp.concatenate([jnp.tile(p["bn2"]["scale"], 3),
                             jnp.tile(p["bn3"]["scale"], 3)])
    shift = jnp.concatenate([jnp.tile(p["bn2"]["shift"], 3),
                             jnp.tile(p["bn3"]["shift"], 3)])
    floor = jnp.zeros((6 * cin,), jnp.float32)                 # all-ReLU
    w = jnp.concatenate([p["conv2"]["w"].reshape(3 * cin, cout),
                         p["conv3"]["w"].reshape(3 * cin, cout)], axis=0)
    bias = p["conv2"]["b"] + p["conv3"]["b"]                   # branch add fused
    return {**_pad_pack(scale, shift, floor, w, bias),
            "neutral2": _neutral(p["bn2"]), "neutral3": _neutral(p["bn3"])}


def _pack_final(params, nin, growth):
    bn3, sk = params["bn3"], params["skip"]
    # skip path: Conv1x1 + BN (eval) folded into one (nin, growth) matrix.
    w_skip = sk["conv_w"].reshape(nin, growth) * sk["bn_scale"][None, :]
    b_skip = sk["conv_b"] * sk["bn_scale"] + sk["bn_shift"]
    scale = jnp.concatenate([jnp.tile(bn3["scale"], 9),
                             jnp.ones((nin,), jnp.float32)])
    shift = jnp.concatenate([jnp.tile(bn3["shift"], 9),
                             jnp.zeros((nin,), jnp.float32)])
    floor = jnp.concatenate([jnp.zeros((9 * growth,), jnp.float32),
                             jnp.full((nin,), -jnp.inf, jnp.float32)])  # no ReLU on skip
    w = jnp.concatenate([params["conv3_w"].reshape(9 * growth, growth),
                         w_skip], axis=0)
    return {**_pad_pack(scale, shift, floor, w, b_skip),       # conv3 is bias-free
            "neutral3": _neutral(bn3)}


# ----------------------------------------------------------------------------
# _DenseLayer forward (3 Pallas calls total)
# ----------------------------------------------------------------------------

def make_dense_layer_fn(params, dilation):
    nin = int(params["skip"]["conv_w"].shape[2])
    growth = int(params["conv3_w"].shape[-1])
    packed = {
        "ac1": _pack_acblock(params["ac1"], nin, growth),
        "ac2": _pack_acblock(params["ac2"], growth, growth),
        "final": _pack_final(params, nin, growth),
    }
    d1 = 2 ** dilation
    d2 = 2 ** (dilation + 1)

    def acblock(stage, x, d):
        n, h, w, _ = x.shape
        # branch 2: BN2 + ReLU + Conv(3,1), padding (d,0), dilation (d,1)
        col2 = _im2col(_pad_neutral(x, d, 0, stage["neutral2"]), 3, 1, d, 1, h, w)
        # branch 3: BN3 + ReLU + Conv(1,3), padding (0,d), dilation (1,d)
        col3 = _im2col(_pad_neutral(x, 0, d, stage["neutral3"]), 1, 3, 1, d, h, w)
        xcol = jnp.concatenate([col2, col3], axis=-1)          # (M, 6*cin)
        y = fused_bn_relu_matmul(xcol, stage, growth)
        return y.reshape(n, h, w, growth)

    @jax.jit
    def fwd(packed, x_nchw):
        x = jnp.transpose(x_nchw, (0, 2, 3, 1))                # NHWC inside
        n, h, w, _ = x.shape

        # conv_block = ACBlock(dil) -> ACBlock(dil+1) -> BN+ReLU+Conv3x3(dil+1)
        y = acblock(packed["ac1"], x, d1)
        y = acblock(packed["ac2"], y, d2)

        st = packed["final"]
        coly = _im2col(_pad_neutral(y, d2, d2, st["neutral3"]), 3, 3, d2, d2, h, w)
        xflat = x.reshape(n * h * w, nin)
        xcol = jnp.concatenate([coly, xflat], axis=-1)         # (M, 9*g + nin)
        out = fused_bn_relu_matmul(xcol, st, growth)
        out = out.reshape(n, h, w, growth)
        # _pad(conv_block(x), x): with these kernel/pad/dilation combos spatial
        # dims always match, so the replicate-pad is a no-op here.
        # dropout: identity (eval mode).
        return jnp.transpose(out, (0, 3, 1, 2))                # back to NCHW

    return functools.partial(fwd, packed)


# ----------------------------------------------------------------------------
# Pure-JAX f32 reference (mirrors the PyTorch module) for validation
# ----------------------------------------------------------------------------

def _reference_fwd(params, x, dilation):
    def bn_relu(z, bn):
        return jnp.maximum(z * bn["scale"] + bn["shift"], 0.0)

    def conv(z, w, b, pad, dil):
        y = lax.conv_general_dilated(
            z, w, (1, 1), [(pad[0], pad[0]), (pad[1], pad[1])],
            rhs_dilation=dil, dimension_numbers=("NHWC", "HWIO", "NHWC"))
        return y if b is None else y + b

    def acblock(p, z, dl):
        d = 2 ** dl
        o2 = conv(bn_relu(z, p["bn2"]), p["conv2"]["w"], p["conv2"]["b"], (d, 0), (d, 1))
        o3 = conv(bn_relu(z, p["bn3"]), p["conv3"]["w"], p["conv3"]["b"], (0, d), (1, d))
        return o2 + o3

    sk = params["skip"]
    residual = conv(x, sk["conv_w"], sk["conv_b"], (0, 0), (1, 1))
    residual = residual * sk["bn_scale"] + sk["bn_shift"]
    y = acblock(params["ac1"], x, dilation)
    y = acblock(params["ac2"], y, dilation + 1)
    d = 2 ** (dilation + 1)
    y = conv(bn_relu(y, params["bn3"]), params["conv3_w"], None, (d, d), (d, d))
    return y + residual


# ----------------------------------------------------------------------------
# Deterministic synthetic parameter init (eval-mode BN folded to scale/shift)
# ----------------------------------------------------------------------------

class KeyGen:
    def __init__(self, key):
        self.key = key

    def __call__(self):
        self.key, sub = jax.random.split(self.key)
        return sub


def init_conv(kg, kh, kw, cin, cout, bias=True):
    fan = kh * kw * cin
    w = jax.random.normal(kg(), (kh, kw, cin, cout), jnp.float32) / jnp.sqrt(float(fan))
    b = (jax.random.normal(kg(), (cout,), jnp.float32) * 0.01
         if bias else jnp.zeros((cout,), jnp.float32))
    return {"w": w, "b": b}


def init_bn(kg, c):
    gamma = 1.0 + 0.05 * jax.random.normal(kg(), (c,), jnp.float32)
    beta = 0.05 * jax.random.normal(kg(), (c,), jnp.float32)
    mean = jnp.zeros((c,), jnp.float32)
    var = jnp.ones((c,), jnp.float32)
    eps = 1e-5
    scale = gamma / jnp.sqrt(var + eps)
    shift = beta - mean * scale
    return {"scale": scale, "shift": shift}


def init_dense_layer(kg, nin, growth):
    skip_conv = init_conv(kg, 1, 1, nin, growth)
    skip_bn = init_bn(kg, growth)
    return {
        "ac1": {"bn2": init_bn(kg, nin), "conv2": init_conv(kg, 3, 1, nin, growth),
                "bn3": init_bn(kg, nin), "conv3": init_conv(kg, 1, 3, nin, growth)},
        "ac2": {"bn2": init_bn(kg, growth), "conv2": init_conv(kg, 3, 1, growth, growth),
                "bn3": init_bn(kg, growth), "conv3": init_conv(kg, 1, 3, growth, growth)},
        "bn3": init_bn(kg, growth),
        "conv3_w": jax.random.normal(kg(), (3, 3, growth, growth), jnp.float32)
                   / jnp.sqrt(9.0 * growth),
        "skip": {"conv_w": skip_conv["w"], "conv_b": skip_conv["b"],
                 "bn_scale": skip_bn["scale"], "bn_shift": skip_bn["shift"]},
    }


# ----------------------------------------------------------------------------

if __name__ == "__main__":
    key = jax.random.PRNGKey(0)
    kparam, kdata = jax.random.split(key)

    N, C, H, W = 2, 4, 16, 16          # input (NCHW) like the PyTorch module
    GROWTH = 32
    DILATION = 1                       # _DenseLayer default

    params = init_dense_layer(KeyGen(kparam), C, GROWTH)

    # pack weights / BN affines once; single jit -> one dispatch per call
    fwd = make_dense_layer_fn(params, DILATION)

    x_nchw = jax.random.normal(kdata, (N, C, H, W), jnp.float32)

    out_nchw = jax.block_until_ready(fwd(x_nchw))

    assert out_nchw.shape == (N, GROWTH, H, W)
    assert bool(jnp.all(jnp.isfinite(out_nchw)))

    # validate against the pure-JAX f32 reference (bf16 MXU operands -> small tol)
    x_nhwc = jnp.transpose(x_nchw, (0, 2, 3, 1))
    ref_nchw = jnp.transpose(_reference_fwd(params, x_nhwc, DILATION), (0, 3, 1, 2))
    rel_err = float(jnp.max(jnp.abs(out_nchw - ref_nchw))
                    / (jnp.max(jnp.abs(ref_nchw)) + 1e-6))
    assert rel_err < 5e-2, f"relative error too large: {rel_err}"

    print("KERNEL_OK")
</pallas_src>

<mosaic_0001>
module attributes {stable_mosaic.version = 11 : i64} {
  func.func @kern(%arg0: i32, %arg1: memref<512x128xf32, #tpu.memory_space<vmem>>, %arg2: memref<1x128xf32, #tpu.memory_space<vmem>>, %arg3: memref<1x128xf32, #tpu.memory_space<vmem>>, %arg4: memref<1x128xf32, #tpu.memory_space<vmem>>, %arg5: memref<128x128xbf16, #tpu.memory_space<vmem>>, %arg6: memref<1x128xf32, #tpu.memory_space<vmem>>, %arg7: memref<512x128xf32, #tpu.memory_space<vmem>>) attributes {dimension_semantics = [#tpu.dimension_semantics<parallel>], iteration_bounds = array<i64: 1>, scalar_prefetch = 0 : i64, scratch_operands = 0 : i64, tpu.core_type = #tpu.core_type<tc>, window_params = [{transform_indices = @transform_0, window_bounds = array<i64: 512, 128>}, {pipeline_mode = #tpu.pipeline_mode<synchronous>, transform_indices = @transform_1, window_bounds = array<i64: 1, 128>}, {pipeline_mode = #tpu.pipeline_mode<synchronous>, transform_indices = @transform_2, window_bounds = array<i64: 1, 128>}, {pipeline_mode = #tpu.pipeline_mode<synchronous>, transform_indices = @transform_3, window_bounds = array<i64: 1, 128>}, {pipeline_mode = #tpu.pipeline_mode<synchronous>, transform_indices = @transform_4, window_bounds = array<i64: 128, 128>}, {pipeline_mode = #tpu.pipeline_mode<synchronous>, transform_indices = @transform_5, window_bounds = array<i64: 1, 128>}, {transform_indices = @transform_6, window_bounds = array<i64: 512, 128>}]} {
    %c0 = arith.constant 0 : index
    %c0_0 = arith.constant 0 : index
    %0 = vector.load %arg1[%c0, %c0_0] : memref<512x128xf32, #tpu.memory_space<vmem>>, vector<512x128xf32>
    %c0_1 = arith.constant 0 : index
    %c0_2 = arith.constant 0 : index
    %1 = vector.load %arg2[%c0_1, %c0_2] : memref<1x128xf32, #tpu.memory_space<vmem>>, vector<1x128xf32>
    %2 = vector.broadcast %1 : vector<1x128xf32> to vector<512x128xf32>
    %3 = arith.mulf %0, %2 : vector<512x128xf32>
    %c0_3 = arith.constant 0 : index
    %c0_4 = arith.constant 0 : index
    %4 = vector.load %arg3[%c0_3, %c0_4] : memref<1x128xf32, #tpu.memory_space<vmem>>, vector<1x128xf32>
    %5 = vector.broadcast %4 : vector<1x128xf32> to vector<512x128xf32>
    %6 = arith.addf %3, %5 : vector<512x128xf32>
    %c0_5 = arith.constant 0 : index
    %c0_6 = arith.constant 0 : index
    %7 = vector.load %arg4[%c0_5, %c0_6] : memref<1x128xf32, #tpu.memory_space<vmem>>, vector<1x128xf32>
    %8 = vector.broadcast %7 : vector<1x128xf32> to vector<512x128xf32>
    %9 = arith.maximumf %6, %8 : vector<512x128xf32>
    %10 = arith.truncf %9 : vector<512x128xf32> to vector<512x128xbf16>
    %c0_7 = arith.constant 0 : index
    %c0_8 = arith.constant 0 : index
    %11 = vector.load %arg5[%c0_7, %c0_8] : memref<128x128xbf16, #tpu.memory_space<vmem>>, vector<128x128xbf16>
    %cst = arith.constant dense<0.000000e+00> : vector<512x128xf32>
    %12 = tpu.matmul %10, %11, %cst {dimension_numbers = #tpu.dot_dimension_numbers<[1], [0], [0], [1], [0, 0, 1, 1], [], []>} : vector<512x128xbf16>, vector<128x128xbf16>, vector<512x128xf32> -> vector<512x128xf32>
    %c0_9 = arith.constant 0 : index
    %c0_10 = arith.constant 0 : index
    %13 = vector.load %arg6[%c0_9, %c0_10] : memref<1x128xf32, #tpu.memory_space<vmem>>, vector<1x128xf32>
    %14 = vector.broadcast %13 : vector<1x128xf32> to vector<512x128xf32>
    %15 = arith.addf %12, %14 : vector<512x128xf32>
    %c0_11 = arith.constant 0 : index
    %c0_12 = arith.constant 0 : index
    %16 = vector.load %arg7[%c0_11, %c0_12] : memref<512x128xf32, #tpu.memory_space<vmem>>, vector<512x128xf32>
    tpu.vector_store %arg7[%c0_11, %c0_12], %15 {strides = array<i32>} : memref<512x128xf32, #tpu.memory_space<vmem>>, vector<512x128xf32>,
    return
  }
  func.func @transform_0(%arg0: i32) -> (i32, i32) {
    %c0_i32 = arith.constant 0 : i32
    %c0_i32_0 = arith.constant 0 : i32
    return %arg0, %c0_i32 : i32, i32
  }
  func.func @transform_1(%arg0: i32) -> (i32, i32) {
    %c0_i32 = arith.constant 0 : i32
    %c0_i32_0 = arith.constant 0 : i32
    %c0_i32_1 = arith.constant 0 : i32
    return %c0_i32, %c0_i32_0 : i32, i32
  }
  func.func @transform_2(%arg0: i32) -> (i32, i32) {
    %c0_i32 = arith.constant 0 : i32
    %c0_i32_0 = arith.constant 0 : i32
    %c0_i32_1 = arith.constant 0 : i32
    return %c0_i32, %c0_i32_0 : i32, i32
  }
  func.func @transform_3(%arg0: i32) -> (i32, i32) {
    %c0_i32 = arith.constant 0 : i32
    %c0_i32_0 = arith.constant 0 : i32
    %c0_i32_1 = arith.constant 0 : i32
    return %c0_i32, %c0_i32_0 : i32, i32
  }
  func.func @transform_4(%arg0: i32) -> (i32, i32) {
    %c0_i32 = arith.constant 0 : i32
    %c0_i32_0 = arith.constant 0 : i32
    %c0_i32_1 = arith.constant 0 : i32
    return %c0_i32, %c0_i32_0 : i32, i32
  }
  func.func @transform_5(%arg0: i32) -> (i32, i32) {
    %c0_i32 = arith.constant 0 : i32
    %c0_i32_0 = arith.constant 0 : i32
    %c0_i32_1 = arith.constant 0 : i32
    return %c0_i32, %c0_i32_0 : i32, i32
  }
  func.func @transform_6(%arg0: i32) -> (i32, i32) {
    %c0_i32 = arith.constant 0 : i32
    %c0_i32_0 = arith.constant 0 : i32
    return %arg0, %c0_i32 : i32, i32
  }
}

module attributes {stable_mosaic.version = 11 : i64} {
  func.func @kern(%arg0: i32, %arg1: memref<512x256xf32, #tpu.memory_space<vmem>>, %arg2: memref<1x256xf32, #tpu.memory_space<vmem>>, %arg3: memref<1x256xf32, #tpu.memory_space<vmem>>, %arg4: memref<1x256xf32, #tpu.memory_space<vmem>>, %arg5: memref<256x128xbf16, #tpu.memory_space<vmem>>, %arg6: memref<1x128xf32, #tpu.memory_space<vmem>>, %arg7: memref<512x128xf32, #tpu.memory_space<vmem>>) attributes {dimension_semantics = [#tpu.dimension_semantics<parallel>], iteration_bounds = array<i64: 1>, scalar_prefetch = 0 : i64, scratch_operands = 0 : i64, tpu.core_type = #tpu.core_type<tc>, window_params = [{transform_indices = @transform_0, window_bounds = array<i64: 512, 256>}, {pipeline_mode = #tpu.pipeline_mode<synchronous>, transform_indices = @transform_1, window_bounds = array<i64: 1, 256>}, {pipeline_mode = #tpu.pipeline_mode<synchronous>, transform_indices = @transform_2, window_bounds = array<i64: 1, 256>}, {pipeline_mode = #tpu.pipeline_mode<synchronous>, transform_indices = @transform_3, window_bounds = array<i64: 1, 256>}, {pipeline_mode = #tpu.pipeline_mode<synchronous>, transform_indices = @transform_4, window_bounds = array<i64: 256, 128>}, {pipeline_mode = #tpu.pipeline_mode<synchronous>, transform_indices = @transform_5, window_bounds = array<i64: 1, 128>}, {transform_indices = @transform_6, window_bounds = array<i64: 512, 128>}]} {
    %c0 = arith.constant 0 : index
    %c0_0 = arith.constant 0 : index
    %0 = vector.load %arg1[%c0, %c0_0] : memref<512x256xf32, #tpu.memory_space<vmem>>, vector<512x256xf32>
    %c0_1 = arith.constant 0 : index
    %c0_2 = arith.constant 0 : index
    %1 = vector.load %arg2[%c0_1, %c0_2] : memref<1x256xf32, #tpu.memory_space<vmem>>, vector<1x256xf32>
    %2 = vector.broadcast %1 : vector<1x256xf32> to vector<512x256xf32>
    %3 = arith.mulf %0, %2 : vector<512x256xf32>
    %c0_3 = arith.constant 0 : index
    %c0_4 = arith.constant 0 : index
    %4 = vector.load %arg3[%c0_3, %c0_4] : memref<1x256xf32, #tpu.memory_space<vmem>>, vector<1x256xf32>
    %5 = vector.broadcast %4 : vector<1x256xf32> to vector<512x256xf32>
    %6 = arith.addf %3, %5 : vector<512x256xf32>
    %c0_5 = arith.constant 0 : index
    %c0_6 = arith.constant 0 : index
    %7 = vector.load %arg4[%c0_5, %c0_6] : memref<1x256xf32, #tpu.memory_space<vmem>>, vector<1x256xf32>
    %8 = vector.broadcast %7 : vector<1x256xf32> to vector<512x256xf32>
    %9 = arith.maximumf %6, %8 : vector<512x256xf32>
    %10 = arith.truncf %9 : vector<512x256xf32> to vector<512x256xbf16>
    %c0_7 = arith.constant 0 : index
    %c0_8 = arith.constant 0 : index
    %11 = vector.load %arg5[%c0_7, %c0_8] : memref<256x128xbf16, #tpu.memory_space<vmem>>, vector<256x128xbf16>
    %cst = arith.constant dense<0.000000e+00> : vector<512x128xf32>
    %12 = tpu.matmul %10, %11, %cst {dimension_numbers = #tpu.dot_dimension_numbers<[1], [0], [0], [1], [0, 0, 1, 1], [], []>} : vector<512x256xbf16>, vector<256x128xbf16>, vector<512x128xf32> -> vector<512x128xf32>
    %c0_9 = arith.constant 0 : index
    %c0_10 = arith.constant 0 : index
    %13 = vector.load %arg6[%c0_9, %c0_10] : memref<1x128xf32, #tpu.memory_space<vmem>>, vector<1x128xf32>
    %14 = vector.broadcast %13 : vector<1x128xf32> to vector<512x128xf32>
    %15 = arith.addf %12, %14 : vector<512x128xf32>
    %c0_11 = arith.constant 0 : index
    %c0_12 = arith.constant 0 : index
    %16 = vector.load %arg7[%c0_11, %c0_12] : memref<512x128xf32, #tpu.memory_space<vmem>>, vector<512x128xf32>
    tpu.vector_store %arg7[%c0_11, %c0_12], %15 {strides = array<i32>} : memref<512x128xf32, #tpu.memory_space<vmem>>, vector<512x128xf32>,
    return
  }
  func.func @transform_0(%arg0: i32) -> (i32, i32) {
    %c0_i32 = arith.constant 0 : i32
    %c0_i32_0 = arith.constant 0 : i32
    return %arg0, %c0_i32 : i32, i32
  }
  func.func @transform_1(%arg0: i32) -> (i32, i32) {
    %c0_i32 = arith.constant 0 : i32
    %c0_i32_0 = arith.constant 0 : i32
    %c0_i32_1 = arith.constant 0 : i32
    return %c0_i32, %c0_i32_0 : i32, i32
  }
  func.func @transform_2(%arg0: i32) -> (i32, i32) {
    %c0_i32 = arith.constant 0 : i32
    %c0_i32_0 = arith.constant 0 : i32
    %c0_i32_1 = arith.constant 0 : i32
    return %c0_i32, %c0_i32_0 : i32, i32
  }
  func.func @transform_3(%arg0: i32) -> (i32, i32) {
    %c0_i32 = arith.constant 0 : i32
    %c0_i32_0 = arith.constant 0 : i32
    %c0_i32_1 = arith.constant 0 : i32
    return %c0_i32, %c0_i32_0 : i32, i32
  }
  func.func @transform_4(%arg0: i32) -> (i32, i32) {
    %c0_i32 = arith.constant 0 : i32
    %c0_i32_0 = arith.constant 0 : i32
    %c0_i32_1 = arith.constant 0 : i32
    return %c0_i32, %c0_i32_0 : i32, i32
  }
  func.func @transform_5(%arg0: i32) -> (i32, i32) {
    %c0_i32 = arith.constant 0 : i32
    %c0_i32_0 = arith.constant 0 : i32
    %c0_i32_1 = arith.constant 0 : i32
    return %c0_i32, %c0_i32_0 : i32, i32
  }
  func.func @transform_6(%arg0: i32) -> (i32, i32) {
    %c0_i32 = arith.constant 0 : i32
    %c0_i32_0 = arith.constant 0 : i32
    return %arg0, %c0_i32 : i32, i32
  }
}

module attributes {stable_mosaic.version = 11 : i64} {
  func.func @kern(%arg0: i32, %arg1: memref<512x384xf32, #tpu.memory_space<vmem>>, %arg2: memref<1x384xf32, #tpu.memory_space<vmem>>, %arg3: memref<1x384xf32, #tpu.memory_space<vmem>>, %arg4: memref<1x384xf32, #tpu.memory_space<vmem>>, %arg5: memref<384x128xbf16, #tpu.memory_space<vmem>>, %arg6: memref<1x128xf32, #tpu.memory_space<vmem>>, %arg7: memref<512x128xf32, #tpu.memory_space<vmem>>) attributes {dimension_semantics = [#tpu.dimension_semantics<parallel>], iteration_bounds = array<i64: 1>, scalar_prefetch = 0 : i64, scratch_operands = 0 : i64, tpu.core_type = #tpu.core_type<tc>, window_params = [{transform_indices = @transform_0, window_bounds = array<i64: 512, 384>}, {pipeline_mode = #tpu.pipeline_mode<synchronous>, transform_indices = @transform_1, window_bounds = array<i64: 1, 384>}, {pipeline_mode = #tpu.pipeline_mode<synchronous>, transform_indices = @transform_2, window_bounds = array<i64: 1, 384>}, {pipeline_mode = #tpu.pipeline_mode<synchronous>, transform_indices = @transform_3, window_bounds = array<i64: 1, 384>}, {pipeline_mode = #tpu.pipeline_mode<synchronous>, transform_indices = @transform_4, window_bounds = array<i64: 384, 128>}, {pipeline_mode = #tpu.pipeline_mode<synchronous>, transform_indices = @transform_5, window_bounds = array<i64: 1, 128>}, {transform_indices = @transform_6, window_bounds = array<i64: 512, 128>}]} {
    %c0 = arith.constant 0 : index
    %c0_0 = arith.constant 0 : index
    %0 = vector.load %arg1[%c0, %c0_0] : memref<512x384xf32, #tpu.memory_space<vmem>>, vector<512x384xf32>
    %c0_1 = arith.constant 0 : index
    %c0_2 = arith.constant 0 : index
    %1 = vector.load %arg2[%c0_1, %c0_2] : memref<1x384xf32, #tpu.memory_space<vmem>>, vector<1x384xf32>
    %2 = vector.broadcast %1 : vector<1x384xf32> to vector<512x384xf32>
    %3 = arith.mulf %0, %2 : vector<512x384xf32>
    %c0_3 = arith.constant 0 : index
    %c0_4 = arith.constant 0 : index
    %4 = vector.load %arg3[%c0_3, %c0_4] : memref<1x384xf32, #tpu.memory_space<vmem>>, vector<1x384xf32>
    %5 = vector.broadcast %4 : vector<1x384xf32> to vector<512x384xf32>
    %6 = arith.addf %3, %5 : vector<512x384xf32>
    %c0_5 = arith.constant 0 : index
    %c0_6 = arith.constant 0 : index
    %7 = vector.load %arg4[%c0_5, %c0_6] : memref<1x384xf32, #tpu.memory_space<vmem>>, vector<1x384xf32>
    %8 = vector.broadcast %7 : vector<1x384xf32> to vector<512x384xf32>
    %9 = arith.maximumf %6, %8 : vector<512x384xf32>
    %10 = arith.truncf %9 : vector<512x384xf32> to vector<512x384xbf16>
    %c0_7 = arith.constant 0 : index
    %c0_8 = arith.constant 0 : index
    %11 = vector.load %arg5[%c0_7, %c0_8] : memref<384x128xbf16, #tpu.memory_space<vmem>>, vector<384x128xbf16>
    %cst = arith.constant dense<0.000000e+00> : vector<512x128xf32>
    %12 = tpu.matmul %10, %11, %cst {dimension_numbers = #tpu.dot_dimension_numbers<[1], [0], [0], [1], [0, 0, 1, 1], [], []>} : vector<512x384xbf16>, vector<384x128xbf16>, vector<512x128xf32> -> vector<512x128xf32>
    %c0_9 = arith.constant 0 : index
    %c0_10 = arith.constant 0 : index
    %13 = vector.load %arg6[%c0_9, %c0_10] : memref<1x128xf32, #tpu.memory_space<vmem>>, vector<1x128xf32>
    %14 = vector.broadcast %13 : vector<1x128xf32> to vector<512x128xf32>
    %15 = arith.addf %12, %14 : vector<512x128xf32>
    %c0_11 = arith.constant 0 : index
    %c0_12 = arith.constant 0 : index
    %16 = vector.load %arg7[%c0_11, %c0_12] : memref<512x128xf32, #tpu.memory_space<vmem>>, vector<512x128xf32>
    tpu.vector_store %arg7[%c0_11, %c0_12], %15 {strides = array<i32>} : memref<512x128xf32, #tpu.memory_space<vmem>>, vector<512x128xf32>,
    return
  }
  func.func @transform_0(%arg0: i32) -> (i32, i32) {
    %c0_i32 = arith.constant 0 : i32
    %c0_i32_0 = arith.constant 0 : i32
    return %arg0, %c0_i32 : i32, i32
  }
  func.func @transform_1(%arg0: i32) -> (i32, i32) {
    %c0_i32 = arith.constant 0 : i32
    %c0_i32_0 = arith.constant 0 : i32
    %c0_i32_1 = arith.constant 0 : i32
    return %c0_i32, %c0_i32_0 : i32, i32
  }
  func.func @transform_2(%arg0: i32) -> (i32, i32) {
    %c0_i32 = arith.constant 0 : i32
    %c0_i32_0 = arith.constant 0 : i32
    %c0_i32_1 = arith.constant 0 : i32
    return %c0_i32, %c0_i32_0 : i32, i32
  }
  func.func @transform_3(%arg0: i32) -> (i32, i32) {
    %c0_i32 = arith.constant 0 : i32
    %c0_i32_0 = arith.constant 0 : i32
    %c0_i32_1 = arith.constant 0 : i32
    return %c0_i32, %c0_i32_0 : i32, i32
  }
  func.func @transform_4(%arg0: i32) -> (i32, i32) {
    %c0_i32 = arith.constant 0 : i32
    %c0_i32_0 = arith.constant 0 : i32
    %c0_i32_1 = arith.constant 0 : i32
    return %c0_i32, %c0_i32_0 : i32, i32
  }
  func.func @transform_5(%arg0: i32) -> (i32, i32) {
    %c0_i32 = arith.constant 0 : i32
    %c0_i32_0 = arith.constant 0 : i32
    %c0_i32_1 = arith.constant 0 : i32
    return %c0_i32, %c0_i32_0 : i32, i32
  }
  func.func @transform_6(%arg0: i32) -> (i32, i32) {
    %c0_i32 = arith.constant 0 : i32
    %c0_i32_0 = arith.constant 0 : i32
    return %arg0, %c0_i32 : i32, i32
  }
}

</mosaic_0001>

<bundles_post_ra>
// kernel: fwd.3
= control target key start
LH: loop header
LB: loop body
LE: loop exit
PB: predicated region body
PF: predicated region fallthrough
CT: control target
= control target key end

     0   :  { %s1415_s4 = inlined_call_operand.vmem [shape: bf16[128,128], index: 4, kind: input, shape index: {}]   ;;  %s1416_s1 = inlined_call_operand.vmem [shape: f32[1,128], index: 1, kind: input, shape index: {}]   ;;  %s1417_s2 = inlined_call_operand.vmem [shape: f32[1,128], index: 2, kind: input, shape index: {}]   ;;  %s1418_s3 = inlined_call_operand.vmem [shape: f32[1,128], index: 3, kind: input, shape index: {}]   ;;  %s1419_s0 = inlined_call_operand.vmem [shape: f32[512,128], index: 0, kind: input, shape index: {}]   ;;  %s1420_s5 = inlined_call_operand.vmem [shape: f32[1,128], index: 5, kind: input, shape index: {}]   ;;  %s1421_s6 = inlined_call_operand.vmem [shape: f32[512,128], index: 6, kind: output, shape index: {}]  }
   0x1   :  { %v667_v0 = vld [vmem:[%s1415_s4 + $0x38] sm:$0xff]  ;;  %v666_v1 = vld [vmem:[%s1415_s4 + $0x30] sm:$0xff]  ;;  %v665_v2 = vld [vmem:[%s1415_s4 + $0x28] sm:$0xff] }
   0x2   :  { %391 = vmatpush.bf16.msra.mxu0 %v667_v0  ;;  %668 = vmatpush.bf16.msra.mxu1 %v667_v0  ;;  %v664_v3 = vld [vmem:[%s1415_s4 + $0x20] sm:$0xff]  ;;  %v663_v5 = vld [vmem:[%s1415_s4 + $0x18] sm:$0xff]  ;;  %v24_v7 = vld [vmem:[%s1419_s0 + $0x8] sm:$0xff] }
   0x3   :  { %669 = vmatpush.bf16.msra.mxu2 %v667_v0  ;;  %670 = vmatpush.bf16.msra.mxu3 %v667_v0  ;;  %v746_v4 = vld [vmem:[%s1416_s1] ss:$0 sm:$0xff]  ;;  %v40_v9 = vld [vmem:[%s1419_s0 + $0x88] sm:$0xff]  ;;  %v662_v20 = vld [vmem:[%s1415_s4 + $0x10] sm:$0xff] }
   0x4   :  { %v23_v6 = vld [vmem:[%s1419_s0] sm:$0xff]  ;;  %v56_v11 = vld [vmem:[%s1419_s0 + $0x108] sm:$0xff]  ;;  %v92_v16 = vmul.f32 %v746_v4, %v24_v7  ;;  %v108_v18 = vmul.f32 %v746_v4, %v40_v9  ;;  %v25_v45 = vld [vmem:[%s1419_s0 + $0x10] sm:$0xff] }
   0x5   :  { %v39_v8 = vld [vmem:[%s1419_s0 + $0x80] sm:$0xff]  ;;  %v72_v13 = vld [vmem:[%s1419_s0 + $0x188] sm:$0xff]  ;;  %v91_v14 = vmul.f32 %v746_v4, %v23_v6  ;;  %v124_v21 = vmul.f32 %v746_v4, %v56_v11  ;;  %v26_v46 = vld [vmem:[%s1419_s0 + $0x18] sm:$0xff]  ;;  %v93_v55 = vmul.f32 %v746_v4, %v25_v45 }
   0x6   :  { %392 = vmatpush.bf16.msra.mxu0 %v666_v1  ;;  %671 = vmatpush.bf16.msra.mxu1 %v666_v1  ;;  %v55_v10 = vld [vmem:[%s1419_s0 + $0x100] sm:$0xff]  ;;  %v107_v17 = vmul.f32 %v746_v4, %v39_v8  ;;  %v140_v23 = vmul.f32 %v746_v4, %v72_v13  ;;  %v661_v30 = vld [vmem:[%s1415_s4 + $0x8] sm:$0xff]  ;;  %v41_v49 = vld [vmem:[%s1419_s0 + $0x90] sm:$0xff]  ;;  %v94_v56 = vmul.f32 %v746_v4, %v26_v46 }
   0x7   :  { %672 = vmatpush.bf16.msra.mxu2 %v666_v1  ;;  %673 = vmatpush.bf16.msra.mxu3 %v666_v1  ;;  %v71_v12 = vld [vmem:[%s1419_s0 + $0x180] sm:$0xff]  ;;  %v123_v19 = vmul.f32 %v746_v4, %v55_v10  ;;  %v42_v50 = vld [vmem:[%s1419_s0 + $0x98] sm:$0xff]  ;;  %v57_v51 = vld [vmem:[%s1419_s0 + $0x110] sm:$0xff]  ;;  %v109_v57 = vmul.f32 %v746_v4, %v41_v49 }
   0x8   :  { %v779_v15 = vld [vmem:[%s1417_s2] ss:$0 sm:$0xff]  ;;  %v139_v22 = vmul.f32 %v746_v4, %v71_v12  ;;  %v58_v52 = vld [vmem:[%s1419_s0 + $0x118] sm:$0xff]  ;;  %v73_v53 = vld [vmem:[%s1419_s0 + $0x190] sm:$0xff]  ;;  %v110_v58 = vmul.f32 %v746_v4, %v42_v50  ;;  %v125_v59 = vmul.f32 %v746_v4, %v57_v51 }
   0x9   :  { %v159_v24 = vadd.f32 %v779_v15, %v91_v14  ;;  %v795_v25 = vld [vmem:[%s1418_s3] ss:$0 sm:$0xff]  ;;  %v160_v26 = vadd.f32 %v779_v15, %v92_v16  ;;  %v175_v27 = vadd.f32 %v779_v15, %v107_v17  ;;  %v176_v28 = vadd.f32 %v779_v15, %v108_v18  ;;  %v74_v54 = vld [vmem:[%s1419_s0 + $0x198] sm:$0xff] }
   0xa   :  { %393 = vmatpush.bf16.msra.mxu0 %v665_v2  ;;  %674 = vmatpush.bf16.msra.mxu1 %v665_v2  ;;  %v191_v29 = vadd.f32 %v779_v15, %v123_v19  ;;  %v192_v31 = vadd.f32 %v779_v15, %v124_v21  ;;  %v207_v32 = vadd.f32 %v779_v15, %v139_v22  ;;  %v660_v39 = vld [vmem:[%s1415_s4] sm:$0xff] }
   0xb   :  { %675 = vmatpush.bf16.msra.mxu2 %v665_v2  ;;  %676 = vmatpush.bf16.msra.mxu3 %v665_v2  ;;  %v208_v33 = vadd.f32 %v779_v15, %v140_v23  ;;  %v227_v34 = vmax.f32 %v159_v24, %v795_v25  ;;  %v228_v35 = vmax.f32 %v160_v26, %v795_v25  ;;  %v27_v19 = vld [vmem:[%s1419_s0 + $0x20] sm:$0xff]  ;;  %v44_v24 = vld [vmem:[%s1419_s0 + $0xa8] sm:$0xff] }
   0xc   :  { %v243_v36 = vmax.f32 %v175_v27, %v795_v25  ;;  %v244_v37 = vmax.f32 %v176_v28, %v795_v25  ;;  %v259_v38 = vmax.f32 %v191_v29, %v795_v25  ;;  %v260_v40 = vmax.f32 %v192_v31, %v795_v25  ;;  %v43_v23 = vld [vmem:[%s1419_s0 + $0xa0] sm:$0xff]  ;;  %v60_v27 = vld [vmem:[%s1419_s0 + $0x128] sm:$0xff] }
   0xd   :  { %v275_v41 = vmax.f32 %v207_v32, %v795_v25  ;;  %v276_v42 = vmax.f32 %v208_v33, %v795_v25  ;;  %v291_v43 = vpack.c.bf16 %v228_v35, %v227_v34  ;;  %v126_v60 = vmul.f32 %v746_v4, %v58_v52  ;;  %v59_v26 = vld [vmem:[%s1419_s0 + $0x120] sm:$0xff]  ;;  %v76_v29 = vld [vmem:[%s1419_s0 + $0x1a8] sm:$0xff] }
   0xe   :  { %394 = vmatpush.bf16.msra.mxu0 %v664_v3  ;;  %677 = vmatpush.bf16.msra.mxu1 %v664_v3  ;;  %v299_v44 = vpack.c.bf16 %v244_v37, %v243_v36  ;;  %v307_v47 = vpack.c.bf16 %v260_v40, %v259_v38  ;;  %v141_v61 = vmul.f32 %v746_v4, %v73_v53  ;;  %v75_v28 = vld [vmem:[%s1419_s0 + $0x1a0] sm:$0xff] }
   0xf   :  { %678 = vmatpush.bf16.msra.mxu2 %v664_v3  ;;  %679 = vmatpush.bf16.msra.mxu3 %v664_v3  ;;  %v315_v48 = vpack.c.bf16 %v276_v42, %v275_v41  ;;  %v142_v62 = vmul.f32 %v746_v4, %v74_v54  ;;  %v161_v63 = vadd.f32 %v779_v15, %v93_v55 }
  0x10   :  { %v162_v0 = vadd.f32 %v779_v15, %v94_v56  ;;  %v177_v1 = vadd.f32 %v779_v15, %v109_v57  ;;  %v178_v2 = vadd.f32 %v779_v15, %v110_v58  ;;  %v193_v3 = vadd.f32 %v779_v15, %v125_v59  ;;  %v29_v56 = vld [vmem:[%s1419_s0 + $0x30] sm:$0xff]  ;;  %v30_v57 = vld [vmem:[%s1419_s0 + $0x38] sm:$0xff] }
  0x11   :  { %v209_v6 = vadd.f32 %v779_v15, %v141_v61  ;;  %v210_v7 = vadd.f32 %v779_v15, %v142_v62  ;;  %v229_v8 = vmax.f32 %v161_v63, %v795_v25  ;;  %v111_v32 = vmul.f32 %v746_v4, %v43_v23  ;;  %v46_v61 = vld [vmem:[%s1419_s0 + $0xb8] sm:$0xff]  ;;  %v61_v62 = vld [vmem:[%s1419_s0 + $0x130] sm:$0xff] }
  0x12   :  { %395 = vmatpush.bf16.msra.mxu0 %v663_v5  ;;  %680 = vmatpush.bf16.msra.mxu1 %v663_v5  ;;  %v230_v9 = vmax.f32 %v162_v0, %v795_v25  ;;  %v245_v10 = vmax.f32 %v177_v1, %v795_v25  ;;  %v246_v11 = vmax.f32 %v178_v2, %v795_v25  ;;  %v62_v63 = vld [vmem:[%s1419_s0 + $0x138] sm:$0xff]  ;;  %v77_v0 = vld [vmem:[%s1419_s0 + $0x1b0] sm:$0xff] }
  0x13   :  { %681 = vmatpush.bf16.msra.mxu2 %v663_v5  ;;  %682 = vmatpush.bf16.msra.mxu3 %v663_v5  ;;  %v194_v5 = vadd.f32 %v779_v15, %v126_v60  ;;  %v261_v12 = vmax.f32 %v193_v3, %v795_v25  ;;  %v277_v14 = vmax.f32 %v209_v6, %v795_v25  ;;  %v45_v60 = vld [vmem:[%s1419_s0 + $0xb0] sm:$0xff]  ;;  %v78_v1 = vld [vmem:[%s1419_s0 + $0x1b8] sm:$0xff] }
  0x14   :  { %v278_v16 = vmax.f32 %v210_v7, %v795_v25  ;;  %v292_v17 = vpack.c.bf16 %v230_v9, %v229_v8  ;;  %v300_v18 = vpack.c.bf16 %v246_v11, %v245_v10  ;;  %v112_v33 = vmul.f32 %v746_v4, %v44_v24 }
  0x15   :  { %v262_v13 = vmax.f32 %v194_v5, %v795_v25  ;;  %v127_v34 = vmul.f32 %v746_v4, %v59_v26  ;;  %v128_v35 = vmul.f32 %v746_v4, %v60_v27  ;;  %v143_v36 = vmul.f32 %v746_v4, %v75_v28 }
  0x16   :  { %396 = vmatpush.bf16.msra.mxu0 %v662_v20  ;;  %683 = vmatpush.bf16.msra.mxu1 %v662_v20  ;;  %v316_v22 = vpack.c.bf16 %v278_v16, %v277_v14  ;;  %v144_v37 = vmul.f32 %v746_v4, %v76_v29  ;;  %v179_v40 = vadd.f32 %v779_v15, %v111_v32  ;;  %v32_v32 = vld [vmem:[%s1419_s0 + $0x48] sm:$0xff] }
  0x17   :  { %684 = vmatpush.bf16.msra.mxu2 %v662_v20  ;;  %685 = vmatpush.bf16.msra.mxu3 %v662_v20  ;;  %v28_v20 = vld [vmem:[%s1419_s0 + $0x28] sm:$0xff]  ;;  %v308_v21 = vpack.c.bf16 %v262_v13, %v261_v12  ;;  %v180_v41 = vadd.f32 %v779_v15, %v112_v33  ;;  %v195_v42 = vadd.f32 %v779_v15, %v127_v34 }
  0x18   :  { %v96_v31 = vmul.f32 %v746_v4, %v28_v20  ;;  %v212_v45 = vadd.f32 %v779_v15, %v144_v37  ;;  %v97_v2 = vmul.f32 %v746_v4, %v29_v56  ;;  %v98_v3 = vmul.f32 %v746_v4, %v30_v57  ;;  %v63_v37 = vld [vmem:[%s1419_s0 + $0x140] sm:$0xff] }
  0x19   :  { %v248_v49 = vmax.f32 %v180_v41, %v795_v25  ;;  %v263_v50 = vmax.f32 %v195_v42, %v795_v25  ;;  %v113_v5 = vmul.f32 %v746_v4, %v45_v60  ;;  %v114_v6 = vmul.f32 %v746_v4, %v46_v61 }
  0x1a   :  { %397 = vmatpush.bf16.msra.mxu0 %v661_v30  ;;  %686 = vmatpush.bf16.msra.mxu1 %v661_v30  ;;  %v280_v53 = vmax.f32 %v212_v45, %v795_v25  ;;  %v129_v7 = vmul.f32 %v746_v4, %v61_v62  ;;  %v130_v8 = vmul.f32 %v746_v4, %v62_v63 }
  0x1b   :  { %687 = vmatpush.bf16.msra.mxu2 %v661_v30  ;;  %688 = vmatpush.bf16.msra.mxu3 %v661_v30  ;;  %v95_v30 = vmul.f32 %v746_v4, %v27_v19  ;;  %v145_v9 = vmul.f32 %v746_v4, %v77_v0  ;;  %v146_v10 = vmul.f32 %v746_v4, %v78_v1 }
  0x1c   :  { %v165_v11 = vadd.f32 %v779_v15, %v97_v2  ;;  %v166_v12 = vadd.f32 %v779_v15, %v98_v3  ;;  %v181_v13 = vadd.f32 %v779_v15, %v113_v5  ;;  %v182_v14 = vadd.f32 %v779_v15, %v114_v6  ;;  %v33_v3 = vld [vmem:[%s1419_s0 + $0x50] sm:$0xff]  ;;  %v34_v5 = vld [vmem:[%s1419_s0 + $0x58] sm:$0xff] }
  0x1d   :  { %v163_v38 = vadd.f32 %v779_v15, %v95_v30  ;;  %v197_v16 = vadd.f32 %v779_v15, %v129_v7  ;;  %v214_v19 = vadd.f32 %v779_v15, %v146_v10  ;;  %v100_v42 = vmul.f32 %v746_v4, %v32_v32  ;;  %v65_v10 = vld [vmem:[%s1419_s0 + $0x150] sm:$0xff] }
  0x1e   :  { %398 = vmatpush.bf16.msra.mxu0 %v660_v39  ;;  %689 = vmatpush.bf16.msra.mxu1 %v660_v39  ;;  %v233_v20 = vmax.f32 %v165_v11, %v795_v25  ;;  %v250_v23 = vmax.f32 %v182_v14, %v795_v25  ;;  %v131_v45 = vmul.f32 %v746_v4, %v63_v37  ;;  %v66_v11 = vld [vmem:[%s1419_s0 + $0x158] sm:$0xff] }
  0x1f   :  { %690 = vmatpush.bf16.msra.mxu2 %v660_v39  ;;  %691 = vmatpush.bf16.msra.mxu3 %v660_v39  ;;  %v164_v39 = vadd.f32 %v779_v15, %v96_v31  ;;  %v231_v46 = vmax.f32 %v163_v38, %v795_v25  ;;  %v265_v24 = vmax.f32 %v197_v16, %v795_v25  ;;  %v31_v31 = vld [vmem:[%s1419_s0 + $0x40] sm:$0xff]  ;;  %v64_v38 = vld [vmem:[%s1419_s0 + $0x148] sm:$0xff] }
  0x20   :  { %v282_v28 = vmax.f32 %v214_v19, %v795_v25  ;;  %v99_v41 = vmul.f32 %v746_v4, %v31_v31  ;;  %v101_v14 = vmul.f32 %v746_v4, %v33_v3  ;;  %v102_v16 = vmul.f32 %v746_v4, %v34_v5 }
  0x21   :  { %399 = vmatmul.bf16.vlgmr.msra.gmra.mxu0 %v291_v43  ;;  %439 = vmatmul.bf16.vlgmr.msra.gmra.mxu1 %v299_v44  ;;  %v196_v43 = vadd.f32 %v779_v15, %v128_v35  ;;  %v211_v44 = vadd.f32 %v779_v15, %v143_v36  ;;  %v47_v35 = vld [vmem:[%s1419_s0 + $0xc0] sm:$0xff]  ;;  %v48_v36 = vld [vmem:[%s1419_s0 + $0xc8] sm:$0xff]  ;;  %v133_v19 = vmul.f32 %v746_v4, %v65_v10 }
  0x22   :  { %479 = vmatmul.bf16.vlgmr.msra.gmra.mxu2 %v307_v47  ;;  %519 = vmatmul.bf16.vlgmr.msra.gmra.mxu3 %v315_v48  ;;  %v232_v47 = vmax.f32 %v164_v39, %v795_v25  ;;  %v247_v48 = vmax.f32 %v179_v40, %v795_v25  ;;  %v79_v39 = vld [vmem:[%s1419_s0 + $0x1c0] sm:$0xff]  ;;  %v80_v40 = vld [vmem:[%s1419_s0 + $0x1c8] sm:$0xff] }
  0x23   :  { %v264_v51 = vmax.f32 %v196_v43, %v795_v25  ;;  %v279_v52 = vmax.f32 %v211_v44, %v795_v25  ;;  %v115_v43 = vmul.f32 %v746_v4, %v47_v35  ;;  %v116_v44 = vmul.f32 %v746_v4, %v48_v36 }
  0x24   :  { %v293_v54 = vpack.c.bf16 %v232_v47, %v231_v46  ;;  %v301_v55 = vpack.c.bf16 %v248_v49, %v247_v48  ;;  %v132_v46 = vmul.f32 %v746_v4, %v64_v38  ;;  %v147_v47 = vmul.f32 %v746_v4, %v79_v39 }
  0x25   :  { %v309_v58 = vpack.c.bf16 %v264_v51, %v263_v50  ;;  %v317_v59 = vpack.c.bf16 %v280_v53, %v279_v52  ;;  %v148_v48 = vmul.f32 %v746_v4, %v80_v40  ;;  %v167_v49 = vadd.f32 %v779_v15, %v99_v41 }
  0x26   :  { %v168_v50 = vadd.f32 %v779_v15, %v100_v42  ;;  %v183_v51 = vadd.f32 %v779_v15, %v115_v43  ;;  %v184_v52 = vadd.f32 %v779_v15, %v116_v44  ;;  %v199_v53 = vadd.f32 %v779_v15, %v131_v45  ;;  %v35_v42 = vld [vmem:[%s1419_s0 + $0x60] sm:$0xff]  ;;  %v36_v43 = vld [vmem:[%s1419_s0 + $0x68] sm:$0xff] }
  0x27   :  { %v216_v56 = vadd.f32 %v779_v15, %v148_v48  ;;  %v235_v57 = vmax.f32 %v167_v49, %v795_v25  ;;  %v67_v48 = vld [vmem:[%s1419_s0 + $0x160] sm:$0xff]  ;;  %v68_v49 = vld [vmem:[%s1419_s0 + $0x168] sm:$0xff] }
  0x28   :  { %v252_v60 = vmax.f32 %v184_v52, %v795_v25  ;;  %v267_v61 = vmax.f32 %v199_v53, %v795_v25  ;;  %v103_v52 = vmul.f32 %v746_v4, %v35_v42  ;;  %v104_v53 = vmul.f32 %v746_v4, %v36_v43 }
  0x29   :  { %v284_v0 = vmax.f32 %v216_v56, %v795_v25  ;;  %v135_v56 = vmul.f32 %v746_v4, %v67_v48 }
  0x31   :  { %404 = vmatmul.bf16.gmra.mxu0 %v292_v17  ;;  %444 = vmatmul.bf16.gmra.mxu1 %v300_v18  ;;  %v198_v17 = vadd.f32 %v779_v15, %v130_v8  ;;  %v213_v18 = vadd.f32 %v779_v15, %v145_v9  ;;  %v49_v8 = vld [vmem:[%s1419_s0 + $0xd0] sm:$0xff]  ;;  %v50_v9 = vld [vmem:[%s1419_s0 + $0xd8] sm:$0xff] }
  0x32   :  { %484 = vmatmul.bf16.gmra.mxu2 %v308_v21  ;;  %524 = vmatmul.bf16.gmra.mxu3 %v316_v22  ;;  %v234_v21 = vmax.f32 %v166_v12, %v795_v25  ;;  %v249_v22 = vmax.f32 %v181_v13, %v795_v25  ;;  %v81_v12 = vld [vmem:[%s1419_s0 + $0x1d0] sm:$0xff]  ;;  %v82_v13 = vld [vmem:[%s1419_s0 + $0x1d8] sm:$0xff] }
  0x33   :  { %v266_v26 = vmax.f32 %v198_v17, %v795_v25  ;;  %v281_v27 = vmax.f32 %v213_v18, %v795_v25  ;;  %v117_v17 = vmul.f32 %v746_v4, %v49_v8  ;;  %v118_v18 = vmul.f32 %v746_v4, %v50_v9 }
  0x34   :  { %v294_v29 = vpack.c.bf16 %v234_v21, %v233_v20  ;;  %v302_v30 = vpack.c.bf16 %v250_v23, %v249_v22  ;;  %v134_v20 = vmul.f32 %v746_v4, %v66_v11  ;;  %v149_v21 = vmul.f32 %v746_v4, %v81_v12 }
  0x35   :  { %v310_v33 = vpack.c.bf16 %v266_v26, %v265_v24  ;;  %v318_v34 = vpack.c.bf16 %v282_v28, %v281_v27  ;;  %v150_v22 = vmul.f32 %v746_v4, %v82_v13  ;;  %v169_v23 = vadd.f32 %v779_v15, %v101_v14 }
  0x36   :  { %v170_v24 = vadd.f32 %v779_v15, %v102_v16  ;;  %v185_v26 = vadd.f32 %v779_v15, %v117_v17  ;;  %v186_v27 = vadd.f32 %v779_v15, %v118_v18  ;;  %v201_v28 = vadd.f32 %v779_v15, %v133_v19  ;;  %v37_v16 = vld [vmem:[%s1419_s0 + $0x70] sm:$0xff]  ;;  %v38_v17 = vld [vmem:[%s1419_s0 + $0x78] sm:$0xff] }
  0x37   :  { %v218_v31 = vadd.f32 %v779_v15, %v150_v22  ;;  %v237_v32 = vmax.f32 %v169_v23, %v795_v25  ;;  %v69_v22 = vld [vmem:[%s1419_s0 + $0x170] sm:$0xff]  ;;  %v70_v23 = vld [vmem:[%s1419_s0 + $0x178] sm:$0xff] }
  0x38   :  { %v254_v35 = vmax.f32 %v186_v27, %v795_v25  ;;  %v269_v36 = vmax.f32 %v201_v28, %v795_v25  ;;  %v105_v27 = vmul.f32 %v746_v4, %v37_v16  ;;  %v106_v28 = vmul.f32 %v746_v4, %v38_v17 }
  0x39   :  { %v286_v39 = vmax.f32 %v218_v31, %v795_v25  ;;  %v137_v31 = vmul.f32 %v746_v4, %v69_v22 }
  0x41   :  { %409 = vmatmul.bf16.gmra.mxu0 %v293_v54  ;;  %449 = vmatmul.bf16.gmra.mxu1 %v301_v55  ;;  %v200_v54 = vadd.f32 %v779_v15, %v132_v46  ;;  %v215_v55 = vadd.f32 %v779_v15, %v147_v47  ;;  %v51_v46 = vld [vmem:[%s1419_s0 + $0xe0] sm:$0xff]  ;;  %v52_v47 = vld [vmem:[%s1419_s0 + $0xe8] sm:$0xff] }
  0x42   :  { %489 = vmatmul.bf16.gmra.mxu2 %v309_v58  ;;  %529 = vmatmul.bf16.gmra.mxu3 %v317_v59  ;;  %v236_v58 = vmax.f32 %v168_v50, %v795_v25  ;;  %v251_v59 = vmax.f32 %v183_v51, %v795_v25  ;;  %v83_v50 = vld [vmem:[%s1419_s0 + $0x1e0] sm:$0xff]  ;;  %v84_v51 = vld [vmem:[%s1419_s0 + $0x1e8] sm:$0xff] }
  0x43   :  { %v268_v62 = vmax.f32 %v200_v54, %v795_v25  ;;  %v283_v63 = vmax.f32 %v215_v55, %v795_v25  ;;  %v119_v54 = vmul.f32 %v746_v4, %v51_v46  ;;  %v120_v55 = vmul.f32 %v746_v4, %v52_v47 }
  0x44   :  { %v295_v1 = vpack.c.bf16 %v236_v58, %v235_v57  ;;  %v303_v2 = vpack.c.bf16 %v252_v60, %v251_v59  ;;  %v136_v57 = vmul.f32 %v746_v4, %v68_v49  ;;  %v151_v58 = vmul.f32 %v746_v4, %v83_v50 }
  0x45   :  { %v311_v6 = vpack.c.bf16 %v268_v62, %v267_v61  ;;  %v319_v7 = vpack.c.bf16 %v284_v0, %v283_v63  ;;  %v152_v59 = vmul.f32 %v746_v4, %v84_v51  ;;  %v171_v60 = vadd.f32 %v779_v15, %v103_v52 }
  0x46   :  { %v172_v61 = vadd.f32 %v779_v15, %v104_v53  ;;  %v187_v62 = vadd.f32 %v779_v15, %v119_v54  ;;  %v188_v63 = vadd.f32 %v779_v15, %v120_v55  ;;  %v203_v0 = vadd.f32 %v779_v15, %v135_v56  ;;  %v1157_v53 = vld [vmem:[%s1420_s5] ss:$0 sm:$0xff] }
  0x47   :  { %v220_v3 = vadd.f32 %v779_v15, %v152_v59  ;;  %v239_v5 = vmax.f32 %v171_v60, %v795_v25 }
  0x48   :  { %v256_v8 = vmax.f32 %v188_v63, %v795_v25  ;;  %v271_v9 = vmax.f32 %v203_v0, %v795_v25 }
  0x49   :  { %v288_v12 = vmax.f32 %v220_v3, %v795_v25 }
  0x51   :  { %414 = vmatmul.bf16.gmra.mxu0 %v294_v29  ;;  %454 = vmatmul.bf16.gmra.mxu1 %v302_v30  ;;  %v202_v29 = vadd.f32 %v779_v15, %v134_v20  ;;  %v217_v30 = vadd.f32 %v779_v15, %v149_v21  ;;  %v53_v20 = vld [vmem:[%s1419_s0 + $0xf0] sm:$0xff]  ;;  %v54_v21 = vld [vmem:[%s1419_s0 + $0xf8] sm:$0xff] }
  0x52   :  { %494 = vmatmul.bf16.gmra.mxu2 %v310_v33  ;;  %534 = vmatmul.bf16.gmra.mxu3 %v318_v34  ;;  %v238_v33 = vmax.f32 %v170_v24, %v795_v25  ;;  %v253_v34 = vmax.f32 %v185_v26, %v795_v25  ;;  %v85_v24 = vld [vmem:[%s1419_s0 + $0x1f0] sm:$0xff]  ;;  %v86_v26 = vld [vmem:[%s1419_s0 + $0x1f8] sm:$0xff] }
  0x53   :  { %v270_v37 = vmax.f32 %v202_v29, %v795_v25  ;;  %v285_v38 = vmax.f32 %v217_v30, %v795_v25  ;;  %v121_v29 = vmul.f32 %v746_v4, %v53_v20  ;;  %v122_v30 = vmul.f32 %v746_v4, %v54_v21 }
  0x54   :  { %v296_v40 = vpack.c.bf16 %v238_v33, %v237_v32  ;;  %v304_v41 = vpack.c.bf16 %v254_v35, %v253_v34  ;;  %v138_v32 = vmul.f32 %v746_v4, %v70_v23  ;;  %v153_v33 = vmul.f32 %v746_v4, %v85_v24 }
  0x55   :  { %v312_v44 = vpack.c.bf16 %v270_v37, %v269_v36  ;;  %v320_v45 = vpack.c.bf16 %v286_v39, %v285_v38  ;;  %v154_v34 = vmul.f32 %v746_v4, %v86_v26  ;;  %v173_v35 = vadd.f32 %v779_v15, %v105_v27 }
  0x56   :  { %v174_v36 = vadd.f32 %v779_v15, %v106_v28  ;;  %v189_v37 = vadd.f32 %v779_v15, %v121_v29  ;;  %v190_v38 = vadd.f32 %v779_v15, %v122_v30  ;;  %v205_v39 = vadd.f32 %v779_v15, %v137_v31 }
  0x57   :  { %v222_v42 = vadd.f32 %v779_v15, %v154_v34  ;;  %v241_v43 = vmax.f32 %v173_v35, %v795_v25 }
  0x58   :  { %v242_v4 = vmax.f32 %v174_v36, %v795_v25  ;;  %v273_v46 = vmax.f32 %v205_v39, %v795_v25 }
  0x59   :  { %v290_v49 = vmax.f32 %v222_v42, %v795_v25 }
  0x5a   :  { %v298_v50 = vpack.c.bf16 %v242_v4, %v241_v43 }
  0x61   :  { %419 = vmatmul.bf16.gmra.mxu0 %v295_v1  ;;  %459 = vmatmul.bf16.gmra.mxu1 %v303_v2  ;;  %v204_v1 = vadd.f32 %v779_v15, %v136_v57  ;;  %v219_v2 = vadd.f32 %v779_v15, %v151_v58 }
  0x62   :  { %499 = vmatmul.bf16.gmra.mxu2 %v311_v6  ;;  %539 = vmatmul.bf16.gmra.mxu3 %v319_v7  ;;  %v240_v6 = vmax.f32 %v172_v61, %v795_v25  ;;  %v255_v7 = vmax.f32 %v187_v62, %v795_v25 }
  0x63   :  { %v272_v10 = vmax.f32 %v204_v1, %v795_v25  ;;  %v287_v11 = vmax.f32 %v219_v2, %v795_v25 }
  0x64   :  { %v297_v13 = vpack.c.bf16 %v240_v6, %v239_v5  ;;  %v305_v14 = vpack.c.bf16 %v256_v8, %v255_v7 }
  0x65   :  { %v313_v18 = vpack.c.bf16 %v272_v10, %v271_v9  ;;  %v321_v19 = vpack.c.bf16 %v288_v12, %v287_v11 }
  0x71   :  { %424 = vmatmul.bf16.gmra.mxu0 %v296_v40  ;;  %464 = vmatmul.bf16.gmra.mxu1 %v304_v41  ;;  %v206_v40 = vadd.f32 %v779_v15, %v138_v32  ;;  %v221_v41 = vadd.f32 %v779_v15, %v153_v33 }
  0x72   :  { %504 = vmatmul.bf16.gmra.mxu2 %v312_v44  ;;  %544 = vmatmul.bf16.gmra.mxu3 %v320_v45  ;;  %v257_v44 = vmax.f32 %v189_v37, %v795_v25  ;;  %v258_v45 = vmax.f32 %v190_v38, %v795_v25 }
  0x73   :  { %v274_v47 = vmax.f32 %v206_v40, %v795_v25  ;;  %v289_v48 = vmax.f32 %v221_v41, %v795_v25 }
  0x74   :  { %v306_v51 = vpack.c.bf16 %v258_v45, %v257_v44 }
  0x75   :  { %v314_v52 = vpack.c.bf16 %v274_v47, %v273_v46  ;;  %v322_v15 = vpack.c.bf16 %v290_v49, %v289_v48 }
  0x81   :  { %429 = vmatmul.bf16.gmra.mxu0 %v297_v13  ;;  %469 = vmatmul.bf16.gmra.mxu1 %v305_v14 }
  0x82   :  { %509 = vmatmul.bf16.gmra.mxu2 %v313_v18  ;;  %549 = vmatmul.bf16.gmra.mxu3 %v321_v19 }
  0x91   :  { %434 = vmatmul.bf16.gmra.mxu0 %v298_v50  ;;  %474 = vmatmul.bf16.gmra.mxu1 %v306_v51 }
  0x92   :  { %514 = vmatmul.bf16.gmra.mxu2 %v314_v52  ;;  %554 = vmatmul.bf16.gmra.mxu3 %v322_v15 }
  0x9e   :  { %v400_v54 = vpop.f32.mrf.mxu0  ;;  %v440_v55 = vpop.f32.mrf.mxu1 }
  0x9f   :  { %v401_v56 = vadd.f32 %v1157_v53, %v400_v54  ;;  %v441_v57 = vadd.f32 %v1157_v53, %v440_v55 }
  0xa1   :  { %560 = vst [vmem:[%s1421_s6] sm:$0xff] %v401_v56 }
  0xa2   :  { %576 = vst [vmem:[%s1421_s6 + $0x80] sm:$0xff] %v441_v57 }
  0xa5   :  { %v480_v25 = vpop.f32.mrf.mxu2  ;;  %v520_v58 = vpop.f32.mrf.mxu3 }
  0xa6   :  { %v481_v59 = vadd.f32 %v1157_v53, %v480_v25  ;;  %v521_v60 = vadd.f32 %v1157_v53, %v520_v58  ;;  %v402_v61 = vpop.f32.mrf.mxu0  ;;  %v442_v62 = vpop.f32.mrf.mxu1 }
  0xa7   :  { %v403_v63 = vadd.f32 %v1157_v53, %v402_v61  ;;  %v443_v0 = vadd.f32 %v1157_v53, %v442_v62 }
  0xa8   :  { %592 = vst [vmem:[%s1421_s6 + $0x100] sm:$0xff] %v481_v59 }
  0xa9   :  { %608 = vst [vmem:[%s1421_s6 + $0x180] sm:$0xff] %v521_v60 }
  0xaa   :  { %561 = vst [vmem:[%s1421_s6 + $0x8] sm:$0xff] %v403_v63 }
  0xab   :  { %577 = vst [vmem:[%s1421_s6 + $0x88] sm:$0xff] %v443_v0 }
  0xad   :  { %v482_v1 = vpop.f32.mrf.mxu2  ;;  %v522_v2 = vpop.f32.mrf.mxu3 }
  0xae   :  { %v483_v3 = vadd.f32 %v1157_v53, %v482_v1  ;;  %v523_v5 = vadd.f32 %v1157_v53, %v522_v2  ;;  %v405_v6 = vpop.f32.mrf.mxu0  ;;  %v445_v7 = vpop.f32.mrf.mxu1 }
  0xaf   :  { %v406_v8 = vadd.f32 %v1157_v53, %v405_v6  ;;  %v446_v9 = vadd.f32 %v1157_v53, %v445_v7 }
  0xb0   :  { %593 = vst [vmem:[%s1421_s6 + $0x108] sm:$0xff] %v483_v3 }
  0xb1   :  { %609 = vst [vmem:[%s1421_s6 + $0x188] sm:$0xff] %v523_v5 }
  0xb2   :  { %562 = vst [vmem:[%s1421_s6 + $0x10] sm:$0xff] %v406_v8 }
  0xb3   :  { %578 = vst [vmem:[%s1421_s6 + $0x90] sm:$0xff] %v446_v9 }
  0xb5   :  { %v485_v10 = vpop.f32.mrf.mxu2  ;;  %v525_v11 = vpop.f32.mrf.mxu3 }
  0xb6   :  { %v486_v12 = vadd.f32 %v1157_v53, %v485_v10  ;;  %v526_v13 = vadd.f32 %v1157_v53, %v525_v11  ;;  %v407_v14 = vpop.f32.mrf.mxu0  ;;  %v447_v16 = vpop.f32.mrf.mxu1 }
  0xb7   :  { %v408_v17 = vadd.f32 %v1157_v53, %v407_v14  ;;  %v448_v18 = vadd.f32 %v1157_v53, %v447_v16 }
  0xb8   :  { %594 = vst [vmem:[%s1421_s6 + $0x110] sm:$0xff] %v486_v12 }
  0xb9   :  { %610 = vst [vmem:[%s1421_s6 + $0x190] sm:$0xff] %v526_v13 }
  0xba   :  { %563 = vst [vmem:[%s1421_s6 + $0x18] sm:$0xff] %v408_v17 }
  0xbb   :  { %579 = vst [vmem:[%s1421_s6 + $0x98] sm:$0xff] %v448_v18 }
  0xbd   :  { %v487_v19 = vpop.f32.mrf.mxu2  ;;  %v527_v20 = vpop.f32.mrf.mxu3 }
  0xbe   :  { %v488_v21 = vadd.f32 %v1157_v53, %v487_v19  ;;  %v528_v22 = vadd.f32 %v1157_v53, %v527_v20  ;;  %v410_v23 = vpop.f32.mrf.mxu0  ;;  %v450_v24 = vpop.f32.mrf.mxu1 }
  0xbf   :  { %v411_v26 = vadd.f32 %v1157_v53, %v410_v23  ;;  %v451_v27 = vadd.f32 %v1157_v53, %v450_v24 }
  0xc0   :  { %595 = vst [vmem:[%s1421_s6 + $0x118] sm:$0xff] %v488_v21 }
  0xc1   :  { %611 = vst [vmem:[%s1421_s6 + $0x198] sm:$0xff] %v528_v22 }
  0xc2   :  { %564 = vst [vmem:[%s1421_s6 + $0x20] sm:$0xff] %v411_v26 }
  0xc3   :  { %580 = vst [vmem:[%s1421_s6 + $0xa0] sm:$0xff] %v451_v27 }
  0xc5   :  { %v490_v28 = vpop.f32.mrf.mxu2  ;;  %v530_v29 = vpop.f32.mrf.mxu3 }
  0xc6   :  { %v491_v30 = vadd.f32 %v1157_v53, %v490_v28  ;;  %v531_v31 = vadd.f32 %v1157_v53, %v530_v29  ;;  %v412_v32 = vpop.f32.mrf.mxu0  ;;  %v452_v33 = vpop.f32.mrf.mxu1 }
  0xc7   :  { %v413_v34 = vadd.f32 %v1157_v53, %v412_v32  ;;  %v453_v35 = vadd.f32 %v1157_v53, %v452_v33 }
  0xc8   :  { %596 = vst [vmem:[%s1421_s6 + $0x120] sm:$0xff] %v491_v30 }
  0xc9   :  { %612 = vst [vmem:[%s1421_s6 + $0x1a0] sm:$0xff] %v531_v31 }
  0xca   :  { %565 = vst [vmem:[%s1421_s6 + $0x28] sm:$0xff] %v413_v34 }
  0xcb   :  { %581 = vst [vmem:[%s1421_s6 + $0xa8] sm:$0xff] %v453_v35 }
  0xcd   :  { %v492_v36 = vpop.f32.mrf.mxu2  ;;  %v532_v37 = vpop.f32.mrf.mxu3 }
  0xce   :  { %v493_v38 = vadd.f32 %v1157_v53, %v492_v36  ;;  %v533_v39 = vadd.f32 %v1157_v53, %v532_v37  ;;  %v415_v40 = vpop.f32.mrf.mxu0  ;;  %v455_v41 = vpop.f32.mrf.mxu1 }
  0xcf   :  { %v416_v42 = vadd.f32 %v1157_v53, %v415_v40  ;;  %v456_v43 = vadd.f32 %v1157_v53, %v455_v41 }
  0xd0   :  { %597 = vst [vmem:[%s1421_s6 + $0x128] sm:$0xff] %v493_v38 }
  0xd1   :  { %613 = vst [vmem:[%s1421_s6 + $0x1a8] sm:$0xff] %v533_v39 }
  0xd2   :  { %566 = vst [vmem:[%s1421_s6 + $0x30] sm:$0xff] %v416_v42 }
  0xd3   :  { %582 = vst [vmem:[%s1421_s6 + $0xb0] sm:$0xff] %v456_v43 }
  0xd5   :  { %v495_v4 = vpop.f32.mrf.mxu2  ;;  %v535_v44 = vpop.f32.mrf.mxu3 }
  0xd6   :  { %v496_v45 = vadd.f32 %v1157_v53, %v495_v4  ;;  %v536_v46 = vadd.f32 %v1157_v53, %v535_v44  ;;  %v417_v47 = vpop.f32.mrf.mxu0  ;;  %v457_v48 = vpop.f32.mrf.mxu1 }
  0xd7   :  { %v418_v49 = vadd.f32 %v1157_v53, %v417_v47  ;;  %v458_v50 = vadd.f32 %v1157_v53, %v457_v48 }
  0xd8   :  { %598 = vst [vmem:[%s1421_s6 + $0x130] sm:$0xff] %v496_v45 }
  0xd9   :  { %614 = vst [vmem:[%s1421_s6 + $0x1b0] sm:$0xff] %v536_v46 }
  0xda   :  { %567 = vst [vmem:[%s1421_s6 + $0x38] sm:$0xff] %v418_v49 }
  0xdb   :  { %583 = vst [vmem:[%s1421_s6 + $0xb8] sm:$0xff] %v458_v50 }
  0xdd   :  { %v497_v51 = vpop.f32.mrf.mxu2  ;;  %v537_v52 = vpop.f32.mrf.mxu3 }
  0xde   :  { %v498_v15 = vadd.f32 %v1157_v53, %v497_v51  ;;  %v538_v54 = vadd.f32 %v1157_v53, %v537_v52  ;;  %v420_v55 = vpop.f32.mrf.mxu0  ;;  %v460_v56 = vpop.f32.mrf.mxu1 }
  0xdf   :  { %v421_v57 = vadd.f32 %v1157_v53, %v420_v55  ;;  %v461_v25 = vadd.f32 %v1157_v53, %v460_v56 }
  0xe0   :  { %599 = vst [vmem:[%s1421_s6 + $0x138] sm:$0xff] %v498_v15 }
  0xe1   :  { %615 = vst [vmem:[%s1421_s6 + $0x1b8] sm:$0xff] %v538_v54 }
  0xe2   :  { %568 = vst [vmem:[%s1421_s6 + $0x40] sm:$0xff] %v421_v57 }
  0xe3   :  { %584 = vst [vmem:[%s1421_s6 + $0xc0] sm:$0xff] %v461_v25 }
  0xe5   :  { %v500_v58 = vpop.f32.mrf.mxu2  ;;  %v540_v59 = vpop.f32.mrf.mxu3 }
  0xe6   :  { %v501_v60 = vadd.f32 %v1157_v53, %v500_v58  ;;  %v541_v61 = vadd.f32 %v1157_v53, %v540_v59  ;;  %v422_v62 = vpop.f32.mrf.mxu0  ;;  %v462_v63 = vpop.f32.mrf.mxu1 }
  0xe7   :  { %v423_v0 = vadd.f32 %v1157_v53, %v422_v62  ;;  %v463_v1 = vadd.f32 %v1157_v53, %v462_v63 }
  0xe8   :  { %600 = vst [vmem:[%s1421_s6 + $0x140] sm:$0xff] %v501_v60 }
  0xe9   :  { %616 = vst [vmem:[%s1421_s6 + $0x1c0] sm:$0xff] %v541_v61 }
  0xea   :  { %569 = vst [vmem:[%s1421_s6 + $0x48] sm:$0xff] %v423_v0 }
  0xeb   :  { %585 = vst [vmem:[%s1421_s6 + $0xc8] sm:$0xff] %v463_v1 }
  0xed   :  { %v502_v2 = vpop.f32.mrf.mxu2  ;;  %v542_v3 = vpop.f32.mrf.mxu3 }
  0xee   :  { %v503_v5 = vadd.f32 %v1157_v53, %v502_v2  ;;  %v543_v6 = vadd.f32 %v1157_v53, %v542_v3  ;;  %v425_v7 = vpop.f32.mrf.mxu0  ;;  %v465_v8 = vpop.f32.mrf.mxu1 }
  0xef   :  { %v426_v9 = vadd.f32 %v1157_v53, %v425_v7  ;;  %v466_v10 = vadd.f32 %v1157_v53, %v465_v8 }
  0xf0   :  { %601 = vst [vmem:[%s1421_s6 + $0x148] sm:$0xff] %v503_v5 }
  0xf1   :  { %617 = vst [vmem:[%s1421_s6 + $0x1c8] sm:$0xff] %v543_v6 }
  0xf2   :  { %570 = vst [vmem:[%s1421_s6 + $0x50] sm:$0xff] %v426_v9 }
  0xf3   :  { %586 = vst [vmem:[%s1421_s6 + $0xd0] sm:$0xff] %v466_v10 }
  0xf5   :  { %v505_v11 = vpop.f32.mrf.mxu2  ;;  %v545_v12 = vpop.f32.mrf.mxu3 }
  0xf6   :  { %v506_v13 = vadd.f32 %v1157_v53, %v505_v11  ;;  %v546_v14 = vadd.f32 %v1157_v53, %v545_v12  ;;  %v427_v16 = vpop.f32.mrf.mxu0  ;;  %v467_v17 = vpop.f32.mrf.mxu1 }
  0xf7   :  { %v428_v18 = vadd.f32 %v1157_v53, %v427_v16  ;;  %v468_v19 = vadd.f32 %v1157_v53, %v467_v17 }
  0xf8   :  { %602 = vst [vmem:[%s1421_s6 + $0x150] sm:$0xff] %v506_v13 }
  0xf9   :  { %618 = vst [vmem:[%s1421_s6 + $0x1d0] sm:$0xff] %v546_v14 }
  0xfa   :  { %571 = vst [vmem:[%s1421_s6 + $0x58] sm:$0xff] %v428_v18 }
  0xfb   :  { %587 = vst [vmem:[%s1421_s6 + $0xd8] sm:$0xff] %v468_v19 }
  0xfd   :  { %v507_v20 = vpop.f32.mrf.mxu2  ;;  %v547_v21 = vpop.f32.mrf.mxu3 }
  0xfe   :  { %v508_v22 = vadd.f32 %v1157_v53, %v507_v20  ;;  %v548_v23 = vadd.f32 %v1157_v53, %v547_v21  ;;  %v430_v24 = vpop.f32.mrf.mxu0  ;;  %v470_v26 = vpop.f32.mrf.mxu1 }
  0xff   :  { %v431_v27 = vadd.f32 %v1157_v53, %v430_v24  ;;  %v471_v28 = vadd.f32 %v1157_v53, %v470_v26 }
 0x100   :  { %603 = vst [vmem:[%s1421_s6 + $0x158] sm:$0xff] %v508_v22 }
 0x101   :  { %619 = vst [vmem:[%s1421_s6 + $0x1d8] sm:$0xff] %v548_v23 }
 0x102   :  { %572 = vst [vmem:[%s1421_s6 + $0x60] sm:$0xff] %v431_v27 }
 0x103   :  { %588 = vst [vmem:[%s1421_s6 + $0xe0] sm:$0xff] %v471_v28 }
 0x105   :  { %v510_v29 = vpop.f32.mrf.mxu2  ;;  %v550_v30 = vpop.f32.mrf.mxu3 }
 0x106   :  { %v511_v31 = vadd.f32 %v1157_v53, %v510_v29  ;;  %v551_v32 = vadd.f32 %v1157_v53, %v550_v30  ;;  %v432_v33 = vpop.f32.mrf.mxu0  ;;  %v472_v34 = vpop.f32.mrf.mxu1 }
 0x107   :  { %v433_v35 = vadd.f32 %v1157_v53, %v432_v33  ;;  %v473_v36 = vadd.f32 %v1157_v53, %v472_v34 }
 0x108   :  { %604 = vst [vmem:[%s1421_s6 + $0x160] sm:$0xff] %v511_v31 }
 0x109   :  { %620 = vst [vmem:[%s1421_s6 + $0x1e0] sm:$0xff] %v551_v32 }
 0x10a   :  { %573 = vst [vmem:[%s1421_s6 + $0x68] sm:$0xff] %v433_v35 }
 0x10b   :  { %589 = vst [vmem:[%s1421_s6 + $0xe8] sm:$0xff] %v473_v36 }
 0x10d   :  { %v512_v37 = vpop.f32.mrf.mxu2  ;;  %v552_v38 = vpop.f32.mrf.mxu3 }
 0x10e   :  { %v513_v39 = vadd.f32 %v1157_v53, %v512_v37  ;;  %v553_v40 = vadd.f32 %v1157_v53, %v552_v38  ;;  %v435_v41 = vpop.f32.mrf.mxu0  ;;  %v475_v42 = vpop.f32.mrf.mxu1 }
 0x10f   :  { %v436_v43 = vadd.f32 %v1157_v53, %v435_v41  ;;  %v476_v4 = vadd.f32 %v1157_v53, %v475_v42 }
 0x110   :  { %605 = vst [vmem:[%s1421_s6 + $0x168] sm:$0xff] %v513_v39 }
 0x111   :  { %621 = vst [vmem:[%s1421_s6 + $0x1e8] sm:$0xff] %v553_v40 }
 0x112   :  { %574 = vst [vmem:[%s1421_s6 + $0x70] sm:$0xff] %v436_v43 }
 0x113   :  { %590 = vst [vmem:[%s1421_s6 + $0xf0] sm:$0xff] %v476_v4 }
 0x115   :  { %v515_v44 = vpop.f32.mrf.mxu2  ;;  %v555_v45 = vpop.f32.mrf.mxu3 }
 0x116   :  { %v516_v46 = vadd.f32 %v1157_v53, %v515_v44  ;;  %v556_v47 = vadd.f32 %v1157_v53, %v555_v45  ;;  %v437_v48 = vpop.f32.mrf.mxu0  ;;  %v477_v49 = vpop.f32.mrf.mxu1 }
 0x117   :  { %v438_v50 = vadd.f32 %v1157_v53, %v437_v48  ;;  %v478_v51 = vadd.f32 %v1157_v53, %v477_v49 }
 0x118   :  { %606 = vst [vmem:[%s1421_s6 + $0x170] sm:$0xff] %v516_v46 }
 0x119   :  { %622 = vst [vmem:[%s1421_s6 + $0x1f0] sm:$0xff] %v556_v47 }
 0x11a   :  { %575 = vst [vmem:[%s1421_s6 + $0x78] sm:$0xff] %v438_v50 }
 0x11b   :  { %591 = vst [vmem:[%s1421_s6 + $0xf8] sm:$0xff] %v478_v51 }
 0x11d   :  { %v517_v52 = vpop.f32.mrf.mxu2  ;;  %v557_v15 = vpop.f32.mrf.mxu3 }
 0x11e   :  { %v518_v54 = vadd.f32 %v1157_v53, %v517_v52  ;;  %v558_v55 = vadd.f32 %v1157_v53, %v557_v15 }
 0x120   :  { %607 = vst [vmem:[%s1421_s6 + $0x178] sm:$0xff] %v518_v54 }
 0x121   :  { %623 = vst [vmem:[%s1421_s6 + $0x1f8] sm:$0xff] %v558_v55 }

// kernel: fwd.4
= control target key start
LH: loop header
LB: loop body
LE: loop exit
PB: predicated region body
PF: predicated region fallthrough
CT: control target
= control target key end

     0   :  { %s2391_s4 = inlined_call_operand.vmem [shape: bf16[256,128], index: 4, kind: input, shape index: {}]   ;;  %s2392_s1 = inlined_call_operand.vmem [shape: f32[1,256], index: 1, kind: input, shape index: {}]   ;;  %s2393_s0 = inlined_call_operand.vmem [shape: f32[512,256], index: 0, kind: input, shape index: {}]   ;;  %s2394_s2 = inlined_call_operand.vmem [shape: f32[1,256], index: 2, kind: input, shape index: {}]   ;;  %s2395_s3 = inlined_call_operand.vmem [shape: f32[1,256], index: 3, kind: input, shape index: {}]   ;;  %s2396_s5 = inlined_call_operand.vmem [shape: f32[1,128], index: 5, kind: input, shape index: {}]   ;;  %s2397_s6 = inlined_call_operand.vmem [shape: f32[512,128], index: 6, kind: output, shape index: {}]  }
   0x1   :  { %v1226_v0 = vld [vmem:[%s2391_s4 + $0x38] sm:$0xff]  ;;  %v1225_v2 = vld [vmem:[%s2391_s4 + $0x30] sm:$0xff]  ;;  %v1224_v4 = vld [vmem:[%s2391_s4 + $0x28] sm:$0xff] }
   0x2   :  { %v1234_v1 = vld [vmem:[%s2391_s4 + $0x78] sm:$0xff]  ;;  %749 = vmatpush.bf16.msra.mxu0 %v1226_v0  ;;  %1235 = vmatpush.bf16.msra.mxu2 %v1226_v0  ;;  %v1233_v3 = vld [vmem:[%s2391_s4 + $0x70] sm:$0xff]  ;;  %v1232_v5 = vld [vmem:[%s2391_s4 + $0x68] sm:$0xff] }
   0x3   :  { %918 = vmatpush.bf16.msra.mxu1 %v1234_v1  ;;  %1243 = vmatpush.bf16.msra.mxu3 %v1234_v1  ;;  %v151_v6 = vld [vmem:[%s2392_s1] sm:$0x3]  ;;  %v1222_v9 = vld [vmem:[%s2391_s4 + $0x18] sm:$0xff]  ;;  %v25_v13 = vld [vmem:[%s2393_s0 + $0x10] sm:$0xff] }
   0x4   :  { %v1223_v7 = vld [vmem:[%s2391_s4 + $0x20] sm:$0xff]  ;;  %v1318_v10 = vperm.slane %v151_v6, 0  ;;  %v1230_v11 = vld [vmem:[%s2391_s4 + $0x58] sm:$0xff]  ;;  %v1332_v15 = vperm.slane %v151_v6, 1  ;;  %v89_v17 = vld [vmem:[%s2393_s0 + $0x210] sm:$0xff] }
   0x5   :  { %v1231_v8 = vld [vmem:[%s2391_s4 + $0x60] sm:$0xff]  ;;  %v24_v18 = vld [vmem:[%s2393_s0 + $0x8] sm:$0xff]  ;;  %v26_v19 = vld [vmem:[%s2393_s0 + $0x18] sm:$0xff] }
   0x6   :  { %750 = vmatpush.bf16.msra.mxu0 %v1225_v2  ;;  %1236 = vmatpush.bf16.msra.mxu2 %v1225_v2  ;;  %v23_v12 = vld [vmem:[%s2393_s0] sm:$0xff]  ;;  %v88_v20 = vld [vmem:[%s2393_s0 + $0x208] sm:$0xff]  ;;  %v90_v21 = vld [vmem:[%s2393_s0 + $0x218] sm:$0xff]  ;;  %v159_v25 = vmul.f32 %v1318_v10, %v25_v13  ;;  %v223_v28 = vmul.f32 %v1318_v10, %v89_v17  ;;  %v158_v29 = vmul.f32 %v1332_v15, %v24_v18 }
   0x7   :  { %919 = vmatpush.bf16.msra.mxu1 %v1233_v3  ;;  %1244 = vmatpush.bf16.msra.mxu3 %v1233_v3  ;;  %v285_v14 = vld [vmem:[%s2394_s2] sm:$0x3]  ;;  %v157_v22 = vmul.f32 %v1318_v10, %v23_v12  ;;  %v1221_v30 = vld [vmem:[%s2391_s4 + $0x10] sm:$0xff]  ;;  %v160_v31 = vmul.f32 %v1332_v15, %v26_v19  ;;  %v222_v32 = vmul.f32 %v1332_v15, %v88_v20  ;;  %v1220_v42 = vld [vmem:[%s2391_s4 + $0x8] sm:$0xff] }
   0x8   :  { %v87_v16 = vld [vmem:[%s2393_s0 + $0x200] sm:$0xff]  ;;  %v1353_v23 = vperm.slane %v285_v14, 0  ;;  %v1355_v24 = vperm.slane %v285_v14, 1  ;;  %v224_v33 = vmul.f32 %v1332_v15, %v90_v21  ;;  %v1229_v34 = vld [vmem:[%s2391_s4 + $0x50] sm:$0xff]  ;;  %v1228_v46 = vld [vmem:[%s2391_s4 + $0x48] sm:$0xff] }
   0x9   :  { %v419_v26 = vld [vmem:[%s2395_s3] sm:$0x3]  ;;  %v221_v27 = vmul.f32 %v1318_v10, %v87_v16  ;;  %v29_v60 = vld [vmem:[%s2393_s0 + $0x30] sm:$0xff]  ;;  %v28_v1 = vld [vmem:[%s2393_s0 + $0x28] sm:$0xff] }
   0xa   :  { %751 = vmatpush.bf16.msra.mxu0 %v1224_v4  ;;  %1237 = vmatpush.bf16.msra.mxu2 %v1224_v4  ;;  %v291_v35 = vadd.f32 %v1353_v23, %v157_v22  ;;  %v1374_v36 = vperm.slane %v419_v26, 0  ;;  %v1376_v37 = vperm.slane %v419_v26, 1  ;;  %v293_v38 = vadd.f32 %v1353_v23, %v159_v25  ;;  %v1219_v52 = vld [vmem:[%s2391_s4] sm:$0xff]  ;;  %v93_v0 = vld [vmem:[%s2393_s0 + $0x230] sm:$0xff]  ;;  %v30_v2 = vld [vmem:[%s2393_s0 + $0x38] sm:$0xff] }
   0xb   :  { %920 = vmatpush.bf16.msra.mxu1 %v1232_v5  ;;  %1245 = vmatpush.bf16.msra.mxu3 %v1232_v5  ;;  %v355_v39 = vadd.f32 %v1353_v23, %v221_v27  ;;  %v357_v40 = vadd.f32 %v1353_v23, %v223_v28  ;;  %v292_v41 = vadd.f32 %v1355_v24, %v158_v29  ;;  %v1227_v56 = vld [vmem:[%s2391_s4 + $0x40] sm:$0xff]  ;;  %v92_v3 = vld [vmem:[%s2393_s0 + $0x228] sm:$0xff]  ;;  %v94_v4 = vld [vmem:[%s2393_s0 + $0x238] sm:$0xff] }
   0xc   :  { %v294_v43 = vadd.f32 %v1355_v24, %v160_v31  ;;  %v356_v44 = vadd.f32 %v1355_v24, %v222_v32  ;;  %v358_v45 = vadd.f32 %v1355_v24, %v224_v33  ;;  %v425_v47 = vmax.f32 %v291_v35, %v1374_v36  ;;  %v27_v59 = vld [vmem:[%s2393_s0 + $0x20] sm:$0xff] }
   0xd   :  { %v427_v48 = vmax.f32 %v293_v38, %v1374_v36  ;;  %v489_v49 = vmax.f32 %v355_v39, %v1374_v36  ;;  %v491_v50 = vmax.f32 %v357_v40, %v1374_v36  ;;  %v426_v51 = vmax.f32 %v292_v41, %v1376_v37  ;;  %v91_v63 = vld [vmem:[%s2393_s0 + $0x220] sm:$0xff]  ;;  %v33_v38 = vld [vmem:[%s2393_s0 + $0x50] sm:$0xff] }
   0xe   :  { %752 = vmatpush.bf16.msra.mxu0 %v1223_v7  ;;  %1238 = vmatpush.bf16.msra.mxu2 %v1223_v7  ;;  %v428_v53 = vmax.f32 %v294_v43, %v1376_v37  ;;  %v490_v54 = vmax.f32 %v356_v44, %v1376_v37  ;;  %v492_v55 = vmax.f32 %v358_v45, %v1376_v37  ;;  %v31_v35 = vld [vmem:[%s2393_s0 + $0x40] sm:$0xff]  ;;  %v32_v43 = vld [vmem:[%s2393_s0 + $0x48] sm:$0xff]  ;;  %v34_v44 = vld [vmem:[%s2393_s0 + $0x58] sm:$0xff] }
   0xf   :  { %921 = vmatpush.bf16.msra.mxu1 %v1231_v8  ;;  %1246 = vmatpush.bf16.msra.mxu3 %v1231_v8  ;;  %v553_v57 = vpack.c.bf16 %v427_v48, %v425_v47  ;;  %v585_v58 = vpack.c.bf16 %v491_v50, %v489_v49  ;;  %v161_v5 = vmul.f32 %v1318_v10, %v27_v59  ;;  %v95_v41 = vld [vmem:[%s2393_s0 + $0x240] sm:$0xff]  ;;  %v96_v45 = vld [vmem:[%s2393_s0 + $0x248] sm:$0xff] }
  0x10   :  { %v554_v61 = vpack.c.bf16 %v428_v53, %v426_v51  ;;  %v586_v62 = vpack.c.bf16 %v492_v55, %v490_v54  ;;  %v163_v6 = vmul.f32 %v1318_v10, %v29_v60  ;;  %v225_v7 = vmul.f32 %v1318_v10, %v91_v63 }
  0x11   :  { %v227_v8 = vmul.f32 %v1318_v10, %v93_v0  ;;  %v226_v12 = vmul.f32 %v1332_v15, %v92_v3  ;;  %v228_v13 = vmul.f32 %v1332_v15, %v94_v4  ;;  %v295_v14 = vadd.f32 %v1353_v23, %v161_v5 }
  0x12   :  { %753 = vmatpush.bf16.msra.mxu0 %v1222_v9  ;;  %1239 = vmatpush.bf16.msra.mxu2 %v1222_v9  ;;  %v162_v9 = vmul.f32 %v1332_v15, %v28_v1  ;;  %v297_v16 = vadd.f32 %v1353_v23, %v163_v6  ;;  %v359_v17 = vadd.f32 %v1353_v23, %v225_v7 }
  0x13   :  { %922 = vmatpush.bf16.msra.mxu1 %v1230_v11  ;;  %1247 = vmatpush.bf16.msra.mxu3 %v1230_v11  ;;  %v164_v11 = vmul.f32 %v1332_v15, %v30_v2  ;;  %v361_v18 = vadd.f32 %v1353_v23, %v227_v8  ;;  %v360_v21 = vadd.f32 %v1355_v24, %v226_v12 }
  0x14   :  { %v296_v19 = vadd.f32 %v1355_v24, %v162_v9  ;;  %v362_v22 = vadd.f32 %v1355_v24, %v228_v13  ;;  %v429_v25 = vmax.f32 %v295_v14, %v1374_v36  ;;  %v431_v26 = vmax.f32 %v297_v16, %v1374_v36  ;;  %v35_v9 = vld [vmem:[%s2393_s0 + $0x60] sm:$0xff]  ;;  %v101_v16 = vld [vmem:[%s2393_s0 + $0x270] sm:$0xff] }
  0x15   :  { %v298_v20 = vadd.f32 %v1355_v24, %v164_v11  ;;  %v493_v27 = vmax.f32 %v359_v17, %v1374_v36  ;;  %v495_v28 = vmax.f32 %v361_v18, %v1374_v36  ;;  %v494_v31 = vmax.f32 %v360_v21, %v1376_v37  ;;  %v37_v11 = vld [vmem:[%s2393_s0 + $0x70] sm:$0xff]  ;;  %v99_v14 = vld [vmem:[%s2393_s0 + $0x260] sm:$0xff]  ;;  %v36_v17 = vld [vmem:[%s2393_s0 + $0x68] sm:$0xff] }
  0x16   :  { %754 = vmatpush.bf16.msra.mxu0 %v1221_v30  ;;  %1240 = vmatpush.bf16.msra.mxu2 %v1221_v30  ;;  %v430_v29 = vmax.f32 %v296_v19, %v1376_v37  ;;  %v496_v32 = vmax.f32 %v362_v22, %v1376_v37  ;;  %v555_v33 = vpack.c.bf16 %v431_v26, %v429_v25  ;;  %v38_v18 = vld [vmem:[%s2393_s0 + $0x78] sm:$0xff]  ;;  %v100_v19 = vld [vmem:[%s2393_s0 + $0x268] sm:$0xff] }
  0x17   :  { %923 = vmatpush.bf16.msra.mxu1 %v1229_v34  ;;  %1248 = vmatpush.bf16.msra.mxu3 %v1229_v34  ;;  %v432_v30 = vmax.f32 %v298_v20, %v1376_v37  ;;  %v587_v34 = vpack.c.bf16 %v495_v28, %v493_v27  ;;  %v165_v47 = vmul.f32 %v1318_v10, %v31_v35  ;;  %v102_v20 = vld [vmem:[%s2393_s0 + $0x278] sm:$0xff] }
  0x18   :  { %v588_v40 = vpack.c.bf16 %v496_v32, %v494_v31  ;;  %v167_v48 = vmul.f32 %v1318_v10, %v33_v38  ;;  %v229_v49 = vmul.f32 %v1318_v10, %v95_v41  ;;  %v166_v51 = vmul.f32 %v1332_v15, %v32_v43 }
  0x19   :  { %v556_v39 = vpack.c.bf16 %v432_v30, %v430_v29  ;;  %v230_v53 = vmul.f32 %v1332_v15, %v96_v45  ;;  %v299_v55 = vadd.f32 %v1353_v23, %v165_v47  ;;  %v169_v21 = vmul.f32 %v1318_v10, %v35_v9 }
  0x1a   :  { %755 = vmatpush.bf16.msra.mxu0 %v1220_v42  ;;  %1241 = vmatpush.bf16.msra.mxu2 %v1220_v42  ;;  %v97_v42 = vld [vmem:[%s2393_s0 + $0x250] sm:$0xff]  ;;  %v300_v59 = vadd.f32 %v1355_v24, %v166_v51  ;;  %v171_v22 = vmul.f32 %v1318_v10, %v37_v11  ;;  %v233_v25 = vmul.f32 %v1318_v10, %v99_v14  ;;  %v39_v51 = vld [vmem:[%s2393_s0 + $0x80] sm:$0xff] }
  0x1b   :  { %924 = vmatpush.bf16.msra.mxu1 %v1228_v46  ;;  %1249 = vmatpush.bf16.msra.mxu3 %v1228_v46  ;;  %v98_v46 = vld [vmem:[%s2393_s0 + $0x258] sm:$0xff]  ;;  %v231_v50 = vmul.f32 %v1318_v10, %v97_v42  ;;  %v433_v63 = vmax.f32 %v299_v55, %v1374_v36  ;;  %v235_v26 = vmul.f32 %v1318_v10, %v101_v16  ;;  %v103_v55 = vld [vmem:[%s2393_s0 + $0x280] sm:$0xff] }
  0x1c   :  { %v232_v54 = vmul.f32 %v1332_v15, %v98_v46  ;;  %v434_v3 = vmax.f32 %v300_v59, %v1376_v37  ;;  %v170_v27 = vmul.f32 %v1332_v15, %v36_v17  ;;  %v172_v28 = vmul.f32 %v1332_v15, %v38_v18  ;;  %v104_v59 = vld [vmem:[%s2393_s0 + $0x288] sm:$0xff] }
  0x1d   :  { %v234_v29 = vmul.f32 %v1332_v15, %v100_v19  ;;  %v236_v30 = vmul.f32 %v1332_v15, %v102_v20  ;;  %v303_v31 = vadd.f32 %v1353_v23, %v169_v21  ;;  %v305_v32 = vadd.f32 %v1353_v23, %v171_v22 }
  0x1e   :  { %756 = vmatpush.bf16.msra.mxu0 %v1219_v52  ;;  %1242 = vmatpush.bf16.msra.mxu2 %v1219_v52  ;;  %v168_v52 = vmul.f32 %v1332_v15, %v34_v44  ;;  %v304_v35 = vadd.f32 %v1355_v24, %v170_v27  ;;  %v306_v38 = vadd.f32 %v1355_v24, %v172_v28  ;;  %v43_v27 = vld [vmem:[%s2393_s0 + $0xa0] sm:$0xff]  ;;  %v45_v28 = vld [vmem:[%s2393_s0 + $0xb0] sm:$0xff] }
  0x1f   :  { %925 = vmatpush.bf16.msra.mxu1 %v1227_v56  ;;  %1250 = vmatpush.bf16.msra.mxu3 %v1227_v56  ;;  %v301_v56 = vadd.f32 %v1353_v23, %v167_v48  ;;  %v437_v41 = vmax.f32 %v303_v31, %v1374_v36  ;;  %v439_v42 = vmax.f32 %v305_v32, %v1374_v36  ;;  %v107_v31 = vld [vmem:[%s2393_s0 + $0x2a0] sm:$0xff]  ;;  %v109_v32 = vld [vmem:[%s2393_s0 + $0x2b0] sm:$0xff] }
  0x20   :  { %v302_v60 = vadd.f32 %v1355_v24, %v168_v52  ;;  %v438_v45 = vmax.f32 %v304_v35, %v1376_v37  ;;  %v440_v46 = vmax.f32 %v306_v38, %v1376_v37  ;;  %v41_v52 = vld [vmem:[%s2393_s0 + $0x90] sm:$0xff]  ;;  %v108_v35 = vld [vmem:[%s2393_s0 + $0x2a8] sm:$0xff]  ;;  %v110_v38 = vld [vmem:[%s2393_s0 + $0x2b8] sm:$0xff] }
  0x21   :  { %757 = vmatmul.bf16.vlgmr.msra.gmra.mxu0 %v553_v57  ;;  %837 = vmatmul.bf16.vlgmr.msra.gmra.mxu2 %v585_v58  ;;  %v363_v57 = vadd.f32 %v1353_v23, %v229_v49  ;;  %v365_v58 = vadd.f32 %v1353_v23, %v231_v50  ;;  %v435_v0 = vmax.f32 %v301_v56, %v1374_v36  ;;  %v105_v56 = vld [vmem:[%s2393_s0 + $0x290] sm:$0xff] }
  0x22   :  { %926 = vmatmul.bf16.vlgmr.msra.gmra.mxu1 %v554_v61  ;;  %1006 = vmatmul.bf16.vlgmr.msra.gmra.mxu3 %v586_v62  ;;  %v364_v61 = vadd.f32 %v1355_v24, %v230_v53  ;;  %v366_v62 = vadd.f32 %v1355_v24, %v232_v54  ;;  %v436_v4 = vmax.f32 %v302_v60, %v1376_v37  ;;  %v106_v60 = vld [vmem:[%s2393_s0 + $0x298] sm:$0xff] }
  0x23   :  { %v497_v1 = vmax.f32 %v363_v57, %v1374_v36  ;;  %v499_v2 = vmax.f32 %v365_v58, %v1374_v36  ;;  %v557_v7 = vpack.c.bf16 %v435_v0, %v433_v63  ;;  %v559_v49 = vpack.c.bf16 %v439_v42, %v437_v41  ;;  %v40_v57 = vld [vmem:[%s2393_s0 + $0x88] sm:$0xff]  ;;  %v42_v58 = vld [vmem:[%s2393_s0 + $0x98] sm:$0xff] }
  0x24   :  { %v498_v5 = vmax.f32 %v364_v61, %v1376_v37  ;;  %v500_v6 = vmax.f32 %v366_v62, %v1376_v37  ;;  %v558_v12 = vpack.c.bf16 %v436_v4, %v434_v3  ;;  %v560_v53 = vpack.c.bf16 %v440_v46, %v438_v45 }
  0x25   :  { %v589_v8 = vpack.c.bf16 %v499_v2, %v497_v1  ;;  %v173_v61 = vmul.f32 %v1318_v10, %v39_v51  ;;  %v175_v62 = vmul.f32 %v1318_v10, %v41_v52  ;;  %v237_v63 = vmul.f32 %v1318_v10, %v103_v55 }
  0x26   :  { %v590_v13 = vpack.c.bf16 %v500_v6, %v498_v5  ;;  %v239_v0 = vmul.f32 %v1318_v10, %v105_v56  ;;  %v174_v1 = vmul.f32 %v1332_v15, %v40_v57  ;;  %v176_v2 = vmul.f32 %v1332_v15, %v42_v58 }
  0x27   :  { %v238_v3 = vmul.f32 %v1332_v15, %v104_v59  ;;  %v240_v4 = vmul.f32 %v1332_v15, %v106_v60  ;;  %v307_v5 = vadd.f32 %v1353_v23, %v173_v61  ;;  %v309_v6 = vadd.f32 %v1353_v23, %v175_v62 }
  0x28   :  { %v308_v9 = vadd.f32 %v1355_v24, %v174_v1  ;;  %v310_v11 = vadd.f32 %v1355_v24, %v176_v2  ;;  %v241_v41 = vmul.f32 %v1318_v10, %v107_v31  ;;  %v243_v42 = vmul.f32 %v1318_v10, %v109_v32  ;;  %v47_v1 = vld [vmem:[%s2393_s0 + $0xc0] sm:$0xff]  ;;  %v49_v2 = vld [vmem:[%s2393_s0 + $0xd0] sm:$0xff] }
  0x29   :  { %v441_v14 = vmax.f32 %v307_v5, %v1374_v36  ;;  %v443_v16 = vmax.f32 %v309_v6, %v1374_v36  ;;  %v242_v45 = vmul.f32 %v1332_v15, %v108_v35  ;;  %v244_v46 = vmul.f32 %v1332_v15, %v110_v38  ;;  %v111_v5 = vld [vmem:[%s2393_s0 + $0x2c0] sm:$0xff]  ;;  %v113_v6 = vld [vmem:[%s2393_s0 + $0x2d0] sm:$0xff] }
  0x2a   :  { %v442_v19 = vmax.f32 %v308_v9, %v1376_v37  ;;  %v444_v20 = vmax.f32 %v310_v11, %v1376_v37  ;;  %v112_v9 = vld [vmem:[%s2393_s0 + $0x2c8] sm:$0xff]  ;;  %v114_v11 = vld [vmem:[%s2393_s0 + $0x2d8] sm:$0xff] }
  0x31   :  { %762 = vmatmul.bf16.gmra.mxu0 %v555_v33  ;;  %842 = vmatmul.bf16.gmra.mxu2 %v587_v34  ;;  %v367_v33 = vadd.f32 %v1353_v23, %v233_v25  ;;  %v369_v34 = vadd.f32 %v1353_v23, %v235_v26  ;;  %v561_v25 = vpack.c.bf16 %v443_v16, %v441_v14 }
  0x32   :  { %931 = vmatmul.bf16.gmra.mxu1 %v556_v39  ;;  %1011 = vmatmul.bf16.gmra.mxu3 %v588_v40  ;;  %v368_v39 = vadd.f32 %v1355_v24, %v234_v29  ;;  %v370_v40 = vadd.f32 %v1355_v24, %v236_v30  ;;  %v562_v29 = vpack.c.bf16 %v444_v20, %v442_v19 }
  0x33   :  { %v501_v43 = vmax.f32 %v367_v33, %v1374_v36  ;;  %v503_v44 = vmax.f32 %v369_v34, %v1374_v36  ;;  %v44_v33 = vld [vmem:[%s2393_s0 + $0xa8] sm:$0xff]  ;;  %v46_v34 = vld [vmem:[%s2393_s0 + $0xb8] sm:$0xff]  ;;  %v245_v14 = vmul.f32 %v1318_v10, %v111_v5  ;;  %v247_v16 = vmul.f32 %v1318_v10, %v113_v6 }
  0x34   :  { %v502_v47 = vmax.f32 %v368_v39, %v1376_v37  ;;  %v504_v48 = vmax.f32 %v370_v40, %v1376_v37  ;;  %v177_v39 = vmul.f32 %v1318_v10, %v43_v27  ;;  %v179_v40 = vmul.f32 %v1318_v10, %v45_v28 }
  0x35   :  { %v591_v50 = vpack.c.bf16 %v503_v44, %v501_v43  ;;  %v178_v43 = vmul.f32 %v1332_v15, %v44_v33  ;;  %v180_v44 = vmul.f32 %v1332_v15, %v46_v34  ;;  %v246_v19 = vmul.f32 %v1332_v15, %v112_v9 }
  0x36   :  { %v592_v54 = vpack.c.bf16 %v504_v48, %v502_v47  ;;  %v311_v47 = vadd.f32 %v1353_v23, %v177_v39  ;;  %v313_v48 = vadd.f32 %v1353_v23, %v179_v40  ;;  %v248_v20 = vmul.f32 %v1332_v15, %v114_v11 }
  0x37   :  { %v312_v51 = vadd.f32 %v1355_v24, %v178_v43  ;;  %v314_v52 = vadd.f32 %v1355_v24, %v180_v44  ;;  %v51_v43 = vld [vmem:[%s2393_s0 + $0xe0] sm:$0xff]  ;;  %v53_v44 = vld [vmem:[%s2393_s0 + $0xf0] sm:$0xff] }
  0x38   :  { %v445_v55 = vmax.f32 %v311_v47, %v1374_v36  ;;  %v447_v56 = vmax.f32 %v313_v48, %v1374_v36  ;;  %v115_v47 = vld [vmem:[%s2393_s0 + $0x2e0] sm:$0xff]  ;;  %v117_v48 = vld [vmem:[%s2393_s0 + $0x2f0] sm:$0xff] }
  0x39   :  { %v446_v59 = vmax.f32 %v312_v51, %v1376_v37  ;;  %v448_v60 = vmax.f32 %v314_v52, %v1376_v37  ;;  %v116_v51 = vld [vmem:[%s2393_s0 + $0x2e8] sm:$0xff]  ;;  %v118_v52 = vld [vmem:[%s2393_s0 + $0x2f8] sm:$0xff] }
  0x41   :  { %767 = vmatmul.bf16.gmra.mxu0 %v557_v7  ;;  %847 = vmatmul.bf16.gmra.mxu2 %v589_v8  ;;  %v371_v7 = vadd.f32 %v1353_v23, %v237_v63  ;;  %v373_v8 = vadd.f32 %v1353_v23, %v239_v0  ;;  %v563_v63 = vpack.c.bf16 %v447_v56, %v445_v55 }
  0x42   :  { %936 = vmatmul.bf16.gmra.mxu1 %v558_v12  ;;  %1016 = vmatmul.bf16.gmra.mxu3 %v590_v13  ;;  %v372_v12 = vadd.f32 %v1355_v24, %v238_v3  ;;  %v374_v13 = vadd.f32 %v1355_v24, %v240_v4  ;;  %v564_v3 = vpack.c.bf16 %v448_v60, %v446_v59 }
  0x43   :  { %v505_v17 = vmax.f32 %v371_v7, %v1374_v36  ;;  %v507_v18 = vmax.f32 %v373_v8, %v1374_v36  ;;  %v48_v7 = vld [vmem:[%s2393_s0 + $0xc8] sm:$0xff]  ;;  %v50_v8 = vld [vmem:[%s2393_s0 + $0xd8] sm:$0xff]  ;;  %v249_v55 = vmul.f32 %v1318_v10, %v115_v47  ;;  %v251_v56 = vmul.f32 %v1318_v10, %v117_v48 }
  0x44   :  { %v506_v21 = vmax.f32 %v372_v12, %v1376_v37  ;;  %v508_v22 = vmax.f32 %v374_v13, %v1376_v37  ;;  %v181_v12 = vmul.f32 %v1318_v10, %v47_v1  ;;  %v183_v13 = vmul.f32 %v1318_v10, %v49_v2 }
  0x45   :  { %v593_v26 = vpack.c.bf16 %v507_v18, %v505_v17  ;;  %v182_v17 = vmul.f32 %v1332_v15, %v48_v7  ;;  %v184_v18 = vmul.f32 %v1332_v15, %v50_v8  ;;  %v250_v59 = vmul.f32 %v1332_v15, %v116_v51 }
  0x46   :  { %v594_v30 = vpack.c.bf16 %v508_v22, %v506_v21  ;;  %v315_v21 = vadd.f32 %v1353_v23, %v181_v12  ;;  %v317_v22 = vadd.f32 %v1353_v23, %v183_v13  ;;  %v252_v60 = vmul.f32 %v1332_v15, %v118_v52 }
  0x47   :  { %v316_v27 = vadd.f32 %v1355_v24, %v182_v17  ;;  %v318_v28 = vadd.f32 %v1355_v24, %v184_v18  ;;  %v55_v17 = vld [vmem:[%s2393_s0 + $0x100] sm:$0xff]  ;;  %v57_v18 = vld [vmem:[%s2393_s0 + $0x110] sm:$0xff] }
  0x48   :  { %v449_v31 = vmax.f32 %v315_v21, %v1374_v36  ;;  %v451_v32 = vmax.f32 %v317_v22, %v1374_v36  ;;  %v119_v21 = vld [vmem:[%s2393_s0 + $0x300] sm:$0xff]  ;;  %v121_v22 = vld [vmem:[%s2393_s0 + $0x310] sm:$0xff] }
  0x49   :  { %v450_v35 = vmax.f32 %v316_v27, %v1376_v37  ;;  %v452_v38 = vmax.f32 %v318_v28, %v1376_v37  ;;  %v120_v27 = vld [vmem:[%s2393_s0 + $0x308] sm:$0xff]  ;;  %v122_v28 = vld [vmem:[%s2393_s0 + $0x318] sm:$0xff] }
  0x51   :  { %772 = vmatmul.bf16.gmra.mxu0 %v559_v49  ;;  %852 = vmatmul.bf16.gmra.mxu2 %v591_v50  ;;  %v375_v49 = vadd.f32 %v1353_v23, %v241_v41  ;;  %v377_v50 = vadd.f32 %v1353_v23, %v243_v42  ;;  %v565_v41 = vpack.c.bf16 %v451_v32, %v449_v31 }
  0x52   :  { %941 = vmatmul.bf16.gmra.mxu1 %v560_v53  ;;  %1021 = vmatmul.bf16.gmra.mxu3 %v592_v54  ;;  %v376_v53 = vadd.f32 %v1355_v24, %v242_v45  ;;  %v378_v54 = vadd.f32 %v1355_v24, %v244_v46  ;;  %v566_v45 = vpack.c.bf16 %v452_v38, %v450_v35 }
  0x53   :  { %v509_v57 = vmax.f32 %v375_v49, %v1374_v36  ;;  %v511_v58 = vmax.f32 %v377_v50, %v1374_v36  ;;  %v52_v49 = vld [vmem:[%s2393_s0 + $0xe8] sm:$0xff]  ;;  %v54_v50 = vld [vmem:[%s2393_s0 + $0xf8] sm:$0xff]  ;;  %v253_v31 = vmul.f32 %v1318_v10, %v119_v21  ;;  %v255_v32 = vmul.f32 %v1318_v10, %v121_v22 }
  0x54   :  { %v510_v61 = vmax.f32 %v376_v53, %v1376_v37  ;;  %v512_v62 = vmax.f32 %v378_v54, %v1376_v37  ;;  %v185_v53 = vmul.f32 %v1318_v10, %v51_v43  ;;  %v187_v54 = vmul.f32 %v1318_v10, %v53_v44 }
  0x55   :  { %v595_v0 = vpack.c.bf16 %v511_v58, %v509_v57  ;;  %v186_v57 = vmul.f32 %v1332_v15, %v52_v49  ;;  %v188_v58 = vmul.f32 %v1332_v15, %v54_v50  ;;  %v254_v35 = vmul.f32 %v1332_v15, %v120_v27 }
  0x56   :  { %v596_v4 = vpack.c.bf16 %v512_v62, %v510_v61  ;;  %v319_v61 = vadd.f32 %v1353_v23, %v185_v53  ;;  %v321_v62 = vadd.f32 %v1353_v23, %v187_v54  ;;  %v256_v38 = vmul.f32 %v1332_v15, %v122_v28 }
  0x57   :  { %v320_v1 = vadd.f32 %v1355_v24, %v186_v57  ;;  %v322_v2 = vadd.f32 %v1355_v24, %v188_v58  ;;  %v59_v58 = vld [vmem:[%s2393_s0 + $0x120] sm:$0xff] }
  0x58   :  { %v453_v5 = vmax.f32 %v319_v61, %v1374_v36  ;;  %v455_v6 = vmax.f32 %v321_v62, %v1374_v36 }
  0x59   :  { %v454_v9 = vmax.f32 %v320_v1, %v1376_v37  ;;  %v456_v11 = vmax.f32 %v322_v2, %v1376_v37  ;;  %v60_v1 = vld [vmem:[%s2393_s0 + $0x128] sm:$0xff] }
  0x61   :  { %777 = vmatmul.bf16.gmra.mxu0 %v561_v25  ;;  %857 = vmatmul.bf16.gmra.mxu2 %v593_v26  ;;  %v379_v25 = vadd.f32 %v1353_v23, %v245_v14  ;;  %v381_v26 = vadd.f32 %v1353_v23, %v247_v16  ;;  %v567_v14 = vpack.c.bf16 %v455_v6, %v453_v5  ;;  %v124_v5 = vld [vmem:[%s2393_s0 + $0x328] sm:$0xff]  ;;  %v126_v6 = vld [vmem:[%s2393_s0 + $0x338] sm:$0xff] }
  0x62   :  { %946 = vmatmul.bf16.gmra.mxu1 %v562_v29  ;;  %1026 = vmatmul.bf16.gmra.mxu3 %v594_v30  ;;  %v380_v29 = vadd.f32 %v1355_v24, %v246_v19  ;;  %v382_v30 = vadd.f32 %v1355_v24, %v248_v20  ;;  %v568_v19 = vpack.c.bf16 %v456_v11, %v454_v9 }
  0x63   :  { %v513_v33 = vmax.f32 %v379_v25, %v1374_v36  ;;  %v515_v34 = vmax.f32 %v381_v26, %v1374_v36  ;;  %v56_v25 = vld [vmem:[%s2393_s0 + $0x108] sm:$0xff]  ;;  %v58_v26 = vld [vmem:[%s2393_s0 + $0x118] sm:$0xff] }
  0x64   :  { %v514_v39 = vmax.f32 %v380_v29, %v1376_v37  ;;  %v516_v40 = vmax.f32 %v382_v30, %v1376_v37  ;;  %v189_v29 = vmul.f32 %v1318_v10, %v55_v17  ;;  %v191_v30 = vmul.f32 %v1318_v10, %v57_v18 }
  0x65   :  { %v597_v42 = vpack.c.bf16 %v515_v34, %v513_v33  ;;  %v190_v33 = vmul.f32 %v1332_v15, %v56_v25  ;;  %v192_v34 = vmul.f32 %v1332_v15, %v58_v26  ;;  %v260_v17 = vmul.f32 %v1332_v15, %v126_v6 }
  0x66   :  { %v598_v46 = vpack.c.bf16 %v516_v40, %v514_v39  ;;  %v323_v39 = vadd.f32 %v1353_v23, %v189_v29  ;;  %v325_v40 = vadd.f32 %v1353_v23, %v191_v30 }
  0x67   :  { %v324_v43 = vadd.f32 %v1355_v24, %v190_v33  ;;  %v326_v44 = vadd.f32 %v1355_v24, %v192_v34 }
  0x68   :  { %v457_v47 = vmax.f32 %v323_v39, %v1374_v36  ;;  %v459_v48 = vmax.f32 %v325_v40, %v1374_v36 }
  0x69   :  { %v458_v51 = vmax.f32 %v324_v43, %v1376_v37  ;;  %v460_v52 = vmax.f32 %v326_v44, %v1376_v37 }
  0x6b   :  { %v570_v62 = vpack.c.bf16 %v460_v52, %v458_v51  ;;  %v63_v51 = vld [vmem:[%s2393_s0 + $0x140] sm:$0xff]  ;;  %v65_v52 = vld [vmem:[%s2393_s0 + $0x150] sm:$0xff] }
  0x71   :  { %782 = vmatmul.bf16.gmra.mxu0 %v563_v63  ;;  %862 = vmatmul.bf16.gmra.mxu2 %v595_v0  ;;  %v383_v63 = vadd.f32 %v1353_v23, %v249_v55  ;;  %v385_v0 = vadd.f32 %v1353_v23, %v251_v56  ;;  %v1792_v55 = vld [vmem:[%s2396_s5] ss:$0 sm:$0xff]  ;;  %v569_v56 = vpack.c.bf16 %v459_v48, %v457_v47 }
  0x72   :  { %951 = vmatmul.bf16.gmra.mxu1 %v564_v3  ;;  %1031 = vmatmul.bf16.gmra.mxu3 %v596_v4  ;;  %v384_v3 = vadd.f32 %v1355_v24, %v250_v59  ;;  %v386_v4 = vadd.f32 %v1355_v24, %v252_v60  ;;  %v61_v59 = vld [vmem:[%s2393_s0 + $0x130] sm:$0xff]  ;;  %v123_v60 = vld [vmem:[%s2393_s0 + $0x320] sm:$0xff] }
  0x73   :  { %v517_v7 = vmax.f32 %v383_v63, %v1374_v36  ;;  %v519_v8 = vmax.f32 %v385_v0, %v1374_v36  ;;  %v125_v0 = vld [vmem:[%s2393_s0 + $0x330] sm:$0xff]  ;;  %v257_v9 = vmul.f32 %v1318_v10, %v123_v60 }
  0x74   :  { %v518_v12 = vmax.f32 %v384_v3, %v1376_v37  ;;  %v520_v13 = vmax.f32 %v386_v4, %v1376_v37  ;;  %v62_v4 = vld [vmem:[%s2393_s0 + $0x138] sm:$0xff] }
  0x75   :  { %v599_v16 = vpack.c.bf16 %v519_v8, %v517_v7  ;;  %v193_v7 = vmul.f32 %v1318_v10, %v59_v58  ;;  %v195_v8 = vmul.f32 %v1318_v10, %v61_v59  ;;  %v391_v25 = vadd.f32 %v1353_v23, %v257_v9  ;;  %v129_v58 = vld [vmem:[%s2393_s0 + $0x350] sm:$0xff]  ;;  %v64_v59 = vld [vmem:[%s2393_s0 + $0x148] sm:$0xff] }
  0x76   :  { %v600_v20 = vpack.c.bf16 %v520_v13, %v518_v12  ;;  %v259_v12 = vmul.f32 %v1318_v10, %v125_v0  ;;  %v194_v13 = vmul.f32 %v1332_v15, %v60_v1  ;;  %v128_v0 = vld [vmem:[%s2393_s0 + $0x348] sm:$0xff]  ;;  %v130_v1 = vld [vmem:[%s2393_s0 + $0x358] sm:$0xff]  ;;  %v263_v6 = vmul.f32 %v1318_v10, %v129_v58 }
  0x77   :  { %v329_v22 = vadd.f32 %v1353_v23, %v195_v8  ;;  %v525_v40 = vmax.f32 %v391_v25, %v1374_v36  ;;  %v262_v9 = vmul.f32 %v1332_v15, %v128_v0  ;;  %v70_v58 = vld [vmem:[%s2393_s0 + $0x178] sm:$0xff] }
  0x78   :  { %v393_v26 = vadd.f32 %v1353_v23, %v259_v12  ;;  %v328_v28 = vadd.f32 %v1355_v24, %v194_v13 }
  0x79   :  { %v463_v39 = vmax.f32 %v329_v22, %v1374_v36  ;;  %v396_v25 = vadd.f32 %v1355_v24, %v262_v9 }
  0x81   :  { %787 = vmatmul.bf16.gmra.mxu0 %v565_v41  ;;  %867 = vmatmul.bf16.gmra.mxu2 %v597_v42  ;;  %v387_v41 = vadd.f32 %v1353_v23, %v253_v31  ;;  %v389_v42 = vadd.f32 %v1353_v23, %v255_v32  ;;  %v394_v31 = vadd.f32 %v1355_v24, %v260_v17 }
  0x82   :  { %956 = vmatmul.bf16.gmra.mxu1 %v566_v45  ;;  %1036 = vmatmul.bf16.gmra.mxu3 %v598_v46  ;;  %v388_v45 = vadd.f32 %v1355_v24, %v254_v35  ;;  %v390_v46 = vadd.f32 %v1355_v24, %v256_v38 }
  0x83   :  { %v521_v49 = vmax.f32 %v387_v41, %v1374_v36  ;;  %v523_v50 = vmax.f32 %v389_v42, %v1374_v36  ;;  %v527_v41 = vmax.f32 %v393_v26, %v1374_v36  ;;  %v462_v42 = vmax.f32 %v328_v28, %v1376_v37 }
  0x84   :  { %v522_v53 = vmax.f32 %v388_v45, %v1376_v37  ;;  %v524_v54 = vmax.f32 %v390_v46, %v1376_v37  ;;  %v528_v45 = vmax.f32 %v394_v31, %v1376_v37 }
  0x85   :  { %v601_v57 = vpack.c.bf16 %v523_v50, %v521_v49  ;;  %v603_v50 = vpack.c.bf16 %v527_v41, %v525_v40 }
  0x86   :  { %v602_v63 = vpack.c.bf16 %v524_v54, %v522_v53  ;;  %v127_v53 = vld [vmem:[%s2393_s0 + $0x340] sm:$0xff] }
  0x91   :  { %792 = vmatmul.bf16.gmra.mxu0 %v567_v14  ;;  %872 = vmatmul.bf16.gmra.mxu2 %v599_v16  ;;  %v196_v14 = vmul.f32 %v1332_v15, %v62_v4  ;;  %v258_v16 = vmul.f32 %v1332_v15, %v124_v5  ;;  %v261_v4 = vmul.f32 %v1318_v10, %v127_v53  ;;  %v68_v53 = vld [vmem:[%s2393_s0 + $0x168] sm:$0xff] }
  0x92   :  { %961 = vmatmul.bf16.gmra.mxu1 %v568_v19  ;;  %1041 = vmatmul.bf16.gmra.mxu3 %v600_v20  ;;  %v327_v19 = vadd.f32 %v1353_v23, %v193_v7  ;;  %v198_v7 = vmul.f32 %v1332_v15, %v64_v59  ;;  %v132_v59 = vld [vmem:[%s2393_s0 + $0x368] sm:$0xff] }
  0x93   :  { %v330_v29 = vadd.f32 %v1355_v24, %v196_v14  ;;  %v392_v30 = vadd.f32 %v1355_v24, %v258_v16 }
  0x94   :  { %v461_v35 = vmax.f32 %v327_v19, %v1374_v36  ;;  %v397_v19 = vadd.f32 %v1353_v23, %v263_v6 }
  0x95   :  { %v464_v43 = vmax.f32 %v330_v29, %v1376_v37  ;;  %v526_v44 = vmax.f32 %v392_v30, %v1376_v37 }
  0x96   :  { %v571_v49 = vpack.c.bf16 %v463_v39, %v461_v35  ;;  %v530_v39 = vmax.f32 %v396_v25, %v1376_v37 }
  0x9e   :  { %v758_v61 = vpop.f32.mrf.mxu0 }
  0x9f   :  { %v759_v2 = vadd.f32 %v1792_v55, %v758_v61  ;;  %v927_v3 = vpop.f32.mrf.mxu1 }
  0xa1   :  { %v928_v11 = vadd.f32 %v927_v3, %v759_v2  ;;  %797 = vmatmul.bf16.gmra.mxu0 %v569_v56  ;;  %877 = vmatmul.bf16.gmra.mxu2 %v601_v57  ;;  %v572_v56 = vpack.c.bf16 %v464_v43, %v462_v42  ;;  %v604_v57 = vpack.c.bf16 %v528_v45, %v526_v44 }
  0xa2   :  { %966 = vmatmul.bf16.gmra.mxu1 %v570_v62  ;;  %1046 = vmatmul.bf16.gmra.mxu3 %v602_v63  ;;  %v66_v63 = vld [vmem:[%s2393_s0 + $0x158] sm:$0xff]  ;;  %v197_v2 = vmul.f32 %v1318_v10, %v63_v51  ;;  %v199_v3 = vmul.f32 %v1318_v10, %v65_v52  ;;  %v133_v52 = vld [vmem:[%s2393_s0 + $0x370] sm:$0xff] }
  0xa3   :  { %1087 = vst [vmem:[%s2397_s6] sm:$0xff] %v928_v11  ;;  %v200_v8 = vmul.f32 %v1332_v15, %v66_v63  ;;  %v264_v11 = vmul.f32 %v1332_v15, %v130_v1  ;;  %v267_v1 = vmul.f32 %v1318_v10, %v133_v52  ;;  %v74_v52 = vld [vmem:[%s2393_s0 + $0x198] sm:$0xff] }
  0xa4   :  { %v838_v18 = vpop.f32.mrf.mxu2  ;;  %v331_v13 = vadd.f32 %v1353_v23, %v197_v2  ;;  %v333_v17 = vadd.f32 %v1353_v23, %v199_v3  ;;  %v202_v2 = vmul.f32 %v1332_v15, %v68_v53  ;;  %v204_v3 = vmul.f32 %v1332_v15, %v70_v58  ;;  %v136_v53 = vld [vmem:[%s2393_s0 + $0x388] sm:$0xff] }
  0xa5   :  { %v839_v20 = vadd.f32 %v1792_v55, %v838_v18  ;;  %v1007_v21 = vpop.f32.mrf.mxu3  ;;  %v395_v18 = vadd.f32 %v1353_v23, %v261_v4  ;;  %v334_v22 = vadd.f32 %v1355_v24, %v200_v8  ;;  %v398_v26 = vadd.f32 %v1355_v24, %v264_v11 }
  0xa6   :  { %v760_v27 = vpop.f32.mrf.mxu0  ;;  %v465_v30 = vmax.f32 %v331_v13, %v1374_v36  ;;  %v266_v4 = vmul.f32 %v1332_v15, %v132_v59  ;;  %v401_v13 = vadd.f32 %v1353_v23, %v267_v1 }
  0xa7   :  { %v1008_v32 = vadd.f32 %v1007_v21, %v839_v20  ;;  %v761_v33 = vadd.f32 %v1792_v55, %v760_v27  ;;  %v929_v34 = vpop.f32.mrf.mxu1  ;;  %v332_v21 = vadd.f32 %v1355_v24, %v198_v7  ;;  %v532_v40 = vmax.f32 %v398_v26, %v1376_v37 }
  0xa9   :  { %1119 = vst [vmem:[%s2397_s6 + $0x100] sm:$0xff] %v1008_v32  ;;  %v930_v38 = vadd.f32 %v929_v34, %v761_v33  ;;  %v467_v32 = vmax.f32 %v333_v17, %v1374_v36  ;;  %v529_v33 = vmax.f32 %v395_v18, %v1374_v36  ;;  %v531_v34 = vmax.f32 %v397_v19, %v1374_v36 }
  0xaa   :  { %v466_v35 = vmax.f32 %v332_v21, %v1376_v37  ;;  %v606_v51 = vpack.c.bf16 %v532_v40, %v530_v39  ;;  %v338_v17 = vadd.f32 %v1355_v24, %v204_v3  ;;  %v400_v18 = vadd.f32 %v1355_v24, %v266_v4 }
  0xab   :  { %1088 = vst [vmem:[%s2397_s6 + $0x8] sm:$0xff] %v930_v38  ;;  %v468_v38 = vmax.f32 %v334_v22, %v1376_v37  ;;  %v573_v44 = vpack.c.bf16 %v467_v32, %v465_v30  ;;  %v605_v45 = vpack.c.bf16 %v531_v34, %v529_v33 }
  0xac   :  { %v840_v46 = vpop.f32.mrf.mxu2  ;;  %v534_v32 = vmax.f32 %v400_v18, %v1376_v37 }
  0xad   :  { %v841_v47 = vadd.f32 %v1792_v55, %v840_v46  ;;  %v1009_v48 = vpop.f32.mrf.mxu3  ;;  %v67_v46 = vld [vmem:[%s2393_s0 + $0x160] sm:$0xff] }
  0xae   :  { %v763_v54 = vpop.f32.mrf.mxu0 }
  0xaf   :  { %v1010_v60 = vadd.f32 %v1009_v48, %v841_v47  ;;  %v764_v61 = vadd.f32 %v1792_v55, %v763_v54  ;;  %v932_v62 = vpop.f32.mrf.mxu1  ;;  %v69_v47 = vld [vmem:[%s2393_s0 + $0x170] sm:$0xff]  ;;  %v131_v48 = vld [vmem:[%s2393_s0 + $0x360] sm:$0xff] }
  0xb0   :  { %v265_v63 = vmul.f32 %v1318_v10, %v131_v48  ;;  %v72_v48 = vld [vmem:[%s2393_s0 + $0x188] sm:$0xff] }
  0xb1   :  { %1120 = vst [vmem:[%s2397_s6 + $0x108] sm:$0xff] %v1010_v60  ;;  %v933_v5 = vadd.f32 %v932_v62, %v764_v61  ;;  %802 = vmatmul.bf16.gmra.mxu0 %v571_v49  ;;  %882 = vmatmul.bf16.gmra.mxu2 %v603_v50  ;;  %v574_v50 = vpack.c.bf16 %v468_v38, %v466_v35  ;;  %v134_v60 = vld [vmem:[%s2393_s0 + $0x378] sm:$0xff] }
  0xb2   :  { %971 = vmatmul.bf16.gmra.mxu1 %v572_v56  ;;  %1051 = vmatmul.bf16.gmra.mxu3 %v604_v57  ;;  %v201_v61 = vmul.f32 %v1318_v10, %v67_v46  ;;  %v203_v62 = vmul.f32 %v1318_v10, %v69_v47  ;;  %v137_v47 = vld [vmem:[%s2393_s0 + $0x390] sm:$0xff] }
  0xb3   :  { %1089 = vst [vmem:[%s2397_s6 + $0x10] sm:$0xff] %v933_v5  ;;  %v268_v5 = vmul.f32 %v1332_v15, %v134_v60  ;;  %v271_v60 = vmul.f32 %v1318_v10, %v137_v47  ;;  %v78_v47 = vld [vmem:[%s2393_s0 + $0x1b8] sm:$0xff] }
  0xb4   :  { %v843_v12 = vpop.f32.mrf.mxu2  ;;  %v335_v7 = vadd.f32 %v1353_v23, %v201_v61  ;;  %v337_v11 = vadd.f32 %v1353_v23, %v203_v62  ;;  %v206_v61 = vmul.f32 %v1332_v15, %v72_v48  ;;  %v208_v62 = vmul.f32 %v1332_v15, %v74_v52  ;;  %v140_v48 = vld [vmem:[%s2393_s0 + $0x3a8] sm:$0xff] }
  0xb5   :  { %v844_v14 = vadd.f32 %v1792_v55, %v843_v12  ;;  %v1012_v16 = vpop.f32.mrf.mxu3  ;;  %v399_v12 = vadd.f32 %v1353_v23, %v265_v63  ;;  %v402_v19 = vadd.f32 %v1355_v24, %v268_v5  ;;  %v270_v63 = vmul.f32 %v1332_v15, %v136_v53 }
  0xb6   :  { %v765_v20 = vpop.f32.mrf.mxu0  ;;  %v469_v25 = vmax.f32 %v335_v7, %v1374_v36  ;;  %v405_v7 = vadd.f32 %v1353_v23, %v271_v60 }
  0xb7   :  { %v1013_v27 = vadd.f32 %v1012_v16, %v844_v14  ;;  %v766_v28 = vadd.f32 %v1792_v55, %v765_v20  ;;  %v934_v29 = vpop.f32.mrf.mxu1  ;;  %v336_v16 = vadd.f32 %v1355_v24, %v202_v2  ;;  %v536_v33 = vmax.f32 %v402_v19, %v1376_v37 }
  0xb9   :  { %1121 = vst [vmem:[%s2397_s6 + $0x110] sm:$0xff] %v1013_v27  ;;  %v935_v31 = vadd.f32 %v934_v29, %v766_v28  ;;  %v471_v27 = vmax.f32 %v337_v11, %v1374_v36  ;;  %v533_v28 = vmax.f32 %v399_v12, %v1374_v36  ;;  %v535_v29 = vmax.f32 %v401_v13, %v1374_v36 }
  0xba   :  { %v470_v30 = vmax.f32 %v336_v16, %v1376_v37  ;;  %v608_v46 = vpack.c.bf16 %v536_v33, %v534_v32  ;;  %v342_v11 = vadd.f32 %v1355_v24, %v208_v62  ;;  %v404_v12 = vadd.f32 %v1355_v24, %v270_v63 }
  0xbb   :  { %1090 = vst [vmem:[%s2397_s6 + $0x18] sm:$0xff] %v935_v31  ;;  %v472_v31 = vmax.f32 %v338_v17, %v1376_v37  ;;  %v575_v39 = vpack.c.bf16 %v471_v27, %v469_v25  ;;  %v607_v40 = vpack.c.bf16 %v535_v29, %v533_v28 }
  0xbc   :  { %v845_v41 = vpop.f32.mrf.mxu2  ;;  %v538_v27 = vmax.f32 %v404_v12, %v1376_v37 }
  0xbd   :  { %v846_v42 = vadd.f32 %v1792_v55, %v845_v41  ;;  %v1014_v43 = vpop.f32.mrf.mxu3  ;;  %v71_v41 = vld [vmem:[%s2393_s0 + $0x180] sm:$0xff] }
  0xbe   :  { %v768_v49 = vpop.f32.mrf.mxu0 }
  0xbf   :  { %v1015_v54 = vadd.f32 %v1014_v43, %v846_v42  ;;  %v769_v56 = vadd.f32 %v1792_v55, %v768_v49  ;;  %v937_v57 = vpop.f32.mrf.mxu1  ;;  %v73_v42 = vld [vmem:[%s2393_s0 + $0x190] sm:$0xff]  ;;  %v135_v43 = vld [vmem:[%s2393_s0 + $0x380] sm:$0xff] }
  0xc0   :  { %v269_v58 = vmul.f32 %v1318_v10, %v135_v43  ;;  %v76_v43 = vld [vmem:[%s2393_s0 + $0x1a8] sm:$0xff] }
  0xc1   :  { %1122 = vst [vmem:[%s2397_s6 + $0x118] sm:$0xff] %v1015_v54  ;;  %v938_v0 = vadd.f32 %v937_v57, %v769_v56  ;;  %807 = vmatmul.bf16.gmra.mxu0 %v573_v44  ;;  %887 = vmatmul.bf16.gmra.mxu2 %v605_v45  ;;  %v576_v45 = vpack.c.bf16 %v472_v31, %v470_v30  ;;  %v138_v54 = vld [vmem:[%s2393_s0 + $0x398] sm:$0xff] }
  0xc2   :  { %976 = vmatmul.bf16.gmra.mxu1 %v574_v50  ;;  %1056 = vmatmul.bf16.gmra.mxu3 %v606_v51  ;;  %v205_v56 = vmul.f32 %v1318_v10, %v71_v41  ;;  %v207_v57 = vmul.f32 %v1318_v10, %v73_v42  ;;  %v141_v42 = vld [vmem:[%s2393_s0 + $0x3b0] sm:$0xff] }
  0xc3   :  { %1091 = vst [vmem:[%s2397_s6 + $0x20] sm:$0xff] %v938_v0  ;;  %v272_v0 = vmul.f32 %v1332_v15, %v138_v54  ;;  %v275_v54 = vmul.f32 %v1318_v10, %v141_v42  ;;  %v82_v42 = vld [vmem:[%s2393_s0 + $0x1d8] sm:$0xff] }
  0xc4   :  { %v848_v6 = vpop.f32.mrf.mxu2  ;;  %v339_v2 = vadd.f32 %v1353_v23, %v205_v56  ;;  %v341_v5 = vadd.f32 %v1353_v23, %v207_v57  ;;  %v210_v56 = vmul.f32 %v1332_v15, %v76_v43  ;;  %v212_v57 = vmul.f32 %v1332_v15, %v78_v47  ;;  %v144_v43 = vld [vmem:[%s2393_s0 + $0x3c8] sm:$0xff] }
  0xc5   :  { %v849_v8 = vadd.f32 %v1792_v55, %v848_v6  ;;  %v1017_v9 = vpop.f32.mrf.mxu3  ;;  %v403_v6 = vadd.f32 %v1353_v23, %v269_v58  ;;  %v406_v13 = vadd.f32 %v1355_v24, %v272_v0  ;;  %v274_v58 = vmul.f32 %v1332_v15, %v140_v48 }
  0xc6   :  { %v770_v14 = vpop.f32.mrf.mxu0  ;;  %v473_v18 = vmax.f32 %v339_v2, %v1374_v36  ;;  %v409_v2 = vadd.f32 %v1353_v23, %v275_v54 }
  0xc7   :  { %v1018_v20 = vadd.f32 %v1017_v9, %v849_v8  ;;  %v771_v21 = vadd.f32 %v1792_v55, %v770_v14  ;;  %v939_v22 = vpop.f32.mrf.mxu1  ;;  %v340_v9 = vadd.f32 %v1355_v24, %v206_v61  ;;  %v540_v28 = vmax.f32 %v406_v13, %v1376_v37 }
  0xc9   :  { %1123 = vst [vmem:[%s2397_s6 + $0x120] sm:$0xff] %v1018_v20  ;;  %v940_v26 = vadd.f32 %v939_v22, %v771_v21  ;;  %v475_v20 = vmax.f32 %v341_v5, %v1374_v36  ;;  %v537_v21 = vmax.f32 %v403_v6, %v1374_v36  ;;  %v539_v22 = vmax.f32 %v405_v7, %v1374_v36 }
  0xca   :  { %v474_v25 = vmax.f32 %v340_v9, %v1376_v37  ;;  %v610_v41 = vpack.c.bf16 %v540_v28, %v538_v27  ;;  %v346_v5 = vadd.f32 %v1355_v24, %v212_v57  ;;  %v408_v6 = vadd.f32 %v1355_v24, %v274_v58 }
  0xcb   :  { %1092 = vst [vmem:[%s2397_s6 + $0x28] sm:$0xff] %v940_v26  ;;  %v476_v26 = vmax.f32 %v342_v11, %v1376_v37  ;;  %v577_v32 = vpack.c.bf16 %v475_v20, %v473_v18  ;;  %v609_v33 = vpack.c.bf16 %v539_v22, %v537_v21 }
  0xcc   :  { %v850_v34 = vpop.f32.mrf.mxu2  ;;  %v542_v20 = vmax.f32 %v408_v6, %v1376_v37 }
  0xcd   :  { %v851_v35 = vadd.f32 %v1792_v55, %v850_v34  ;;  %v1019_v38 = vpop.f32.mrf.mxu3  ;;  %v75_v34 = vld [vmem:[%s2393_s0 + $0x1a0] sm:$0xff] }
  0xce   :  { %v773_v44 = vpop.f32.mrf.mxu0 }
  0xcf   :  { %v1020_v49 = vadd.f32 %v1019_v38, %v851_v35  ;;  %v774_v50 = vadd.f32 %v1792_v55, %v773_v44  ;;  %v942_v51 = vpop.f32.mrf.mxu1  ;;  %v77_v35 = vld [vmem:[%s2393_s0 + $0x1b0] sm:$0xff]  ;;  %v139_v38 = vld [vmem:[%s2393_s0 + $0x3a0] sm:$0xff] }
  0xd0   :  { %v273_v52 = vmul.f32 %v1318_v10, %v139_v38  ;;  %v80_v38 = vld [vmem:[%s2393_s0 + $0x1c8] sm:$0xff] }
  0xd1   :  { %1124 = vst [vmem:[%s2397_s6 + $0x128] sm:$0xff] %v1020_v49  ;;  %v943_v59 = vadd.f32 %v942_v51, %v774_v50  ;;  %812 = vmatmul.bf16.gmra.mxu0 %v575_v39  ;;  %892 = vmatmul.bf16.gmra.mxu2 %v607_v40  ;;  %v578_v40 = vpack.c.bf16 %v476_v26, %v474_v25  ;;  %v142_v49 = vld [vmem:[%s2393_s0 + $0x3b8] sm:$0xff] }
  0xd2   :  { %981 = vmatmul.bf16.gmra.mxu1 %v576_v45  ;;  %1061 = vmatmul.bf16.gmra.mxu3 %v608_v46  ;;  %v209_v50 = vmul.f32 %v1318_v10, %v75_v34  ;;  %v211_v51 = vmul.f32 %v1318_v10, %v77_v35  ;;  %v145_v35 = vld [vmem:[%s2393_s0 + $0x3d0] sm:$0xff] }
  0xd3   :  { %1093 = vst [vmem:[%s2397_s6 + $0x30] sm:$0xff] %v943_v59  ;;  %v276_v59 = vmul.f32 %v1332_v15, %v142_v49  ;;  %v279_v49 = vmul.f32 %v1318_v10, %v145_v35  ;;  %v86_v35 = vld [vmem:[%s2393_s0 + $0x1f8] sm:$0xff] }
  0xd4   :  { %v853_v1 = vpop.f32.mrf.mxu2  ;;  %v343_v61 = vadd.f32 %v1353_v23, %v209_v50  ;;  %v345_v0 = vadd.f32 %v1353_v23, %v211_v51  ;;  %v214_v50 = vmul.f32 %v1332_v15, %v80_v38  ;;  %v216_v51 = vmul.f32 %v1332_v15, %v82_v42  ;;  %v148_v38 = vld [vmem:[%s2393_s0 + $0x3e8] sm:$0xff] }
  0xd5   :  { %v854_v3 = vadd.f32 %v1792_v55, %v853_v1  ;;  %v1022_v4 = vpop.f32.mrf.mxu3  ;;  %v407_v1 = vadd.f32 %v1353_v23, %v273_v52  ;;  %v410_v7 = vadd.f32 %v1355_v24, %v276_v59  ;;  %v278_v52 = vmul.f32 %v1332_v15, %v144_v43 }
  0xd6   :  { %v775_v8 = vpop.f32.mrf.mxu0  ;;  %v477_v12 = vmax.f32 %v343_v61, %v1374_v36  ;;  %v413_v61 = vadd.f32 %v1353_v23, %v279_v49 }
  0xd7   :  { %v1023_v14 = vadd.f32 %v1022_v4, %v854_v3  ;;  %v776_v16 = vadd.f32 %v1792_v55, %v775_v8  ;;  %v944_v17 = vpop.f32.mrf.mxu1  ;;  %v344_v4 = vadd.f32 %v1355_v24, %v210_v56  ;;  %v544_v21 = vmax.f32 %v410_v7, %v1376_v37 }
  0xd9   :  { %1125 = vst [vmem:[%s2397_s6 + $0x130] sm:$0xff] %v1023_v14  ;;  %v945_v19 = vadd.f32 %v944_v17, %v776_v16  ;;  %v479_v14 = vmax.f32 %v345_v0, %v1374_v36  ;;  %v541_v16 = vmax.f32 %v407_v1, %v1374_v36  ;;  %v543_v17 = vmax.f32 %v409_v2, %v1374_v36 }
  0xda   :  { %v478_v18 = vmax.f32 %v344_v4, %v1376_v37  ;;  %v612_v34 = vpack.c.bf16 %v544_v21, %v542_v20  ;;  %v350_v0 = vadd.f32 %v1355_v24, %v216_v51  ;;  %v412_v1 = vadd.f32 %v1355_v24, %v278_v52 }
  0xdb   :  { %1094 = vst [vmem:[%s2397_s6 + $0x38] sm:$0xff] %v945_v19  ;;  %v480_v19 = vmax.f32 %v346_v5, %v1376_v37  ;;  %v579_v27 = vpack.c.bf16 %v479_v14, %v477_v12  ;;  %v611_v28 = vpack.c.bf16 %v543_v17, %v541_v16 }
  0xdc   :  { %v855_v29 = vpop.f32.mrf.mxu2  ;;  %v546_v14 = vmax.f32 %v412_v1, %v1376_v37 }
  0xdd   :  { %v856_v30 = vadd.f32 %v1792_v55, %v855_v29  ;;  %v1024_v31 = vpop.f32.mrf.mxu3  ;;  %v79_v29 = vld [vmem:[%s2393_s0 + $0x1c0] sm:$0xff] }
  0xde   :  { %v778_v39 = vpop.f32.mrf.mxu0 }
  0xdf   :  { %v1025_v44 = vadd.f32 %v1024_v31, %v856_v30  ;;  %v779_v45 = vadd.f32 %v1792_v55, %v778_v39  ;;  %v947_v46 = vpop.f32.mrf.mxu1  ;;  %v81_v30 = vld [vmem:[%s2393_s0 + $0x1d0] sm:$0xff]  ;;  %v143_v31 = vld [vmem:[%s2393_s0 + $0x3c0] sm:$0xff] }
  0xe0   :  { %v277_v47 = vmul.f32 %v1318_v10, %v143_v31  ;;  %v84_v31 = vld [vmem:[%s2393_s0 + $0x1e8] sm:$0xff] }
  0xe1   :  { %1126 = vst [vmem:[%s2397_s6 + $0x138] sm:$0xff] %v1025_v44  ;;  %v948_v53 = vadd.f32 %v947_v46, %v779_v45  ;;  %817 = vmatmul.bf16.gmra.mxu0 %v577_v32  ;;  %897 = vmatmul.bf16.gmra.mxu2 %v609_v33  ;;  %v580_v33 = vpack.c.bf16 %v480_v19, %v478_v18  ;;  %v146_v44 = vld [vmem:[%s2393_s0 + $0x3d8] sm:$0xff] }
  0xe2   :  { %986 = vmatmul.bf16.gmra.mxu1 %v578_v40  ;;  %1066 = vmatmul.bf16.gmra.mxu3 %v610_v41  ;;  %v213_v45 = vmul.f32 %v1318_v10, %v79_v29  ;;  %v215_v46 = vmul.f32 %v1318_v10, %v81_v30  ;;  %v149_v30 = vld [vmem:[%s2393_s0 + $0x3f0] sm:$0xff] }
  0xe3   :  { %1095 = vst [vmem:[%s2397_s6 + $0x40] sm:$0xff] %v948_v53  ;;  %v280_v53 = vmul.f32 %v1332_v15, %v146_v44  ;;  %v283_v44 = vmul.f32 %v1318_v10, %v149_v30 }
  0xe4   :  { %v858_v60 = vpop.f32.mrf.mxu2  ;;  %v347_v56 = vadd.f32 %v1353_v23, %v213_v45  ;;  %v349_v59 = vadd.f32 %v1353_v23, %v215_v46  ;;  %v218_v45 = vmul.f32 %v1332_v15, %v84_v31  ;;  %v220_v46 = vmul.f32 %v1332_v15, %v86_v35 }
  0xe5   :  { %v859_v62 = vadd.f32 %v1792_v55, %v858_v60  ;;  %v1027_v63 = vpop.f32.mrf.mxu3  ;;  %v411_v60 = vadd.f32 %v1353_v23, %v277_v47  ;;  %v414_v2 = vadd.f32 %v1355_v24, %v280_v53  ;;  %v282_v47 = vmul.f32 %v1332_v15, %v148_v38 }
  0xe6   :  { %v780_v3 = vpop.f32.mrf.mxu0  ;;  %v481_v6 = vmax.f32 %v347_v56, %v1374_v36 }
  0xe7   :  { %v1028_v8 = vadd.f32 %v1027_v63, %v859_v62  ;;  %v781_v9 = vadd.f32 %v1792_v55, %v780_v3  ;;  %v949_v11 = vpop.f32.mrf.mxu1  ;;  %v348_v63 = vadd.f32 %v1355_v24, %v214_v50  ;;  %v548_v16 = vmax.f32 %v414_v2, %v1376_v37 }
  0xe9   :  { %1127 = vst [vmem:[%s2397_s6 + $0x140] sm:$0xff] %v1028_v8  ;;  %v950_v13 = vadd.f32 %v949_v11, %v781_v9  ;;  %v483_v8 = vmax.f32 %v349_v59, %v1374_v36  ;;  %v545_v9 = vmax.f32 %v411_v60, %v1374_v36  ;;  %v547_v11 = vmax.f32 %v413_v61, %v1374_v36 }
  0xea   :  { %v482_v12 = vmax.f32 %v348_v63, %v1376_v37  ;;  %v614_v29 = vpack.c.bf16 %v548_v16, %v546_v14 }
  0xeb   :  { %1096 = vst [vmem:[%s2397_s6 + $0x48] sm:$0xff] %v950_v13  ;;  %v484_v13 = vmax.f32 %v350_v0, %v1376_v37  ;;  %v581_v20 = vpack.c.bf16 %v483_v8, %v481_v6  ;;  %v613_v21 = vpack.c.bf16 %v547_v11, %v545_v9 }
  0xec   :  { %v860_v22 = vpop.f32.mrf.mxu2 }
  0xed   :  { %v861_v25 = vadd.f32 %v1792_v55, %v860_v22  ;;  %v1029_v26 = vpop.f32.mrf.mxu3  ;;  %v83_v22 = vld [vmem:[%s2393_s0 + $0x1e0] sm:$0xff] }
  0xee   :  { %v783_v32 = vpop.f32.mrf.mxu0 }
  0xef   :  { %v1030_v39 = vadd.f32 %v1029_v26, %v861_v25  ;;  %v784_v40 = vadd.f32 %v1792_v55, %v783_v32  ;;  %v952_v41 = vpop.f32.mrf.mxu1  ;;  %v85_v25 = vld [vmem:[%s2393_s0 + $0x1f0] sm:$0xff]  ;;  %v147_v26 = vld [vmem:[%s2393_s0 + $0x3e0] sm:$0xff] }
  0xf0   :  { %v281_v42 = vmul.f32 %v1318_v10, %v147_v26 }
  0xf1   :  { %1128 = vst [vmem:[%s2397_s6 + $0x148] sm:$0xff] %v1030_v39  ;;  %v953_v48 = vadd.f32 %v952_v41, %v784_v40  ;;  %822 = vmatmul.bf16.gmra.mxu0 %v579_v27  ;;  %902 = vmatmul.bf16.gmra.mxu2 %v611_v28  ;;  %v582_v28 = vpack.c.bf16 %v484_v13, %v482_v12  ;;  %v150_v39 = vld [vmem:[%s2393_s0 + $0x3f8] sm:$0xff] }
  0xf2   :  { %991 = vmatmul.bf16.gmra.mxu1 %v580_v33  ;;  %1071 = vmatmul.bf16.gmra.mxu3 %v612_v34  ;;  %v217_v40 = vmul.f32 %v1318_v10, %v83_v22  ;;  %v219_v41 = vmul.f32 %v1318_v10, %v85_v25  ;;  %v415_v53 = vadd.f32 %v1353_v23, %v281_v42 }
  0xf3   :  { %1097 = vst [vmem:[%s2397_s6 + $0x50] sm:$0xff] %v953_v48  ;;  %v284_v48 = vmul.f32 %v1332_v15, %v150_v39  ;;  %v354_v15 = vadd.f32 %v1355_v24, %v220_v46 }
  0xf4   :  { %v863_v54 = vpop.f32.mrf.mxu2  ;;  %v351_v50 = vadd.f32 %v1353_v23, %v217_v40  ;;  %v353_v52 = vadd.f32 %v1353_v23, %v219_v41  ;;  %v549_v1 = vmax.f32 %v415_v53, %v1374_v36 }
  0xf5   :  { %v864_v57 = vadd.f32 %v1792_v55, %v863_v54  ;;  %v1032_v58 = vpop.f32.mrf.mxu3  ;;  %v417_v54 = vadd.f32 %v1353_v23, %v283_v44  ;;  %v418_v59 = vadd.f32 %v1355_v24, %v284_v48 }
  0xf6   :  { %v785_v62 = vpop.f32.mrf.mxu0  ;;  %v485_v63 = vmax.f32 %v351_v50, %v1374_v36  ;;  %v487_v0 = vmax.f32 %v353_v52, %v1374_v36 }
  0xf7   :  { %v1033_v3 = vadd.f32 %v1032_v58, %v864_v57  ;;  %v786_v4 = vadd.f32 %v1792_v55, %v785_v62  ;;  %v954_v5 = vpop.f32.mrf.mxu1  ;;  %v352_v57 = vadd.f32 %v1355_v24, %v218_v45  ;;  %v416_v58 = vadd.f32 %v1355_v24, %v282_v47 }
  0xf8   :  { %v551_v2 = vmax.f32 %v417_v54, %v1374_v36  ;;  %v488_v24 = vmax.f32 %v354_v15, %v1376_v37  ;;  %v583_v9 = vpack.c.bf16 %v487_v0, %v485_v63 }
  0xf9   :  { %1129 = vst [vmem:[%s2397_s6 + $0x150] sm:$0xff] %v1033_v3  ;;  %v955_v7 = vadd.f32 %v954_v5, %v786_v4  ;;  %v486_v3 = vmax.f32 %v352_v57, %v1376_v37  ;;  %v550_v4 = vmax.f32 %v416_v58, %v1376_v37  ;;  %v552_v5 = vmax.f32 %v418_v59, %v1376_v37 }
  0xfa   :  { %v615_v11 = vpack.c.bf16 %v551_v2, %v549_v1 }
  0xfb   :  { %1098 = vst [vmem:[%s2397_s6 + $0x58] sm:$0xff] %v955_v7  ;;  %v584_v36 = vpack.c.bf16 %v488_v24, %v486_v3  ;;  %v616_v13 = vpack.c.bf16 %v552_v5, %v550_v4 }
  0xfc   :  { %v865_v17 = vpop.f32.mrf.mxu2 }
  0xfd   :  { %v866_v18 = vadd.f32 %v1792_v55, %v865_v17  ;;  %v1034_v19 = vpop.f32.mrf.mxu3 }
  0xfe   :  { %v788_v27 = vpop.f32.mrf.mxu0 }
  0xff   :  { %v1035_v32 = vadd.f32 %v1034_v19, %v866_v18  ;;  %v789_v33 = vadd.f32 %v1792_v55, %v788_v27  ;;  %v957_v34 = vpop.f32.mrf.mxu1 }
 0x101   :  { %1130 = vst [vmem:[%s2397_s6 + $0x158] sm:$0xff] %v1035_v32  ;;  %v958_v43 = vadd.f32 %v957_v34, %v789_v33  ;;  %827 = vmatmul.bf16.gmra.mxu0 %v581_v20  ;;  %907 = vmatmul.bf16.gmra.mxu2 %v613_v21 }
 0x102   :  { %996 = vmatmul.bf16.gmra.mxu1 %v582_v28  ;;  %1076 = vmatmul.bf16.gmra.mxu3 %v614_v29 }
 0x103   :  { %1099 = vst [vmem:[%s2397_s6 + $0x60] sm:$0xff] %v958_v43 }
 0x104   :  { %v868_v49 = vpop.f32.mrf.mxu2 }
 0x105   :  { %v869_v51 = vadd.f32 %v1792_v55, %v868_v49  ;;  %v1037_v10 = vpop.f32.mrf.mxu3 }
 0x106   :  { %v790_v56 = vpop.f32.mrf.mxu0 }
 0x107   :  { %v1038_v60 = vadd.f32 %v1037_v10, %v869_v51  ;;  %v791_v61 = vadd.f32 %v1792_v55, %v790_v56  ;;  %v959_v62 = vpop.f32.mrf.mxu1 }
 0x109   :  { %1131 = vst [vmem:[%s2397_s6 + $0x160] sm:$0xff] %v1038_v60  ;;  %v960_v23 = vadd.f32 %v959_v62, %v791_v61 }
 0x10b   :  { %1100 = vst [vmem:[%s2397_s6 + $0x68] sm:$0xff] %v960_v23 }
 0x10c   :  { %v870_v6 = vpop.f32.mrf.mxu2 }
 0x10d   :  { %v871_v7 = vadd.f32 %v1792_v55, %v870_v6  ;;  %v1039_v8 = vpop.f32.mrf.mxu3 }
 0x10e   :  { %v793_v12 = vpop.f32.mrf.mxu0 }
 0x10f   :  { %v1040_v14 = vadd.f32 %v1039_v8, %v871_v7  ;;  %v794_v16 = vadd.f32 %v1792_v55, %v793_v12  ;;  %v962_v17 = vpop.f32.mrf.mxu1 }
 0x111   :  { %1132 = vst [vmem:[%s2397_s6 + $0x168] sm:$0xff] %v1040_v14  ;;  %v963_v37 = vadd.f32 %v962_v17, %v794_v16  ;;  %832 = vmatmul.bf16.gmra.mxu0 %v583_v9  ;;  %912 = vmatmul.bf16.gmra.mxu2 %v615_v11 }
 0x112   :  { %1001 = vmatmul.bf16.gmra.mxu1 %v584_v36  ;;  %1081 = vmatmul.bf16.gmra.mxu3 %v616_v13 }
 0x113   :  { %1101 = vst [vmem:[%s2397_s6 + $0x70] sm:$0xff] %v963_v37 }
 0x114   :  { %v873_v18 = vpop.f32.mrf.mxu2 }
 0x115   :  { %v874_v19 = vadd.f32 %v1792_v55, %v873_v18  ;;  %v1042_v20 = vpop.f32.mrf.mxu3 }
 0x116   :  { %v795_v21 = vpop.f32.mrf.mxu0 }
 0x117   :  { %v1043_v22 = vadd.f32 %v1042_v20, %v874_v19  ;;  %v796_v25 = vadd.f32 %v1792_v55, %v795_v21  ;;  %v964_v26 = vpop.f32.mrf.mxu1  ;;  %v2313_v20 = vld [vmem:[%s2396_s5] ss:$0 sm:$0xff] }
 0x119   :  { %1133 = vst [vmem:[%s2397_s6 + $0x170] sm:$0xff] %v1043_v22  ;;  %v965_v27 = vadd.f32 %v964_v26, %v796_v25 }
 0x11b   :  { %1102 = vst [vmem:[%s2397_s6 + $0x78] sm:$0xff] %v965_v27 }
 0x11c   :  { %v875_v28 = vpop.f32.mrf.mxu2 }
 0x11d   :  { %v876_v29 = vadd.f32 %v1792_v55, %v875_v28  ;;  %v1044_v30 = vpop.f32.mrf.mxu3 }
 0x11e   :  { %v798_v31 = vpop.f32.mrf.mxu0 }
 0x11f   :  { %v1045_v32 = vadd.f32 %v1044_v30, %v876_v29  ;;  %v799_v33 = vadd.f32 %v1792_v55, %v798_v31  ;;  %v967_v34 = vpop.f32.mrf.mxu1 }
 0x121   :  { %1134 = vst [vmem:[%s2397_s6 + $0x178] sm:$0xff] %v1045_v32  ;;  %v968_v35 = vadd.f32 %v967_v34, %v799_v33 }
 0x123   :  { %1103 = vst [vmem:[%s2397_s6 + $0x80] sm:$0xff] %v968_v35 }
 0x124   :  { %v878_v38 = vpop.f32.mrf.mxu2 }
 0x125   :  { %v879_v39 = vadd.f32 %v1792_v55, %v878_v38  ;;  %v1047_v40 = vpop.f32.mrf.mxu3 }
 0x126   :  { %v800_v41 = vpop.f32.mrf.mxu0 }
 0x127   :  { %v1048_v42 = vadd.f32 %v1047_v40, %v879_v39  ;;  %v801_v43 = vadd.f32 %v1792_v55, %v800_v41  ;;  %v969_v44 = vpop.f32.mrf.mxu1 }
 0x129   :  { %1135 = vst [vmem:[%s2397_s6 + $0x180] sm:$0xff] %v1048_v42  ;;  %v970_v45 = vadd.f32 %v969_v44, %v801_v43 }
 0x12b   :  { %1104 = vst [vmem:[%s2397_s6 + $0x88] sm:$0xff] %v970_v45 }
 0x12c   :  { %v880_v46 = vpop.f32.mrf.mxu2 }
 0x12d   :  { %v881_v47 = vadd.f32 %v1792_v55, %v880_v46  ;;  %v1049_v48 = vpop.f32.mrf.mxu3 }
 0x12e   :  { %v803_v49 = vpop.f32.mrf.mxu0 }
 0x12f   :  { %v1050_v50 = vadd.f32 %v1049_v48, %v881_v47  ;;  %v804_v51 = vadd.f32 %v1792_v55, %v803_v49  ;;  %v972_v10 = vpop.f32.mrf.mxu1 }
 0x131   :  { %1136 = vst [vmem:[%s2397_s6 + $0x188] sm:$0xff] %v1050_v50  ;;  %v973_v52 = vadd.f32 %v972_v10, %v804_v51 }
 0x133   :  { %1105 = vst [vmem:[%s2397_s6 + $0x90] sm:$0xff] %v973_v52 }
 0x134   :  { %v883_v53 = vpop.f32.mrf.mxu2 }
 0x135   :  { %v884_v54 = vadd.f32 %v1792_v55, %v883_v53  ;;  %v1052_v56 = vpop.f32.mrf.mxu3 }
 0x136   :  { %v805_v57 = vpop.f32.mrf.mxu0 }
 0x137   :  { %v1053_v15 = vadd.f32 %v1052_v56, %v884_v54  ;;  %v806_v58 = vadd.f32 %v1792_v55, %v805_v57  ;;  %v974_v59 = vpop.f32.mrf.mxu1 }
 0x139   :  { %1137 = vst [vmem:[%s2397_s6 + $0x190] sm:$0xff] %v1053_v15  ;;  %v975_v60 = vadd.f32 %v974_v59, %v806_v58 }
 0x13b   :  { %1106 = vst [vmem:[%s2397_s6 + $0x98] sm:$0xff] %v975_v60 }
 0x13c   :  { %v885_v61 = vpop.f32.mrf.mxu2 }
 0x13d   :  { %v886_v62 = vadd.f32 %v1792_v55, %v885_v61  ;;  %v1054_v63 = vpop.f32.mrf.mxu3 }
 0x13e   :  { %v808_v23 = vpop.f32.mrf.mxu0 }
 0x13f   :  { %v1055_v0 = vadd.f32 %v1054_v63, %v886_v62  ;;  %v809_v1 = vadd.f32 %v1792_v55, %v808_v23  ;;  %v977_v2 = vpop.f32.mrf.mxu1 }
 0x141   :  { %1138 = vst [vmem:[%s2397_s6 + $0x198] sm:$0xff] %v1055_v0  ;;  %v978_v3 = vadd.f32 %v977_v2, %v809_v1 }
 0x143   :  { %1107 = vst [vmem:[%s2397_s6 + $0xa0] sm:$0xff] %v978_v3 }
 0x144   :  { %v888_v24 = vpop.f32.mrf.mxu2 }
 0x145   :  { %v889_v4 = vadd.f32 %v1792_v55, %v888_v24  ;;  %v1057_v5 = vpop.f32.mrf.mxu3 }
 0x146   :  { %v810_v6 = vpop.f32.mrf.mxu0 }
 0x147   :  { %v1058_v7 = vadd.f32 %v1057_v5, %v889_v4  ;;  %v811_v8 = vadd.f32 %v1792_v55, %v810_v6  ;;  %v979_v9 = vpop.f32.mrf.mxu1 }
 0x149   :  { %1139 = vst [vmem:[%s2397_s6 + $0x1a0] sm:$0xff] %v1058_v7  ;;  %v980_v11 = vadd.f32 %v979_v9, %v811_v8 }
 0x14b   :  { %1108 = vst [vmem:[%s2397_s6 + $0xa8] sm:$0xff] %v980_v11 }
 0x14c   :  { %v890_v12 = vpop.f32.mrf.mxu2 }
 0x14d   :  { %v891_v36 = vadd.f32 %v1792_v55, %v890_v12  ;;  %v1059_v13 = vpop.f32.mrf.mxu3 }
 0x14e   :  { %v813_v14 = vpop.f32.mrf.mxu0 }
 0x14f   :  { %v1060_v16 = vadd.f32 %v1059_v13, %v891_v36  ;;  %v814_v17 = vadd.f32 %v1792_v55, %v813_v14  ;;  %v982_v37 = vpop.f32.mrf.mxu1 }
 0x151   :  { %1140 = vst [vmem:[%s2397_s6 + $0x1a8] sm:$0xff] %v1060_v16  ;;  %v983_v18 = vadd.f32 %v982_v37, %v814_v17 }
 0x153   :  { %1109 = vst [vmem:[%s2397_s6 + $0xb0] sm:$0xff] %v983_v18 }
 0x154   :  { %v893_v19 = vpop.f32.mrf.mxu2 }
 0x155   :  { %v894_v21 = vadd.f32 %v2313_v20, %v893_v19  ;;  %v1062_v22 = vpop.f32.mrf.mxu3 }
 0x156   :  { %v815_v55 = vpop.f32.mrf.mxu0 }
 0x157   :  { %v1063_v25 = vadd.f32 %v1062_v22, %v894_v21  ;;  %v816_v26 = vadd.f32 %v2313_v20, %v815_v55  ;;  %v984_v27 = vpop.f32.mrf.mxu1 }
 0x159   :  { %1141 = vst [vmem:[%s2397_s6 + $0x1b0] sm:$0xff] %v1063_v25  ;;  %v985_v28 = vadd.f32 %v984_v27, %v816_v26 }
 0x15b   :  { %1110 = vst [vmem:[%s2397_s6 + $0xb8] sm:$0xff] %v985_v28 }
 0x15c   :  { %v895_v29 = vpop.f32.mrf.mxu2 }
 0x15d   :  { %v896_v30 = vadd.f32 %v2313_v20, %v895_v29  ;;  %v1064_v31 = vpop.f32.mrf.mxu3 }
 0x15e   :  { %v818_v32 = vpop.f32.mrf.mxu0 }
 0x15f   :  { %v1065_v33 = vadd.f32 %v1064_v31, %v896_v30  ;;  %v819_v34 = vadd.f32 %v2313_v20, %v818_v32  ;;  %v987_v35 = vpop.f32.mrf.mxu1 }
 0x161   :  { %1142 = vst [vmem:[%s2397_s6 + $0x1b8] sm:$0xff] %v1065_v33  ;;  %v988_v38 = vadd.f32 %v987_v35, %v819_v34 }
 0x163   :  { %1111 = vst [vmem:[%s2397_s6 + $0xc0] sm:$0xff] %v988_v38 }
 0x164   :  { %v898_v39 = vpop.f32.mrf.mxu2 }
 0x165   :  { %v899_v40 = vadd.f32 %v2313_v20, %v898_v39  ;;  %v1067_v41 = vpop.f32.mrf.mxu3 }
 0x166   :  { %v820_v42 = vpop.f32.mrf.mxu0 }
 0x167   :  { %v1068_v43 = vadd.f32 %v1067_v41, %v899_v40  ;;  %v821_v44 = vadd.f32 %v2313_v20, %v820_v42  ;;  %v989_v45 = vpop.f32.mrf.mxu1 }
 0x169   :  { %1143 = vst [vmem:[%s2397_s6 + $0x1c0] sm:$0xff] %v1068_v43  ;;  %v990_v46 = vadd.f32 %v989_v45, %v821_v44 }
 0x16b   :  { %1112 = vst [vmem:[%s2397_s6 + $0xc8] sm:$0xff] %v990_v46 }
 0x16c   :  { %v900_v47 = vpop.f32.mrf.mxu2 }
 0x16d   :  { %v901_v48 = vadd.f32 %v2313_v20, %v900_v47  ;;  %v1069_v49 = vpop.f32.mrf.mxu3 }
 0x16e   :  { %v823_v50 = vpop.f32.mrf.mxu0 }
 0x16f   :  { %v1070_v51 = vadd.f32 %v1069_v49, %v901_v48  ;;  %v824_v10 = vadd.f32 %v2313_v20, %v823_v50  ;;  %v992_v52 = vpop.f32.mrf.mxu1 }
 0x171   :  { %1144 = vst [vmem:[%s2397_s6 + $0x1c8] sm:$0xff] %v1070_v51  ;;  %v993_v53 = vadd.f32 %v992_v52, %v824_v10 }
 0x173   :  { %1113 = vst [vmem:[%s2397_s6 + $0xd0] sm:$0xff] %v993_v53 }
 0x174   :  { %v903_v54 = vpop.f32.mrf.mxu2 }
 0x175   :  { %v904_v56 = vadd.f32 %v2313_v20, %v903_v54  ;;  %v1072_v57 = vpop.f32.mrf.mxu3 }
 0x176   :  { %v825_v15 = vpop.f32.mrf.mxu0 }
 0x177   :  { %v1073_v58 = vadd.f32 %v1072_v57, %v904_v56  ;;  %v826_v59 = vadd.f32 %v2313_v20, %v825_v15  ;;  %v994_v60 = vpop.f32.mrf.mxu1 }
 0x179   :  { %1145 = vst [vmem:[%s2397_s6 + $0x1d0] sm:$0xff] %v1073_v58  ;;  %v995_v61 = vadd.f32 %v994_v60, %v826_v59 }
 0x17b   :  { %1114 = vst [vmem:[%s2397_s6 + $0xd8] sm:$0xff] %v995_v61 }
 0x17c   :  { %v905_v62 = vpop.f32.mrf.mxu2 }
 0x17d   :  { %v906_v63 = vadd.f32 %v2313_v20, %v905_v62  ;;  %v1074_v23 = vpop.f32.mrf.mxu3 }
 0x17e   :  { %v828_v0 = vpop.f32.mrf.mxu0 }
 0x17f   :  { %v1075_v1 = vadd.f32 %v1074_v23, %v906_v63  ;;  %v829_v2 = vadd.f32 %v2313_v20, %v828_v0  ;;  %v997_v3 = vpop.f32.mrf.mxu1 }
 0x181   :  { %1146 = vst [vmem:[%s2397_s6 + $0x1d8] sm:$0xff] %v1075_v1  ;;  %v998_v24 = vadd.f32 %v997_v3, %v829_v2 }
 0x183   :  { %1115 = vst [vmem:[%s2397_s6 + $0xe0] sm:$0xff] %v998_v24 }
 0x184   :  { %v908_v4 = vpop.f32.mrf.mxu2 }
 0x185   :  { %v909_v5 = vadd.f32 %v2313_v20, %v908_v4  ;;  %v1077_v6 = vpop.f32.mrf.mxu3 }
 0x186   :  { %v830_v7 = vpop.f32.mrf.mxu0 }
 0x187   :  { %v1078_v8 = vadd.f32 %v1077_v6, %v909_v5  ;;  %v831_v9 = vadd.f32 %v2313_v20, %v830_v7  ;;  %v999_v11 = vpop.f32.mrf.mxu1 }
 0x189   :  { %1147 = vst [vmem:[%s2397_s6 + $0x1e0] sm:$0xff] %v1078_v8  ;;  %v1000_v12 = vadd.f32 %v999_v11, %v831_v9 }
 0x18b   :  { %1116 = vst [vmem:[%s2397_s6 + $0xe8] sm:$0xff] %v1000_v12 }
 0x18c   :  { %v910_v36 = vpop.f32.mrf.mxu2 }
 0x18d   :  { %v911_v13 = vadd.f32 %v2313_v20, %v910_v36  ;;  %v1079_v14 = vpop.f32.mrf.mxu3 }
 0x18e   :  { %v833_v16 = vpop.f32.mrf.mxu0 }
 0x18f   :  { %v1080_v17 = vadd.f32 %v1079_v14, %v911_v13  ;;  %v834_v37 = vadd.f32 %v2313_v20, %v833_v16  ;;  %v1002_v18 = vpop.f32.mrf.mxu1 }
 0x191   :  { %1148 = vst [vmem:[%s2397_s6 + $0x1e8] sm:$0xff] %v1080_v17  ;;  %v1003_v19 = vadd.f32 %v1002_v18, %v834_v37 }
 0x193   :  { %1117 = vst [vmem:[%s2397_s6 + $0xf0] sm:$0xff] %v1003_v19 }
 0x194   :  { %v913_v21 = vpop.f32.mrf.mxu2 }
 0x195   :  { %v914_v22 = vadd.f32 %v2313_v20, %v913_v21  ;;  %v1082_v55 = vpop.f32.mrf.mxu3 }
 0x196   :  { %v835_v25 = vpop.f32.mrf.mxu0 }
 0x197   :  { %v1083_v26 = vadd.f32 %v1082_v55, %v914_v22  ;;  %v836_v27 = vadd.f32 %v2313_v20, %v835_v25  ;;  %v1004_v28 = vpop.f32.mrf.mxu1 }
 0x199   :  { %1149 = vst [vmem:[%s2397_s6 + $0x1f0] sm:$0xff] %v1083_v26  ;;  %v1005_v29 = vadd.f32 %v1004_v28, %v836_v27 }
 0x19b   :  { %1118 = vst [vmem:[%s2397_s6 + $0xf8] sm:$0xff] %v1005_v29 }
 0x19c   :  { %v915_v30 = vpop.f32.mrf.mxu2 }
 0x19d   :  { %v916_v31 = vadd.f32 %v2313_v20, %v915_v30  ;;  %v1084_v32 = vpop.f32.mrf.mxu3 }
 0x19f   :  { %v1085_v33 = vadd.f32 %v1084_v32, %v916_v31 }
 0x1a1   :  { %1150 = vst [vmem:[%s2397_s6 + $0x1f8] sm:$0xff] %v1085_v33 }

// kernel: fwd.5
= control target key start
LH: loop header
LB: loop body
LE: loop exit
PB: predicated region body
PF: predicated region fallthrough
CT: control target
= control target key end

     0   :  { %s3400_s0 = inlined_call_operand.vmem [shape: f32[512,384], index: 0, kind: input, shape index: {}]   ;;  %s3401_s1 = inlined_call_operand.vmem [shape: f32[1,384], index: 1, kind: input, shape index: {}]   ;;  %s3402_s2 = inlined_call_operand.vmem [shape: f32[1,384], index: 2, kind: input, shape index: {}]   ;;  %s3403_s3 = inlined_call_operand.vmem [shape: f32[1,384], index: 3, kind: input, shape index: {}]   ;;  %s3404_s4 = inlined_call_operand.vmem [shape: bf16[384,128], index: 4, kind: input, shape index: {}]   ;;  %s3405_s5 = inlined_call_operand.vmem [shape: f32[1,128], index: 5, kind: input, shape index: {}]   ;;  %s3406_s6 = inlined_call_operand.hbm [shape: f32[512,128], index: 6, kind: output, shape index: {}]  }
   0x1   :  { %v1800_v0 = vld [vmem:[%s3404_s4 + $0x38] sm:$0xff]  ;;  %v1799_v3 = vld [vmem:[%s3404_s4 + $0x30] sm:$0xff]  ;;  %v1798_v6 = vld [vmem:[%s3404_s4 + $0x28] sm:$0xff] }
   0x2   :  { %v1917_v1 = vld [vmem:[%s3404_s4 + $0x78] sm:$0xff]  ;;  %1108 = vmatpush.bf16.msra.mxu0 %v1800_v0  ;;  %1817 = vmatpush.bf16.msra.mxu3 %v1800_v0  ;;  %v1932_v4 = vld [vmem:[%s3404_s4 + $0x70] sm:$0xff]  ;;  %v1947_v7 = vld [vmem:[%s3404_s4 + $0x68] sm:$0xff] }
   0x3   :  { %v1922_v2 = vld [vmem:[%s3404_s4 + $0xb8] sm:$0xff]  ;;  %1277 = vmatpush.bf16.msra.mxu1 %v1917_v1  ;;  %v1937_v5 = vld [vmem:[%s3404_s4 + $0xb0] sm:$0xff]  ;;  %v1952_v8 = vld [vmem:[%s3404_s4 + $0xa8] sm:$0xff] }
   0x4   :  { %1446 = vmatpush.bf16.msra.mxu2 %v1922_v2  ;;  %v216_v9 = vld [vmem:[%s3401_s1] sm:$0x7]  ;;  %v1796_v13 = vld [vmem:[%s3404_s4 + $0x18] sm:$0xff]  ;;  %v25_v23 = vld [vmem:[%s3400_s0 + $0x8] sm:$0xff] }
   0x5   :  { %v1797_v10 = vld [vmem:[%s3404_s4 + $0x20] sm:$0xff]  ;;  %v27_v15 = vld [vmem:[%s3400_s0 + $0x18] sm:$0xff]  ;;  %v1981_v16 = vperm.slane %v216_v9, 0  ;;  %v2002_v22 = vperm.slane %v216_v9, 1  ;;  %v2007_v24 = vperm.slane %v216_v9, 2 }
   0x6   :  { %1109 = vmatpush.bf16.msra.mxu0 %v1799_v3  ;;  %1818 = vmatpush.bf16.msra.mxu3 %v1799_v3  ;;  %v1965_v11 = vld [vmem:[%s3404_s4 + $0x60] sm:$0xff]  ;;  %v1986_v17 = vld [vmem:[%s3404_s4 + $0x58] sm:$0xff] }
   0x7   :  { %1278 = vmatpush.bf16.msra.mxu1 %v1932_v4  ;;  %v1970_v12 = vld [vmem:[%s3404_s4 + $0xa0] sm:$0xff]  ;;  %v1991_v18 = vld [vmem:[%s3404_s4 + $0x98] sm:$0xff] }
   0x8   :  { %1447 = vmatpush.bf16.msra.mxu2 %v1937_v5  ;;  %v24_v14 = vld [vmem:[%s3400_s0] sm:$0xff]  ;;  %v171_v21 = vld [vmem:[%s3400_s0 + $0x498] sm:$0xff] }
   0x9   :  { %v416_v19 = vld [vmem:[%s3402_s2] sm:$0x7] }
   0xa   :  { %1110 = vmatpush.bf16.msra.mxu0 %v1798_v6  ;;  %1819 = vmatpush.bf16.msra.mxu3 %v1798_v6  ;;  %v168_v20 = vld [vmem:[%s3400_s0 + $0x480] sm:$0xff] }
   0xb   :  { %1279 = vmatpush.bf16.msra.mxu1 %v1947_v7 }
   0xc   :  { %1448 = vmatpush.bf16.msra.mxu2 %v1952_v8 }
   0xe   :  { %1111 = vmatpush.bf16.msra.mxu0 %v1797_v10  ;;  %1820 = vmatpush.bf16.msra.mxu3 %v1797_v10 }
   0xf   :  { %11 = vsyncpa [#allocation3], 0  ;;  %1280 = vmatpush.bf16.msra.mxu1 %v1965_v11  ;;  %v28_v25 = vld [vmem:[%s3400_s0 + $0x20] sm:$0xff]  ;;  %v26_v26 = vld [vmem:[%s3400_s0 + $0x10] sm:$0xff]  ;;  %v224_v28 = vmul.f32 %v1981_v16, %v24_v14  ;;  %v227_v29 = vmul.f32 %v1981_v16, %v27_v15  ;;  %v2022_v30 = vperm.slane %v416_v19, 0  ;;  %v368_v32 = vmul.f32 %v1981_v16, %v168_v20  ;;  %s1873_s22 = smov [#allocation2]  }
  0x10   :  { %1449 = vmatpush.bf16.msra.mxu2 %v1970_v12  ;;  %v29_v27 = vld [vmem:[%s3400_s0 + $0x28] sm:$0xff]  ;;  %v616_v31 = vld [vmem:[%s3403_s3] sm:$0x7]  ;;  %v371_v33 = vmul.f32 %v1981_v16, %v171_v21  ;;  %v225_v34 = vmul.f32 %v2002_v22, %v25_v23  ;;  %v2030_v35 = vperm.slane %v416_v19, 1  ;;  %v1795_v36 = vld [vmem:[%s3404_s4 + $0x10] sm:$0xff]  ;;  %v228_v37 = vmul.f32 %v2002_v22, %v28_v25  ;;  %s1683_s1 = sshll.u32 %s1873_s22, 4  ;;  %s1684_s1 = int_to_ptr.vmem [resolvable:$true] %s1683_s1 }
  0x11   :  { %v226_v38 = vmul.f32 %v2007_v24, %v26_v26  ;;  %v229_v39 = vmul.f32 %v2007_v24, %v29_v27  ;;  %v2038_v40 = vperm.slane %v416_v19, 2  ;;  %v2045_v41 = vld [vmem:[%s3404_s4 + $0x50] sm:$0xff]  ;;  %v424_v43 = vadd.f32 %v2022_v30, %v224_v28  ;;  %v1794_v50 = vld [vmem:[%s3404_s4 + $0x8] sm:$0xff]  ;;  %v1793_v62 = vld [vmem:[%s3404_s4] sm:$0xff]  ;;  %s1685_s24 = sshll.u32 %s3406_s6, 4  ;;  %s1875_s25 = smov 8   ;;  %s1686_s24 = int_to_ptr.hbm [resolvable:$true] %s1685_s24 }
  0x12   :  { %1112 = vmatpush.bf16.msra.mxu0 %v1796_v13  ;;  %1821 = vmatpush.bf16.msra.mxu3 %v1796_v13  ;;  %v2050_v42 = vld [vmem:[%s3404_s4 + $0x90] sm:$0xff]  ;;  %v2053_v44 = vperm.slane %v616_v31, 0  ;;  %v2055_v45 = vperm.slane %v616_v31, 1  ;;  %v427_v46 = vadd.f32 %v2022_v30, %v227_v29  ;;  %v568_v47 = vadd.f32 %v2022_v30, %v368_v32  ;;  %v2074_v55 = vld [vmem:[%s3404_s4 + $0x48] sm:$0xff]  ;;  %v2097_v6 = vld [vmem:[%s3404_s4 + $0x40] sm:$0xff] }
  0x13   :  { %1281 = vmatpush.bf16.msra.mxu1 %v1986_v17  ;;  %v571_v48 = vadd.f32 %v2022_v30, %v371_v33  ;;  %v425_v49 = vadd.f32 %v2030_v35, %v225_v34  ;;  %v428_v51 = vadd.f32 %v2030_v35, %v228_v37  ;;  %v426_v52 = vadd.f32 %v2038_v40, %v226_v38  ;;  %v2079_v56 = vld [vmem:[%s3404_s4 + $0x88] sm:$0xff]  ;;  %v2102_v9 = vld [vmem:[%s3404_s4 + $0x80] sm:$0xff]  ;;  %v30_v14 = vld [vmem:[%s3400_s0 + $0x30] sm:$0xff] }
  0x14   :  { %1450 = vmatpush.bf16.msra.mxu2 %v1991_v18  ;;  %v429_v53 = vadd.f32 %v2038_v40, %v229_v39  ;;  %v2067_v54 = vperm.slane %v616_v31, 2  ;;  %v624_v57 = vmax.f32 %v424_v43, %v2053_v44  ;;  %v627_v58 = vmax.f32 %v427_v46, %v2053_v44  ;;  %v33_v15 = vld [vmem:[%s3400_s0 + $0x48] sm:$0xff]  ;;  %v174_v21 = vld [vmem:[%s3400_s0 + $0x4b0] sm:$0xff]  ;;  %v31_v25 = vld [vmem:[%s3400_s0 + $0x38] sm:$0xff] }
  0x15   :  { %v768_v59 = vmax.f32 %v568_v47, %v2053_v44  ;;  %v771_v60 = vmax.f32 %v571_v48, %v2053_v44  ;;  %v625_v61 = vmax.f32 %v425_v49, %v2055_v45  ;;  %v628_v63 = vmax.f32 %v428_v51, %v2055_v45  ;;  %v177_v23 = vld [vmem:[%s3400_s0 + $0x4c8] sm:$0xff]  ;;  %v34_v26 = vld [vmem:[%s3400_s0 + $0x50] sm:$0xff]  ;;  %v32_v27 = vld [vmem:[%s3400_s0 + $0x40] sm:$0xff] }
  0x16   :  { %1113 = vmatpush.bf16.msra.mxu0 %v1795_v36  ;;  %1822 = vmatpush.bf16.msra.mxu3 %v1795_v36  ;;  %v626_v0 = vmax.f32 %v426_v52, %v2067_v54  ;;  %v629_v3 = vmax.f32 %v429_v53, %v2067_v54  ;;  %v816_v10 = vpack.c.bf16 %v627_v58, %v624_v57  ;;  %v35_v28 = vld [vmem:[%s3400_s0 + $0x58] sm:$0xff] }
  0x17   :  { %1282 = vmatpush.bf16.msra.mxu1 %v2045_v41  ;;  %v888_v13 = vpack.c.bf16 %v771_v60, %v768_v59  ;;  %v817_v19 = vpack.c.bf16 %v628_v63, %v625_v61  ;;  %v230_v29 = vmul.f32 %v1981_v16, %v30_v14  ;;  %v233_v31 = vmul.f32 %v1981_v16, %v33_v15  ;;  %v39_v63 = vld [vmem:[%s3400_s0 + $0x78] sm:$0xff]  ;;  %v40_v14 = vld [vmem:[%s3400_s0 + $0x80] sm:$0xff]  ;;  %v38_v15 = vld [vmem:[%s3400_s0 + $0x70] sm:$0xff] }
  0x18   :  { %1451 = vmatpush.bf16.msra.mxu2 %v2050_v42  ;;  %v818_v20 = vpack.c.bf16 %v629_v3, %v626_v0  ;;  %v374_v32 = vmul.f32 %v1981_v16, %v174_v21  ;;  %v377_v33 = vmul.f32 %v1981_v16, %v177_v23  ;;  %v231_v34 = vmul.f32 %v2002_v22, %v31_v25 }
  0x19   :  { %v234_v36 = vmul.f32 %v2002_v22, %v34_v26  ;;  %v232_v37 = vmul.f32 %v2007_v24, %v32_v27  ;;  %v430_v38 = vadd.f32 %v2022_v30, %v230_v29  ;;  %v433_v39 = vadd.f32 %v2022_v30, %v233_v31 }
  0x1a   :  { %1114 = vmatpush.bf16.msra.mxu0 %v1794_v50  ;;  %1823 = vmatpush.bf16.msra.mxu3 %v1794_v50  ;;  %v574_v43 = vadd.f32 %v2022_v30, %v374_v32  ;;  %v577_v46 = vadd.f32 %v2022_v30, %v377_v33  ;;  %v431_v47 = vadd.f32 %v2030_v35, %v231_v34 }
  0x1b   :  { %1283 = vmatpush.bf16.msra.mxu1 %v2074_v55  ;;  %v434_v48 = vadd.f32 %v2030_v35, %v234_v36  ;;  %v432_v49 = vadd.f32 %v2038_v40, %v232_v37  ;;  %v633_v51 = vmax.f32 %v433_v39, %v2053_v44  ;;  %v239_v21 = vmul.f32 %v1981_v16, %v39_v63 }
  0x1c   :  { %1452 = vmatpush.bf16.msra.mxu2 %v2079_v56  ;;  %v774_v52 = vmax.f32 %v574_v43, %v2053_v44  ;;  %v777_v53 = vmax.f32 %v577_v46, %v2053_v44  ;;  %v631_v57 = vmax.f32 %v431_v47, %v2055_v45  ;;  %v240_v27 = vmul.f32 %v2002_v22, %v40_v14 }
  0x1d   :  { %v634_v58 = vmax.f32 %v434_v48, %v2055_v45  ;;  %v632_v59 = vmax.f32 %v432_v49, %v2067_v54  ;;  %v439_v31 = vadd.f32 %v2022_v30, %v239_v21 }
  0x1e   :  { %1115 = vmatpush.bf16.msra.mxu0 %v1793_v62  ;;  %1824 = vmatpush.bf16.msra.mxu3 %v1793_v62  ;;  %v36_v62 = vld [vmem:[%s3400_s0 + $0x60] sm:$0xff]  ;;  %v440_v36 = vadd.f32 %v2030_v35, %v240_v27 }
  0x1f   :  { %1284 = vmatpush.bf16.msra.mxu1 %v2097_v6  ;;  %v820_v0 = vpack.c.bf16 %v634_v58, %v631_v57  ;;  %v186_v57 = vld [vmem:[%s3400_s0 + $0x510] sm:$0xff]  ;;  %v43_v58 = vld [vmem:[%s3400_s0 + $0x98] sm:$0xff] }
  0x20   :  { %1453 = vmatpush.bf16.msra.mxu2 %v2102_v9  ;;  %v640_v47 = vmax.f32 %v440_v36, %v2055_v45  ;;  %v51_v36 = vld [vmem:[%s3400_s0 + $0xd8] sm:$0xff] }
  0x21   :  { %1116 = vmatmul.bf16.vlgmr.msra.gmra.mxu0 %v816_v10  ;;  %1236 = vmatmul.bf16.vlgmr.msra.gmra.mxu3 %v888_v13  ;;  %v180_v10 = vld [vmem:[%s3400_s0 + $0x4e0] sm:$0xff]  ;;  %v37_v13 = vld [vmem:[%s3400_s0 + $0x68] sm:$0xff] }
  0x22   :  { %1825 = vmatpush.bf16.msrb.mxu3 %v1917_v1  ;;  %1285 = vmatmul.bf16.vlgmr.msra.gmra.mxu1 %v817_v19  ;;  %v235_v1 = vmul.f32 %v2007_v24, %v35_v28  ;;  %v41_v19 = vld [vmem:[%s3400_s0 + $0x88] sm:$0xff]  ;;  %v380_v23 = vmul.f32 %v1981_v16, %v180_v10  ;;  %v237_v26 = vmul.f32 %v2002_v22, %v37_v13 }
  0x23   :  { %1454 = vmatmul.bf16.vlgmr.msra.gmra.mxu2 %v818_v20  ;;  %v236_v20 = vmul.f32 %v1981_v16, %v36_v62  ;;  %v238_v28 = vmul.f32 %v2007_v24, %v38_v15  ;;  %v241_v29 = vmul.f32 %v2007_v24, %v41_v19  ;;  %v386_v62 = vmul.f32 %v1981_v16, %v186_v57 }
  0x24   :  { %v435_v50 = vadd.f32 %v2038_v40, %v235_v1  ;;  %v580_v32 = vadd.f32 %v2022_v30, %v380_v23  ;;  %v437_v34 = vadd.f32 %v2030_v35, %v237_v26 }
  0x25   :  { %v438_v37 = vadd.f32 %v2038_v40, %v238_v28  ;;  %v441_v1 = vadd.f32 %v2038_v40, %v241_v29  ;;  %v586_v15 = vadd.f32 %v2022_v30, %v386_v62 }
  0x26   :  { %1826 = vmatpush.bf16.msrb.mxu3 %v1932_v4  ;;  %v630_v4 = vmax.f32 %v430_v38, %v2053_v44  ;;  %v635_v60 = vmax.f32 %v435_v50, %v2067_v54  ;;  %v639_v38 = vmax.f32 %v439_v31, %v2053_v44  ;;  %v780_v39 = vmax.f32 %v580_v32, %v2053_v44 }
  0x27   :  { %v637_v46 = vmax.f32 %v437_v34, %v2055_v45  ;;  %v638_v48 = vmax.f32 %v438_v37, %v2067_v54  ;;  %v641_v49 = vmax.f32 %v441_v1, %v2067_v54  ;;  %v786_v27 = vmax.f32 %v586_v15, %v2053_v44  ;;  %v48_v34 = vld [vmem:[%s3400_s0 + $0xc0] sm:$0xff] }
  0x28   :  { %v819_v61 = vpack.c.bf16 %v633_v51, %v630_v4  ;;  %v821_v3 = vpack.c.bf16 %v635_v60, %v632_v59  ;;  %v42_v4 = vld [vmem:[%s3400_s0 + $0x90] sm:$0xff]  ;;  %v45_v51 = vld [vmem:[%s3400_s0 + $0xa8] sm:$0xff]  ;;  %v47_v60 = vld [vmem:[%s3400_s0 + $0xb8] sm:$0xff] }
  0x29   :  { %v46_v59 = vld [vmem:[%s3400_s0 + $0xb0] sm:$0xff] }
  0x2a   :  { %1827 = vmatpush.bf16.msrb.mxu3 %v1947_v7  ;;  %v891_v7 = vpack.c.bf16 %v777_v53, %v774_v52  ;;  %v823_v52 = vpack.c.bf16 %v640_v47, %v637_v46  ;;  %v824_v53 = vpack.c.bf16 %v641_v49, %v638_v48  ;;  %v53_v46 = vld [vmem:[%s3400_s0 + $0xe8] sm:$0xff]  ;;  %v248_v47 = vmul.f32 %v1981_v16, %v48_v34 }
  0x2b   :  { %v251_v48 = vmul.f32 %v1981_v16, %v51_v36 }
  0x2e   :  { %1828 = vmatpush.bf16.msrb.mxu3 %v1965_v11  ;;  %v183_v11 = vld [vmem:[%s3400_s0 + $0x4f8] sm:$0xff] }
  0x2f   :  { %v383_v25 = vmul.f32 %v1981_v16, %v183_v11  ;;  %v247_v11 = vmul.f32 %v2007_v24, %v47_v60 }
  0x31   :  { %1121 = vmatmul.bf16.gmra.mxu0 %v819_v61  ;;  %1241 = vmatmul.bf16.gmra.mxu3 %v891_v7  ;;  %v583_v33 = vadd.f32 %v2022_v30, %v383_v25  ;;  %v242_v61 = vmul.f32 %v1981_v16, %v42_v4  ;;  %v245_v7 = vmul.f32 %v1981_v16, %v45_v51 }
  0x32   :  { %1829 = vmatpush.bf16.msrb.mxu3 %v1986_v17  ;;  %1290 = vmatmul.bf16.gmra.mxu1 %v820_v0  ;;  %v436_v17 = vadd.f32 %v2022_v30, %v236_v20  ;;  %v243_v0 = vmul.f32 %v2002_v22, %v43_v58  ;;  %v447_v25 = vadd.f32 %v2038_v40, %v247_v11 }
  0x33   :  { %1459 = vmatmul.bf16.gmra.mxu2 %v821_v3  ;;  %v783_v43 = vmax.f32 %v583_v33, %v2053_v44  ;;  %v246_v3 = vmul.f32 %v2002_v22, %v46_v59  ;;  %v442_v13 = vadd.f32 %v2022_v30, %v242_v61  ;;  %v445_v14 = vadd.f32 %v2022_v30, %v245_v7 }
  0x34   :  { %v443_v20 = vadd.f32 %v2030_v35, %v243_v0  ;;  %v647_v32 = vmax.f32 %v447_v25, %v2067_v54  ;;  %v56_v25 = vld [vmem:[%s3400_s0 + $0x100] sm:$0xff] }
  0x35   :  { %v446_v21 = vadd.f32 %v2030_v35, %v246_v3  ;;  %v645_v26 = vmax.f32 %v445_v14, %v2053_v44  ;;  %v57_v14 = vld [vmem:[%s3400_s0 + $0x108] sm:$0xff] }
  0x36   :  { %1830 = vmatpush.bf16.msrb.mxu3 %v2045_v41  ;;  %v636_v41 = vmax.f32 %v436_v17, %v2053_v44  ;;  %v643_v29 = vmax.f32 %v443_v20, %v2055_v45  ;;  %v198_v20 = vld [vmem:[%s3400_s0 + $0x570] sm:$0xff] }
  0x37   :  { %v646_v17 = vmax.f32 %v446_v21, %v2055_v45  ;;  %v55_v21 = vld [vmem:[%s3400_s0 + $0xf8] sm:$0xff] }
  0x38   :  { %v822_v50 = vpack.c.bf16 %v639_v38, %v636_v41  ;;  %v192_v41 = vld [vmem:[%s3400_s0 + $0x540] sm:$0xff]  ;;  %v49_v38 = vld [vmem:[%s3400_s0 + $0xc8] sm:$0xff] }
  0x39   :  { %v826_v37 = vpack.c.bf16 %v646_v17, %v643_v29  ;;  %v392_v49 = vmul.f32 %v1981_v16, %v192_v41  ;;  %v255_v17 = vmul.f32 %v2002_v22, %v55_v21 }
  0x3a   :  { %1831 = vmatpush.bf16.msrb.mxu3 %v2074_v55  ;;  %v894_v55 = vpack.c.bf16 %v783_v43, %v780_v39  ;;  %v52_v39 = vld [vmem:[%s3400_s0 + $0xe0] sm:$0xff]  ;;  %v50_v43 = vld [vmem:[%s3400_s0 + $0xd0] sm:$0xff] }
  0x3b   :  { %v252_v4 = vmul.f32 %v2002_v22, %v52_v39  ;;  %v250_v51 = vmul.f32 %v2007_v24, %v50_v43  ;;  %v592_v57 = vadd.f32 %v2022_v30, %v392_v49 }
  0x3d   :  { %v452_v59 = vadd.f32 %v2030_v35, %v252_v4  ;;  %v792_v7 = vmax.f32 %v592_v57, %v2053_v44 }
  0x3e   :  { %1832 = vmatpush.bf16.msrb.mxu3 %v2097_v6  ;;  %v189_v6 = vld [vmem:[%s3400_s0 + $0x528] sm:$0xff] }
  0x3f   :  { %v389_v63 = vmul.f32 %v1981_v16, %v189_v6  ;;  %v652_v0 = vmax.f32 %v452_v59, %v2055_v45  ;;  %v61_v59 = vld [vmem:[%s3400_s0 + $0x128] sm:$0xff] }
  0x41   :  { %1126 = vmatmul.bf16.gmra.mxu0 %v822_v50  ;;  %1246 = vmatmul.bf16.gmra.mxu3 %v894_v55  ;;  %v589_v19 = vadd.f32 %v2022_v30, %v389_v63  ;;  %v249_v55 = vmul.f32 %v2002_v22, %v49_v38 }
  0x42   :  { %1833 = vmatpush.bf16.msra.mxu3 %v1922_v2  ;;  %v44_v2 = vld [vmem:[%s3400_s0 + $0xa0] sm:$0xff]  ;;  %1295 = vmatmul.bf16.gmra.mxu1 %v823_v52  ;;  %v448_v52 = vadd.f32 %v2022_v30, %v248_v47 }
  0x43   :  { %1464 = vmatmul.bf16.gmra.mxu2 %v824_v53  ;;  %v244_v10 = vmul.f32 %v2007_v24, %v44_v2  ;;  %v789_v28 = vmax.f32 %v589_v19, %v2053_v44  ;;  %v451_v53 = vadd.f32 %v2022_v30, %v251_v48  ;;  %v449_v58 = vadd.f32 %v2030_v35, %v249_v55 }
  0x44   :  { %v450_v2 = vadd.f32 %v2038_v40, %v250_v51 }
  0x45   :  { %v444_v23 = vadd.f32 %v2038_v40, %v244_v10  ;;  %v651_v61 = vmax.f32 %v451_v53, %v2053_v44  ;;  %v649_v63 = vmax.f32 %v449_v58, %v2055_v45  ;;  %v207_v58 = vld [vmem:[%s3400_s0 + $0x5b8] sm:$0xff] }
  0x46   :  { %1834 = vmatpush.bf16.msra.mxu3 %v1937_v5  ;;  %v642_v5 = vmax.f32 %v442_v13, %v2053_v44  ;;  %v650_v3 = vmax.f32 %v450_v2, %v2067_v54  ;;  %v54_v13 = vld [vmem:[%s3400_s0 + $0xf0] sm:$0xff]  ;;  %v64_v2 = vld [vmem:[%s3400_s0 + $0x140] sm:$0xff] }
  0x47   :  { %v644_v31 = vmax.f32 %v444_v23, %v2067_v54  ;;  %v829_v15 = vpack.c.bf16 %v652_v0, %v649_v63  ;;  %v58_v23 = vld [vmem:[%s3400_s0 + $0x110] sm:$0xff]  ;;  %v407_v63 = vmul.f32 %v1981_v16, %v207_v58  ;;  %v261_v0 = vmul.f32 %v2002_v22, %v61_v59 }
  0x48   :  { %v825_v33 = vpack.c.bf16 %v645_v26, %v642_v5  ;;  %v59_v5 = vld [vmem:[%s3400_s0 + $0x118] sm:$0xff]  ;;  %v254_v26 = vmul.f32 %v1981_v16, %v54_v13 }
  0x49   :  { %v827_v1 = vpack.c.bf16 %v647_v32, %v644_v31  ;;  %v258_v31 = vmul.f32 %v2002_v22, %v58_v23  ;;  %v256_v32 = vmul.f32 %v2007_v24, %v56_v25 }
  0x4a   :  { %1835 = vmatpush.bf16.msra.mxu3 %v1952_v8  ;;  %v897_v8 = vpack.c.bf16 %v789_v28, %v786_v27  ;;  %v257_v27 = vmul.f32 %v1981_v16, %v57_v14  ;;  %v398_v28 = vmul.f32 %v1981_v16, %v198_v20 }
  0x4b   :  { %v458_v41 = vadd.f32 %v2030_v35, %v258_v31 }
  0x4c   :  { %v457_v34 = vadd.f32 %v2022_v30, %v257_v27  ;;  %v598_v36 = vadd.f32 %v2022_v30, %v398_v28 }
  0x4d   :  { %v658_v49 = vmax.f32 %v458_v41, %v2055_v45  ;;  %v67_v41 = vld [vmem:[%s3400_s0 + $0x158] sm:$0xff] }
  0x4e   :  { %1836 = vmatpush.bf16.msra.mxu3 %v1970_v12  ;;  %v195_v12 = vld [vmem:[%s3400_s0 + $0x558] sm:$0xff]  ;;  %v657_v43 = vmax.f32 %v457_v34, %v2053_v44 }
  0x4f   :  { %v395_v50 = vmul.f32 %v1981_v16, %v195_v12  ;;  %v456_v12 = vadd.f32 %v2038_v40, %v256_v32 }
  0x51   :  { %1131 = vmatmul.bf16.gmra.mxu0 %v825_v33  ;;  %1251 = vmatmul.bf16.gmra.mxu3 %v897_v8  ;;  %v595_v6 = vadd.f32 %v2022_v30, %v395_v50  ;;  %v259_v33 = vmul.f32 %v2007_v24, %v59_v5  ;;  %v454_v8 = vadd.f32 %v2022_v30, %v254_v26 }
  0x52   :  { %1837 = vmatpush.bf16.msra.mxu3 %v1991_v18  ;;  %1300 = vmatmul.bf16.gmra.mxu1 %v826_v37  ;;  %v253_v18 = vmul.f32 %v2007_v24, %v53_v46  ;;  %v798_v46 = vmax.f32 %v598_v36, %v2053_v44  ;;  %v656_v50 = vmax.f32 %v456_v12, %v2067_v54  ;;  %v70_v12 = vld [vmem:[%s3400_s0 + $0x170] sm:$0xff] }
  0x53   :  { %1469 = vmatmul.bf16.gmra.mxu2 %v827_v1  ;;  %v795_v62 = vmax.f32 %v595_v6, %v2053_v44  ;;  %v455_v1 = vadd.f32 %v2030_v35, %v255_v17  ;;  %v459_v38 = vadd.f32 %v2038_v40, %v259_v33  ;;  %v654_v39 = vmax.f32 %v454_v8, %v2053_v44  ;;  %v204_v6 = vld [vmem:[%s3400_s0 + $0x5a0] sm:$0xff]  ;;  %v66_v33 = vld [vmem:[%s3400_s0 + $0x150] sm:$0xff]  ;;  %v69_v8 = vld [vmem:[%s3400_s0 + $0x168] sm:$0xff] }
  0x54   :  { %v453_v60 = vadd.f32 %v2038_v40, %v253_v18  ;;  %v60_v18 = vld [vmem:[%s3400_s0 + $0x120] sm:$0xff] }
  0x55   :  { %v655_v48 = vmax.f32 %v455_v1, %v2055_v45  ;;  %v659_v55 = vmax.f32 %v459_v38, %v2067_v54  ;;  %v831_v4 = vpack.c.bf16 %v657_v43, %v654_v39  ;;  %v213_v1 = vld [vmem:[%s3400_s0 + $0x5e8] sm:$0xff]  ;;  %v68_v38 = vld [vmem:[%s3400_s0 + $0x160] sm:$0xff]  ;;  %v71_v39 = vld [vmem:[%s3400_s0 + $0x178] sm:$0xff]  ;;  %v266_v43 = vmul.f32 %v1981_v16, %v66_v33 }
  0x56   :  { %1838 = vmatpush.bf16.msra.mxu3 %v2050_v42  ;;  %v648_v42 = vmax.f32 %v448_v52, %v2053_v44  ;;  %v653_v10 = vmax.f32 %v453_v60, %v2067_v54  ;;  %v63_v52 = vld [vmem:[%s3400_s0 + $0x138] sm:$0xff]  ;;  %v62_v60 = vld [vmem:[%s3400_s0 + $0x130] sm:$0xff] }
  0x57   :  { %v832_v53 = vpack.c.bf16 %v658_v49, %v655_v48  ;;  %v833_v57 = vpack.c.bf16 %v659_v55, %v656_v50  ;;  %v413_v48 = vmul.f32 %v1981_v16, %v213_v1  ;;  %v267_v49 = vmul.f32 %v2002_v22, %v67_v41 }
  0x58   :  { %v828_v11 = vpack.c.bf16 %v651_v61, %v648_v42  ;;  %v830_v19 = vpack.c.bf16 %v653_v10, %v650_v3  ;;  %v65_v42 = vld [vmem:[%s3400_s0 + $0x148] sm:$0xff]  ;;  %v260_v61 = vmul.f32 %v1981_v16, %v60_v18  ;;  %v264_v3 = vmul.f32 %v2002_v22, %v64_v2 }
  0x59   :  { %v262_v10 = vmul.f32 %v2007_v24, %v62_v60  ;;  %v270_v50 = vmul.f32 %v2002_v22, %v70_v12  ;;  %v268_v55 = vmul.f32 %v2007_v24, %v68_v38 }
  0x5a   :  { %1839 = vmatpush.bf16.msra.mxu3 %v2079_v56  ;;  %v900_v56 = vpack.c.bf16 %v795_v62, %v792_v7  ;;  %v263_v7 = vmul.f32 %v1981_v16, %v63_v52  ;;  %v404_v62 = vmul.f32 %v1981_v16, %v204_v6  ;;  %v464_v20 = vadd.f32 %v2030_v35, %v264_v3 }
  0x5b   :  { %v470_v6 = vadd.f32 %v2030_v35, %v270_v50  ;;  %v468_v58 = vadd.f32 %v2038_v40, %v268_v55  ;;  %v2509_v50 = vld [vmem:[%s3405_s5] ss:$0 sm:$0xff] }
  0x5c   :  { %v463_v13 = vadd.f32 %v2022_v30, %v263_v7  ;;  %v604_v14 = vadd.f32 %v2022_v30, %v404_v62  ;;  %v664_v28 = vmax.f32 %v464_v20, %v2055_v45  ;;  %v172_v20 = vld [vmem:[%s3400_s0 + $0x4a0] sm:$0xff] }
  0x5d   :  { %v670_v62 = vmax.f32 %v470_v6, %v2055_v45 }
  0x5e   :  { %1840 = vmatpush.bf16.msra.mxu3 %v2102_v9  ;;  %v201_v9 = vld [vmem:[%s3400_s0 + $0x588] sm:$0xff]  ;;  %v663_v25 = vmax.f32 %v463_v13, %v2053_v44  ;;  %v804_v5 = vmax.f32 %v604_v14, %v2053_v44 }
  0x5f   :  { %v401_v29 = vmul.f32 %v1981_v16, %v201_v9  ;;  %v462_v9 = vadd.f32 %v2038_v40, %v262_v10 }
  0x61   :  { %1136 = vmatmul.bf16.gmra.mxu0 %v828_v11  ;;  %1256 = vmatmul.bf16.gmra.mxu3 %v900_v56  ;;  %v601_v37 = vadd.f32 %v2022_v30, %v401_v29  ;;  %v265_v11 = vmul.f32 %v2007_v24, %v65_v42  ;;  %v460_v56 = vadd.f32 %v2022_v30, %v260_v61 }
  0x62   :  { %1305 = vmatmul.bf16.gmra.mxu1 %v829_v15  ;;  %v607_v15 = vadd.f32 %v2022_v30, %v407_v63  ;;  %v662_v29 = vmax.f32 %v462_v9, %v2067_v54  ;;  %v668_v63 = vmax.f32 %v468_v58, %v2067_v54  ;;  %v76_v9 = vld [vmem:[%s3400_s0 + $0x1a0] sm:$0xff]  ;;  %v82_v58 = vld [vmem:[%s3400_s0 + $0x1d0] sm:$0xff] }
  0x63   :  { %1474 = vmatmul.bf16.gmra.mxu2 %v830_v19  ;;  %v801_v47 = vmax.f32 %v601_v37, %v2053_v44  ;;  %v461_v19 = vadd.f32 %v2030_v35, %v261_v0  ;;  %v465_v21 = vadd.f32 %v2038_v40, %v265_v11  ;;  %v660_v23 = vmax.f32 %v460_v56, %v2053_v44  ;;  %v210_v37 = vld [vmem:[%s3400_s0 + $0x5d0] sm:$0xff]  ;;  %v72_v11 = vld [vmem:[%s3400_s0 + $0x180] sm:$0xff]  ;;  %v75_v56 = vld [vmem:[%s3400_s0 + $0x198] sm:$0xff] }
  0x64   :  { %v807_v26 = vmax.f32 %v607_v15, %v2053_v44  ;;  %v73_v15 = vld [vmem:[%s3400_s0 + $0x188] sm:$0xff] }
  0x65   :  { %v903_v51 = vpack.c.bf16 %v801_v47, %v798_v46  ;;  %v661_v27 = vmax.f32 %v461_v19, %v2055_v45  ;;  %v665_v17 = vmax.f32 %v465_v21, %v2067_v54  ;;  %v834_v31 = vpack.c.bf16 %v663_v25, %v660_v23  ;;  %v169_v19 = vld [vmem:[%s3400_s0 + $0x488] sm:$0xff]  ;;  %v74_v21 = vld [vmem:[%s3400_s0 + $0x190] sm:$0xff] }
  0x66   :  { %v906_v32 = vpack.c.bf16 %v807_v26, %v804_v5  ;;  %v269_v46 = vmul.f32 %v1981_v16, %v69_v8  ;;  %v410_v47 = vmul.f32 %v1981_v16, %v210_v37  ;;  %v77_v23 = vld [vmem:[%s3400_s0 + $0x1a8] sm:$0xff]  ;;  %v272_v25 = vmul.f32 %v1981_v16, %v72_v11 }
  0x67   :  { %v835_v34 = vpack.c.bf16 %v664_v28, %v661_v27  ;;  %v836_v36 = vpack.c.bf16 %v665_v17, %v662_v29  ;;  %v275_v5 = vmul.f32 %v1981_v16, %v75_v56  ;;  %v273_v26 = vmul.f32 %v2002_v22, %v73_v15 }
  0x68   :  { %v469_v18 = vadd.f32 %v2022_v30, %v269_v46  ;;  %v610_v52 = vadd.f32 %v2022_v30, %v410_v47  ;;  %v369_v27 = vmul.f32 %v2002_v22, %v169_v19  ;;  %v372_v28 = vmul.f32 %v2002_v22, %v172_v20 }
  0x69   :  { %v276_v29 = vmul.f32 %v2002_v22, %v76_v9  ;;  %v274_v17 = vmul.f32 %v2007_v24, %v74_v21  ;;  %v475_v33 = vadd.f32 %v2022_v30, %v275_v5 }
  0x6a   :  { %v669_v60 = vmax.f32 %v469_v18, %v2053_v44  ;;  %v810_v42 = vmax.f32 %v610_v52, %v2053_v44  ;;  %v569_v8 = vadd.f32 %v2030_v35, %v369_v27  ;;  %v81_v18 = vld [vmem:[%s3400_s0 + $0x1c8] sm:$0xff]  ;;  %v79_v52 = vld [vmem:[%s3400_s0 + $0x1b8] sm:$0xff] }
  0x6b   :  { %v476_v37 = vadd.f32 %v2030_v35, %v276_v29  ;;  %v474_v1 = vadd.f32 %v2038_v40, %v274_v17  ;;  %v675_v38 = vmax.f32 %v475_v33, %v2053_v44 }
  0x6d   :  { %v676_v47 = vmax.f32 %v476_v37, %v2055_v45 }
  0x71   :  { %1141 = vmatmul.bf16.gmra.mxu0 %v831_v4  ;;  %1261 = vmatmul.bf16.gmra.mxu3 %v903_v51  ;;  %v271_v4 = vmul.f32 %v2007_v24, %v71_v39  ;;  %v466_v51 = vadd.f32 %v2022_v30, %v266_v43  ;;  %v769_v39 = vmax.f32 %v569_v8, %v2055_v45 }
  0x72   :  { %1310 = vmatmul.bf16.gmra.mxu1 %v832_v53  ;;  %v613_v53 = vadd.f32 %v2022_v30, %v413_v48  ;;  %v674_v48 = vmax.f32 %v474_v1, %v2067_v54 }
  0x73   :  { %1479 = vmatmul.bf16.gmra.mxu2 %v833_v57  ;;  %v467_v57 = vadd.f32 %v2030_v35, %v267_v49  ;;  %v471_v59 = vadd.f32 %v2038_v40, %v271_v4  ;;  %v666_v2 = vmax.f32 %v466_v51, %v2053_v44  ;;  %v78_v51 = vld [vmem:[%s3400_s0 + $0x1b0] sm:$0xff] }
  0x74   :  { %v813_v61 = vmax.f32 %v613_v53, %v2053_v44 }
  0x75   :  { %v667_v7 = vmax.f32 %v467_v57, %v2055_v45  ;;  %v671_v0 = vmax.f32 %v471_v59, %v2067_v54  ;;  %v837_v3 = vpack.c.bf16 %v669_v60, %v666_v2  ;;  %v175_v59 = vld [vmem:[%s3400_s0 + $0x4b8] sm:$0xff]  ;;  %v178_v2 = vld [vmem:[%s3400_s0 + $0x4d0] sm:$0xff] }
  0x76   :  { %v909_v10 = vpack.c.bf16 %v813_v61, %v810_v42  ;;  %v80_v61 = vld [vmem:[%s3400_s0 + $0x1c0] sm:$0xff]  ;;  %v378_v11 = vmul.f32 %v2002_v22, %v178_v2  ;;  %v89_v2 = vld [vmem:[%s3400_s0 + $0x208] sm:$0xff] }
  0x77   :  { %v838_v13 = vpack.c.bf16 %v670_v62, %v667_v7  ;;  %v839_v14 = vpack.c.bf16 %v671_v0, %v668_v63  ;;  %v83_v7 = vld [vmem:[%s3400_s0 + $0x1d8] sm:$0xff]  ;;  %v278_v62 = vmul.f32 %v1981_v16, %v78_v51  ;;  %v281_v63 = vmul.f32 %v1981_v16, %v81_v18 }
  0x78   :  { %v279_v0 = vmul.f32 %v2002_v22, %v79_v52  ;;  %v88_v52 = vld [vmem:[%s3400_s0 + $0x200] sm:$0xff] }
  0x79   :  { %v478_v19 = vadd.f32 %v2022_v30, %v278_v62  ;;  %v481_v9 = vadd.f32 %v2022_v30, %v281_v63 }
  0x7a   :  { %v479_v21 = vadd.f32 %v2030_v35, %v279_v0 }
  0x7b   :  { %v681_v33 = vmax.f32 %v481_v9, %v2053_v44 }
  0x81   :  { %1146 = vmatmul.bf16.gmra.mxu0 %v834_v31  ;;  %1266 = vmatmul.bf16.gmra.mxu3 %v906_v32  ;;  %v277_v31 = vmul.f32 %v2007_v24, %v77_v23  ;;  %v472_v32 = vadd.f32 %v2022_v30, %v272_v25  ;;  %v578_v25 = vadd.f32 %v2030_v35, %v378_v11 }
  0x82   :  { %1315 = vmatmul.bf16.gmra.mxu1 %v835_v34  ;;  %v572_v34 = vadd.f32 %v2030_v35, %v372_v28 }
  0x83   :  { %1484 = vmatmul.bf16.gmra.mxu2 %v836_v36  ;;  %v473_v36 = vadd.f32 %v2030_v35, %v273_v26  ;;  %v477_v41 = vadd.f32 %v2038_v40, %v277_v31  ;;  %v672_v12 = vmax.f32 %v472_v32, %v2053_v44  ;;  %v678_v32 = vmax.f32 %v478_v19, %v2053_v44 }
  0x84   :  { %v772_v43 = vmax.f32 %v572_v34, %v2055_v45  ;;  %v778_v34 = vmax.f32 %v578_v25, %v2055_v45 }
  0x85   :  { %v673_v46 = vmax.f32 %v473_v36, %v2055_v45  ;;  %v677_v49 = vmax.f32 %v477_v41, %v2067_v54  ;;  %v840_v55 = vpack.c.bf16 %v675_v38, %v672_v12  ;;  %v679_v36 = vmax.f32 %v479_v21, %v2055_v45 }
  0x86   :  { %v889_v4 = vpack.c.bf16 %v772_v43, %v769_v39  ;;  %v843_v43 = vpack.c.bf16 %v681_v33, %v678_v32 }
  0x87   :  { %v841_v57 = vpack.c.bf16 %v676_v47, %v673_v46  ;;  %v842_v6 = vpack.c.bf16 %v677_v49, %v674_v48  ;;  %v84_v47 = vld [vmem:[%s3400_s0 + $0x1e0] sm:$0xff]  ;;  %v87_v48 = vld [vmem:[%s3400_s0 + $0x1f8] sm:$0xff]  ;;  %v85_v49 = vld [vmem:[%s3400_s0 + $0x1e8] sm:$0xff] }
  0x91   :  { %1151 = vmatmul.bf16.gmra.mxu0 %v837_v3  ;;  %1271 = vmatmul.bf16.gmra.mxu3 %v909_v10  ;;  %v282_v3 = vmul.f32 %v2002_v22, %v82_v58  ;;  %v375_v10 = vmul.f32 %v2002_v22, %v175_v59  ;;  %v86_v59 = vld [vmem:[%s3400_s0 + $0x1f0] sm:$0xff] }
  0x92   :  { %1320 = vmatmul.bf16.gmra.mxu1 %v838_v13  ;;  %v280_v13 = vmul.f32 %v2007_v24, %v80_v61  ;;  %v285_v61 = vmul.f32 %v2002_v22, %v85_v49 }
  0x93   :  { %1489 = vmatmul.bf16.gmra.mxu2 %v839_v14  ;;  %v283_v14 = vmul.f32 %v2007_v24, %v83_v7  ;;  %v575_v23 = vadd.f32 %v2030_v35, %v375_v10  ;;  %v482_v27 = vadd.f32 %v2030_v35, %v282_v3  ;;  %v288_v7 = vmul.f32 %v2002_v22, %v88_v52  ;;  %v190_v52 = vld [vmem:[%s3400_s0 + $0x530] sm:$0xff] }
  0x94   :  { %v480_v28 = vadd.f32 %v2038_v40, %v280_v13  ;;  %v286_v3 = vmul.f32 %v2007_v24, %v86_v59  ;;  %v289_v10 = vmul.f32 %v2007_v24, %v89_v2  ;;  %v485_v19 = vadd.f32 %v2030_v35, %v285_v61 }
  0x95   :  { %v483_v29 = vadd.f32 %v2038_v40, %v283_v14  ;;  %v775_v8 = vmax.f32 %v575_v23, %v2055_v45  ;;  %v682_v37 = vmax.f32 %v482_v27, %v2055_v45  ;;  %v488_v25 = vadd.f32 %v2030_v35, %v288_v7 }
  0x96   :  { %v680_v1 = vmax.f32 %v480_v28, %v2067_v54  ;;  %v685_v33 = vmax.f32 %v485_v19, %v2055_v45  ;;  %v390_v7 = vmul.f32 %v2002_v22, %v190_v52  ;;  %v196_v52 = vld [vmem:[%s3400_s0 + $0x560] sm:$0xff] }
  0x97   :  { %v683_v41 = vmax.f32 %v483_v29, %v2067_v54  ;;  %v892_v46 = vpack.c.bf16 %v778_v34, %v775_v8  ;;  %v844_v51 = vpack.c.bf16 %v682_v37, %v679_v36  ;;  %v688_v8 = vmax.f32 %v488_v25, %v2055_v45 }
  0x99   :  { %v845_v18 = vpack.c.bf16 %v683_v41, %v680_v1 }
  0x9e   :  { %v1117_v53 = vpop.f32.mrf.mxu0 }
  0x9f   :  { %v1118_v60 = vadd.f32 %v2509_v50, %v1117_v53  ;;  %v1286_v42 = vpop.f32.mrf.mxu1  ;;  %v181_v53 = vld [vmem:[%s3400_s0 + $0x4e8] sm:$0xff] }
  0xa0   :  { %v381_v62 = vmul.f32 %v2002_v22, %v181_v53 }
  0xa1   :  { %1156 = vmatmul.bf16.gmra.mxu0 %v840_v55  ;;  %1405 = vmatmul.bf16.vlgmr.msrb.gmra.mxu3 %v889_v4  ;;  %v1287_v56 = vadd.f32 %v1286_v42, %v1118_v60  ;;  %v284_v60 = vmul.f32 %v1981_v16, %v84_v47  ;;  %v287_v42 = vmul.f32 %v1981_v16, %v87_v48  ;;  %v91_v47 = vld [vmem:[%s3400_s0 + $0x218] sm:$0xff] }
  0xa2   :  { %1325 = vmatmul.bf16.gmra.mxu1 %v841_v57  ;;  %v184_v57 = vld [vmem:[%s3400_s0 + $0x500] sm:$0xff] }
  0xa3   :  { %1494 = vmatmul.bf16.gmra.mxu2 %v842_v6  ;;  %v384_v63 = vmul.f32 %v2002_v22, %v184_v57  ;;  %v487_v14 = vadd.f32 %v2022_v30, %v287_v42 }
  0xa4   :  { %v2544_v15 = vpop.f32.mrf.mxu3 }
  0xa5   :  { %v584_v9 = vadd.f32 %v2030_v35, %v384_v63 }
  0xa6   :  { %v1455_v20 = vpop.f32.mrf.mxu2  ;;  %v1119_v26 = vpop.f32.mrf.mxu0 }
  0xa7   :  { %v1456_v5 = vadd.f32 %v1455_v20, %v1287_v56  ;;  %v1288_v17 = vpop.f32.mrf.mxu1  ;;  %v1120_v31 = vadd.f32 %v2509_v50, %v1119_v26  ;;  %v484_v56 = vadd.f32 %v2022_v30, %v284_v60  ;;  %v581_v20 = vadd.f32 %v2030_v35, %v381_v62 }
  0xa8   :  { %v489_v26 = vadd.f32 %v2038_v40, %v289_v10  ;;  %v784_v32 = vmax.f32 %v584_v9, %v2055_v45  ;;  %v291_v60 = vmul.f32 %v2002_v22, %v91_v47  ;;  %v97_v47 = vld [vmem:[%s3400_s0 + $0x248] sm:$0xff] }
  0xa9   :  { %1615 = vst [vmem:[#allocation2] sm:$0xff] %v1456_v5  ;;  %v1289_v12 = vadd.f32 %v1288_v17, %v1120_v31  ;;  %v486_v5 = vadd.f32 %v2038_v40, %v286_v3  ;;  %v684_v29 = vmax.f32 %v484_v56, %v2053_v44  ;;  %v687_v17 = vmax.f32 %v487_v14, %v2053_v44 }
  0xaa   :  { %v781_v31 = vmax.f32 %v581_v20, %v2055_v45  ;;  %v689_v36 = vmax.f32 %v489_v26, %v2067_v54  ;;  %v491_v14 = vadd.f32 %v2030_v35, %v291_v60  ;;  %v590_v20 = vadd.f32 %v2030_v35, %v390_v7 }
  0xab   :  { %v686_v34 = vmax.f32 %v486_v5, %v2067_v54  ;;  %v297_v60 = vmul.f32 %v2002_v22, %v97_v47  ;;  %v396_v7 = vmul.f32 %v2002_v22, %v196_v52  ;;  %v102_v47 = vld [vmem:[%s3400_s0 + $0x270] sm:$0xff] }
  0xac   :  { %v2563_v38 = vpop.f32.mrf.mxu3  ;;  %v106_v52 = vld [vmem:[%s3400_s0 + $0x290] sm:$0xff] }
  0xae   :  { %v1457_v39 = vpop.f32.mrf.mxu2  ;;  %v1122_v4 = vpop.f32.mrf.mxu0 }
  0xaf   :  { %v1458_v55 = vadd.f32 %v1457_v39, %v1289_v12  ;;  %v1123_v6 = vadd.f32 %v2509_v50, %v1122_v4  ;;  %v1291_v58 = vpop.f32.mrf.mxu1  ;;  %v846_v12 = vpack.c.bf16 %v687_v17, %v684_v29  ;;  %v895_v39 = vpack.c.bf16 %v784_v32, %v781_v31 }
  0xb0   :  { %v848_v4 = vpack.c.bf16 %v689_v36, %v686_v34  ;;  %v790_v31 = vmax.f32 %v590_v20, %v2055_v45  ;;  %v691_v32 = vmax.f32 %v491_v14, %v2055_v45 }
  0xb1   :  { %1616 = vst [vmem:[#allocation2 + $0x8] sm:$0xff] %v1458_v55  ;;  %1161 = vmatmul.bf16.gmra.mxu0 %v843_v43  ;;  %1410 = vmatmul.bf16.gmra.mxu3 %v892_v46  ;;  %v1292_v0 = vadd.f32 %v1291_v58, %v1123_v6  ;;  %v90_v43 = vld [vmem:[%s3400_s0 + $0x210] sm:$0xff]  ;;  %v93_v46 = vld [vmem:[%s3400_s0 + $0x228] sm:$0xff]  ;;  %v847_v55 = vpack.c.bf16 %v688_v8, %v685_v33  ;;  %v92_v6 = vld [vmem:[%s3400_s0 + $0x220] sm:$0xff] }
  0xb2   :  { %1330 = vmatmul.bf16.gmra.mxu1 %v844_v51  ;;  %v94_v51 = vld [vmem:[%s3400_s0 + $0x230] sm:$0xff]  ;;  %v95_v58 = vld [vmem:[%s3400_s0 + $0x238] sm:$0xff]  ;;  %v290_v59 = vmul.f32 %v1981_v16, %v90_v43  ;;  %v293_v2 = vmul.f32 %v1981_v16, %v93_v46  ;;  %v292_v63 = vmul.f32 %v2007_v24, %v92_v6  ;;  %v96_v43 = vld [vmem:[%s3400_s0 + $0x240] sm:$0xff] }
  0xb3   :  { %1499 = vmatmul.bf16.gmra.mxu2 %v845_v18  ;;  %v187_v18 = vld [vmem:[%s3400_s0 + $0x518] sm:$0xff]  ;;  %v294_v42 = vmul.f32 %v2002_v22, %v94_v51  ;;  %v100_v51 = vld [vmem:[%s3400_s0 + $0x260] sm:$0xff]  ;;  %v98_v6 = vld [vmem:[%s3400_s0 + $0x250] sm:$0xff] }
  0xb4   :  { %v2598_v11 = vpop.f32.mrf.mxu3  ;;  %v387_v61 = vmul.f32 %v2002_v22, %v187_v18  ;;  %v490_v10 = vadd.f32 %v2022_v30, %v290_v59  ;;  %v492_v25 = vadd.f32 %v2038_v40, %v292_v63  ;;  %v99_v46 = vld [vmem:[%s3400_s0 + $0x258] sm:$0xff]  ;;  %v193_v18 = vld [vmem:[%s3400_s0 + $0x548] sm:$0xff]  ;;  %v296_v59 = vmul.f32 %v1981_v16, %v96_v43 }
  0xb5   :  { %v298_v63 = vmul.f32 %v2007_v24, %v98_v6 }
  0xb6   :  { %v1460_v13 = vpop.f32.mrf.mxu2  ;;  %v1124_v23 = vpop.f32.mrf.mxu0  ;;  %v587_v19 = vadd.f32 %v2030_v35, %v387_v61  ;;  %v692_v8 = vmax.f32 %v492_v25, %v2067_v54  ;;  %v393_v61 = vmul.f32 %v2002_v22, %v193_v18 }
  0xb7   :  { %v1461_v21 = vadd.f32 %v1460_v13, %v1292_v0  ;;  %v1293_v27 = vpop.f32.mrf.mxu1  ;;  %v1125_v28 = vadd.f32 %v2509_v50, %v1124_v23  ;;  %v295_v0 = vmul.f32 %v2007_v24, %v95_v58  ;;  %v493_v13 = vadd.f32 %v2022_v30, %v293_v2  ;;  %v101_v58 = vld [vmem:[%s3400_s0 + $0x268] sm:$0xff] }
  0xb8   :  { %v494_v23 = vadd.f32 %v2030_v35, %v294_v42  ;;  %v787_v17 = vmax.f32 %v587_v19, %v2055_v45  ;;  %v299_v2 = vmul.f32 %v1981_v16, %v99_v46  ;;  %v300_v42 = vmul.f32 %v2002_v22, %v100_v51 }
  0xb9   :  { %1617 = vst [vmem:[#allocation2 + $0x10] sm:$0xff] %v1461_v21  ;;  %v1294_v37 = vadd.f32 %v1293_v27, %v1125_v28  ;;  %v495_v5 = vadd.f32 %v2038_v40, %v295_v0  ;;  %v690_v28 = vmax.f32 %v490_v10, %v2053_v44  ;;  %v693_v29 = vmax.f32 %v493_v13, %v2053_v44 }
  0xba   :  { %v694_v33 = vmax.f32 %v494_v23, %v2055_v45  ;;  %v301_v0 = vmul.f32 %v2007_v24, %v101_v58  ;;  %v499_v14 = vadd.f32 %v2022_v30, %v299_v2  ;;  %v497_v19 = vadd.f32 %v2030_v35, %v297_v60  ;;  %v107_v2 = vld [vmem:[%s3400_s0 + $0x298] sm:$0xff] }
  0xbb   :  { %v695_v34 = vmax.f32 %v495_v5, %v2067_v54  ;;  %v593_v20 = vadd.f32 %v2030_v35, %v393_v61  ;;  %v500_v25 = vadd.f32 %v2030_v35, %v300_v42  ;;  %v498_v5 = vadd.f32 %v2038_v40, %v298_v63 }
  0xbc   :  { %v2617_v1 = vpop.f32.mrf.mxu3  ;;  %v302_v60 = vmul.f32 %v1981_v16, %v102_v47 }
  0xbe   :  { %v1462_v41 = vpop.f32.mrf.mxu2  ;;  %v1127_v49 = vpop.f32.mrf.mxu0 }
  0xbf   :  { %v1463_v48 = vadd.f32 %v1462_v41, %v1294_v37  ;;  %v1128_v53 = vadd.f32 %v2509_v50, %v1127_v49  ;;  %v1296_v57 = vpop.f32.mrf.mxu1 }
  0xc1   :  { %1618 = vst [vmem:[#allocation2 + $0x18] sm:$0xff] %v1463_v48  ;;  %1166 = vmatmul.bf16.gmra.mxu0 %v846_v12  ;;  %1415 = vmatmul.bf16.gmra.mxu3 %v895_v39  ;;  %v1297_v62 = vadd.f32 %v1296_v57, %v1128_v53  ;;  %v849_v12 = vpack.c.bf16 %v693_v29, %v690_v28 }
  0xc2   :  { %1335 = vmatmul.bf16.gmra.mxu1 %v847_v55  ;;  %v898_v39 = vpack.c.bf16 %v790_v31, %v787_v17  ;;  %v850_v55 = vpack.c.bf16 %v694_v33, %v691_v32  ;;  %v699_v17 = vmax.f32 %v499_v14, %v2053_v44  ;;  %v793_v31 = vmax.f32 %v593_v20, %v2055_v45 }
  0xc3   :  { %1504 = vmatmul.bf16.gmra.mxu2 %v848_v4  ;;  %v851_v4 = vpack.c.bf16 %v695_v34, %v692_v8  ;;  %v697_v33 = vmax.f32 %v497_v19, %v2055_v45  ;;  %v700_v8 = vmax.f32 %v500_v25, %v2055_v45  ;;  %v698_v34 = vmax.f32 %v498_v5, %v2067_v54 }
  0xc4   :  { %v2652_v3 = vpop.f32.mrf.mxu3  ;;  %v502_v19 = vadd.f32 %v2022_v30, %v302_v60 }
  0xc5   :  { %v853_v51 = vpack.c.bf16 %v700_v8, %v697_v33 }
  0xc6   :  { %v1465_v56 = vpop.f32.mrf.mxu2  ;;  %v1129_v21 = vpop.f32.mrf.mxu0 }
  0xc7   :  { %v1466_v9 = vadd.f32 %v1465_v56, %v1297_v62  ;;  %v1298_v26 = vpop.f32.mrf.mxu1  ;;  %v1130_v27 = vadd.f32 %v2509_v50, %v1129_v21  ;;  %v496_v56 = vadd.f32 %v2022_v30, %v296_v59  ;;  %v104_v59 = vld [vmem:[%s3400_s0 + $0x280] sm:$0xff] }
  0xc9   :  { %1619 = vst [vmem:[#allocation2 + $0x20] sm:$0xff] %v1466_v9  ;;  %v1299_v36 = vadd.f32 %v1298_v26, %v1130_v27  ;;  %v596_v9 = vadd.f32 %v2030_v35, %v396_v7  ;;  %v501_v26 = vadd.f32 %v2038_v40, %v301_v0  ;;  %v696_v29 = vmax.f32 %v496_v56, %v2053_v44 }
  0xca   :  { %v306_v7 = vmul.f32 %v2002_v22, %v106_v52  ;;  %v304_v56 = vmul.f32 %v2007_v24, %v104_v59  ;;  %v205_v59 = vld [vmem:[%s3400_s0 + $0x5a8] sm:$0xff] }
  0xcb   :  { %v796_v32 = vmax.f32 %v596_v9, %v2055_v45  ;;  %v852_v43 = vpack.c.bf16 %v699_v17, %v696_v29 }
  0xcc   :  { %v2671_v37 = vpop.f32.mrf.mxu3 }
  0xcd   :  { %v901_v46 = vpack.c.bf16 %v796_v32, %v793_v31  ;;  %v702_v32 = vmax.f32 %v502_v19, %v2053_v44 }
  0xce   :  { %v1467_v41 = vpop.f32.mrf.mxu2  ;;  %v1132_v49 = vpop.f32.mrf.mxu0 }
  0xcf   :  { %v1468_v48 = vadd.f32 %v1467_v41, %v1299_v36  ;;  %v1133_v53 = vadd.f32 %v2509_v50, %v1132_v49  ;;  %v1301_v57 = vpop.f32.mrf.mxu1  ;;  %v701_v36 = vmax.f32 %v501_v26, %v2067_v54  ;;  %v103_v49 = vld [vmem:[%s3400_s0 + $0x278] sm:$0xff] }
  0xd0   :  { %v303_v61 = vmul.f32 %v2002_v22, %v103_v49 }
  0xd1   :  { %1620 = vst [vmem:[#allocation2 + $0x28] sm:$0xff] %v1468_v48  ;;  %1171 = vmatmul.bf16.gmra.mxu0 %v849_v12  ;;  %1420 = vmatmul.bf16.gmra.mxu3 %v898_v39  ;;  %v1302_v62 = vadd.f32 %v1301_v57, %v1133_v53  ;;  %v105_v48 = vld [vmem:[%s3400_s0 + $0x288] sm:$0xff]  ;;  %v854_v18 = vpack.c.bf16 %v701_v36, %v698_v34  ;;  %v199_v53 = vld [vmem:[%s3400_s0 + $0x578] sm:$0xff]  ;;  %v202_v57 = vld [vmem:[%s3400_s0 + $0x590] sm:$0xff] }
  0xd2   :  { %1340 = vmatmul.bf16.gmra.mxu1 %v850_v55  ;;  %v305_v42 = vmul.f32 %v1981_v16, %v105_v48  ;;  %v402_v63 = vmul.f32 %v2002_v22, %v202_v57 }
  0xd3   :  { %1509 = vmatmul.bf16.gmra.mxu2 %v851_v4 }
  0xd4   :  { %v2706_v10 = vpop.f32.mrf.mxu3  ;;  %v505_v9 = vadd.f32 %v2022_v30, %v305_v42  ;;  %v602_v25 = vadd.f32 %v2030_v35, %v402_v63 }
  0xd6   :  { %v1470_v13 = vpop.f32.mrf.mxu2  ;;  %v1134_v23 = vpop.f32.mrf.mxu0  ;;  %v705_v33 = vmax.f32 %v505_v9, %v2053_v44  ;;  %v802_v34 = vmax.f32 %v602_v25, %v2055_v45 }
  0xd7   :  { %v1471_v21 = vadd.f32 %v1470_v13, %v1302_v62  ;;  %v1303_v27 = vpop.f32.mrf.mxu1  ;;  %v1135_v28 = vadd.f32 %v2509_v50, %v1134_v23  ;;  %v399_v62 = vmul.f32 %v2002_v22, %v199_v53  ;;  %v307_v13 = vmul.f32 %v2007_v24, %v107_v2  ;;  %v208_v2 = vld [vmem:[%s3400_s0 + $0x5c0] sm:$0xff] }
  0xd8   :  { %v855_v49 = vpack.c.bf16 %v705_v33, %v702_v32  ;;  %v408_v19 = vmul.f32 %v2002_v22, %v208_v2 }
  0xd9   :  { %1621 = vst [vmem:[#allocation2 + $0x30] sm:$0xff] %v1471_v21  ;;  %v1304_v41 = vadd.f32 %v1303_v27, %v1135_v28  ;;  %v503_v21 = vadd.f32 %v2030_v35, %v303_v61  ;;  %v599_v23 = vadd.f32 %v2030_v35, %v399_v62  ;;  %v506_v27 = vadd.f32 %v2030_v35, %v306_v7  ;;  %v110_v61 = vld [vmem:[%s3400_s0 + $0x2b0] sm:$0xff]  ;;  %v113_v7 = vld [vmem:[%s3400_s0 + $0x2c8] sm:$0xff] }
  0xda   :  { %v504_v28 = vadd.f32 %v2038_v40, %v304_v56  ;;  %v507_v29 = vadd.f32 %v2038_v40, %v307_v13  ;;  %v405_v13 = vmul.f32 %v2002_v22, %v205_v59  ;;  %v310_v9 = vmul.f32 %v2007_v24, %v110_v61  ;;  %v115_v59 = vld [vmem:[%s3400_s0 + $0x2d8] sm:$0xff] }
  0xdb   :  { %v799_v8 = vmax.f32 %v599_v23, %v2055_v45  ;;  %v703_v36 = vmax.f32 %v503_v21, %v2055_v45  ;;  %v313_v21 = vmul.f32 %v2007_v24, %v113_v7  ;;  %v118_v7 = vld [vmem:[%s3400_s0 + $0x2f0] sm:$0xff] }
  0xdc   :  { %v2725_v12 = vpop.f32.mrf.mxu3  ;;  %v510_v33 = vadd.f32 %v2038_v40, %v310_v9 }
  0xde   :  { %v1472_v39 = vpop.f32.mrf.mxu2  ;;  %v1137_v4 = vpop.f32.mrf.mxu0 }
  0xdf   :  { %v1473_v55 = vadd.f32 %v1472_v39, %v1304_v41  ;;  %v1138_v6 = vadd.f32 %v2509_v50, %v1137_v4  ;;  %v1306_v58 = vpop.f32.mrf.mxu1  ;;  %v706_v41 = vmax.f32 %v506_v27, %v2055_v45  ;;  %v704_v39 = vmax.f32 %v504_v28, %v2067_v54  ;;  %v108_v4 = vld [vmem:[%s3400_s0 + $0x2a0] sm:$0xff] }
  0xe0   :  { %v308_v62 = vmul.f32 %v1981_v16, %v108_v4  ;;  %v605_v28 = vadd.f32 %v2030_v35, %v405_v13  ;;  %v116_v13 = vld [vmem:[%s3400_s0 + $0x2e0] sm:$0xff] }
  0xe1   :  { %1622 = vst [vmem:[#allocation2 + $0x38] sm:$0xff] %v1473_v55  ;;  %1176 = vmatmul.bf16.gmra.mxu0 %v852_v43  ;;  %1425 = vmatmul.bf16.gmra.mxu3 %v901_v46  ;;  %v1307_v0 = vadd.f32 %v1306_v58, %v1138_v6  ;;  %v707_v43 = vmax.f32 %v507_v29, %v2067_v54  ;;  %v112_v58 = vld [vmem:[%s3400_s0 + $0x2c0] sm:$0xff] }
  0xe2   :  { %1345 = vmatmul.bf16.gmra.mxu1 %v853_v51  ;;  %v904_v55 = vpack.c.bf16 %v802_v34, %v799_v8  ;;  %v111_v51 = vld [vmem:[%s3400_s0 + $0x2b8] sm:$0xff]  ;;  %v856_v57 = vpack.c.bf16 %v706_v41, %v703_v36  ;;  %v312_v56 = vmul.f32 %v2002_v22, %v112_v58  ;;  %v508_v25 = vadd.f32 %v2022_v30, %v308_v62  ;;  %v117_v58 = vld [vmem:[%s3400_s0 + $0x2e8] sm:$0xff] }
  0xe3   :  { %1514 = vmatmul.bf16.gmra.mxu2 %v854_v18  ;;  %v109_v18 = vld [vmem:[%s3400_s0 + $0x2a8] sm:$0xff]  ;;  %v857_v6 = vpack.c.bf16 %v707_v43, %v704_v39  ;;  %v311_v63 = vmul.f32 %v1981_v16, %v111_v51  ;;  %v608_v29 = vadd.f32 %v2030_v35, %v408_v19  ;;  %v513_v8 = vadd.f32 %v2038_v40, %v313_v21  ;;  %v211_v62 = vld [vmem:[%s3400_s0 + $0x5d8] sm:$0xff] }
  0xe4   :  { %v2760_v14 = vpop.f32.mrf.mxu3  ;;  %v512_v32 = vadd.f32 %v2030_v35, %v312_v56  ;;  %v708_v41 = vmax.f32 %v508_v25, %v2053_v44  ;;  %v805_v43 = vmax.f32 %v605_v28, %v2055_v45  ;;  %v119_v19 = vld [vmem:[%s3400_s0 + $0x2f8] sm:$0xff]  ;;  %v317_v9 = vmul.f32 %v1981_v16, %v117_v58 }
  0xe5   :  { %v713_v4 = vmax.f32 %v513_v8, %v2067_v54  ;;  %v315_v21 = vmul.f32 %v2002_v22, %v115_v59  ;;  %v318_v25 = vmul.f32 %v2002_v22, %v118_v7  ;;  %v316_v28 = vmul.f32 %v2007_v24, %v116_v13 }
  0xe6   :  { %v1475_v20 = vpop.f32.mrf.mxu2  ;;  %v1139_v26 = vpop.f32.mrf.mxu0 }
  0xe7   :  { %v1476_v5 = vadd.f32 %v1475_v20, %v1307_v0  ;;  %v1308_v17 = vpop.f32.mrf.mxu1  ;;  %v1140_v31 = vadd.f32 %v2509_v50, %v1139_v26  ;;  %v309_v0 = vmul.f32 %v2002_v22, %v109_v18  ;;  %v511_v26 = vadd.f32 %v2022_v30, %v311_v63  ;;  %v214_v63 = vld [vmem:[%s3400_s0 + $0x5f0] sm:$0xff] }
  0xe8   :  { %v515_v8 = vadd.f32 %v2030_v35, %v315_v21  ;;  %v170_v21 = vld [vmem:[%s3400_s0 + $0x490] sm:$0xff] }
  0xe9   :  { %1623 = vst [vmem:[#allocation2 + $0x40] sm:$0xff] %v1476_v5  ;;  %v1309_v46 = vadd.f32 %v1308_v17, %v1140_v31  ;;  %v509_v27 = vadd.f32 %v2030_v35, %v309_v0  ;;  %v711_v39 = vmax.f32 %v511_v26, %v2053_v44  ;;  %v414_v26 = vmul.f32 %v2002_v22, %v214_v63  ;;  %v123_v63 = vld [vmem:[%s3400_s0 + $0x318] sm:$0xff] }
  0xec   :  { %v2779_v47 = vpop.f32.mrf.mxu3 }
  0xee   :  { %v1477_v48 = vpop.f32.mrf.mxu2  ;;  %v1142_v53 = vpop.f32.mrf.mxu0 }
  0xef   :  { %v1478_v52 = vadd.f32 %v1477_v48, %v1309_v46  ;;  %v1143_v60 = vadd.f32 %v2509_v50, %v1142_v53  ;;  %v1311_v42 = vpop.f32.mrf.mxu1  ;;  %v808_v46 = vmax.f32 %v608_v29, %v2055_v45  ;;  %v709_v48 = vmax.f32 %v509_v27, %v2055_v45 }
  0xf0   :  { %v858_v53 = vpack.c.bf16 %v711_v39, %v708_v41  ;;  %v319_v29 = vmul.f32 %v2007_v24, %v119_v19 }
  0xf1   :  { %1624 = vst [vmem:[#allocation2 + $0x48] sm:$0xff] %v1478_v52  ;;  %1181 = vmatmul.bf16.gmra.mxu0 %v855_v49  ;;  %1430 = vmatmul.bf16.gmra.mxu3 %v904_v55  ;;  %v1312_v20 = vadd.f32 %v1311_v42, %v1143_v60  ;;  %v712_v49 = vmax.f32 %v512_v32, %v2055_v45 }
  0xf2   :  { %1350 = vmatmul.bf16.gmra.mxu1 %v856_v57  ;;  %v710_v55 = vmax.f32 %v510_v33, %v2067_v54  ;;  %v907_v57 = vpack.c.bf16 %v808_v46, %v805_v43  ;;  %v517_v33 = vadd.f32 %v2022_v30, %v317_v9  ;;  %v518_v43 = vadd.f32 %v2030_v35, %v318_v25  ;;  %v124_v9 = vld [vmem:[%s3400_s0 + $0x320] sm:$0xff]  ;;  %v173_v25 = vld [vmem:[%s3400_s0 + $0x4a8] sm:$0xff] }
  0xf3   :  { %1519 = vmatmul.bf16.gmra.mxu2 %v857_v6  ;;  %v114_v6 = vld [vmem:[%s3400_s0 + $0x2d0] sm:$0xff]  ;;  %v859_v42 = vpack.c.bf16 %v712_v49, %v709_v48  ;;  %v516_v46 = vadd.f32 %v2038_v40, %v316_v28  ;;  %v519_v48 = vadd.f32 %v2038_v40, %v319_v29  ;;  %v125_v28 = vld [vmem:[%s3400_s0 + $0x328] sm:$0xff] }
  0xf4   :  { %v2814_v23 = vpop.f32.mrf.mxu3  ;;  %v860_v61 = vpack.c.bf16 %v713_v4, %v710_v55 }
  0xf5   :  { %v716_v58 = vmax.f32 %v516_v46, %v2067_v54  ;;  %v719_v59 = vmax.f32 %v519_v48, %v2067_v54 }
  0xf6   :  { %v1480_v5 = vpop.f32.mrf.mxu2  ;;  %v1144_v31 = vpop.f32.mrf.mxu0 }
  0xf7   :  { %v1481_v17 = vadd.f32 %v1480_v5, %v1312_v20  ;;  %v1313_v34 = vpop.f32.mrf.mxu1  ;;  %v1145_v36 = vadd.f32 %v2509_v50, %v1144_v31  ;;  %v314_v20 = vmul.f32 %v1981_v16, %v114_v6  ;;  %v411_v5 = vmul.f32 %v2002_v22, %v211_v62  ;;  %v120_v62 = vld [vmem:[%s3400_s0 + $0x300] sm:$0xff] }
  0xf8   :  { %v718_v6 = vmax.f32 %v518_v43, %v2055_v45  ;;  %v320_v29 = vmul.f32 %v1981_v16, %v120_v62 }
  0xf9   :  { %1625 = vst [vmem:[#allocation2 + $0x50] sm:$0xff] %v1481_v17  ;;  %v1314_v51 = vadd.f32 %v1313_v34, %v1145_v36  ;;  %v514_v31 = vadd.f32 %v2022_v30, %v314_v20  ;;  %v611_v34 = vadd.f32 %v2030_v35, %v411_v5  ;;  %v614_v36 = vadd.f32 %v2030_v35, %v414_v26 }
  0xfa   :  { %v863_v20 = vpack.c.bf16 %v719_v59, %v716_v58  ;;  %v520_v46 = vadd.f32 %v2022_v30, %v320_v29 }
  0xfb   :  { %v714_v4 = vmax.f32 %v514_v31, %v2053_v44  ;;  %v323_v31 = vmul.f32 %v1981_v16, %v123_v63 }
  0xfc   :  { %v2833_v18 = vpop.f32.mrf.mxu3 }
  0xfe   :  { %v1482_v52 = vpop.f32.mrf.mxu2  ;;  %v1147_v60 = vpop.f32.mrf.mxu0 }
  0xff   :  { %v1483_v2 = vadd.f32 %v1482_v52, %v1314_v51  ;;  %v1148_v0 = vadd.f32 %v2509_v50, %v1147_v60  ;;  %v1316_v56 = vpop.f32.mrf.mxu1  ;;  %v717_v51 = vmax.f32 %v517_v33, %v2053_v44  ;;  %v811_v52 = vmax.f32 %v611_v34, %v2055_v45 }
 0x100   :  { %v324_v33 = vmul.f32 %v2002_v22, %v124_v9  ;;  %v373_v34 = vmul.f32 %v2007_v24, %v173_v25 }
 0x101   :  { %1626 = vst [vmem:[#allocation2 + $0x58] sm:$0xff] %v1483_v2  ;;  %1186 = vmatmul.bf16.gmra.mxu0 %v858_v53  ;;  %1435 = vmatmul.bf16.gmra.mxu3 %v907_v57  ;;  %v1317_v27 = vadd.f32 %v1316_v56, %v1148_v0  ;;  %v814_v53 = vmax.f32 %v614_v36, %v2055_v45  ;;  %v121_v0 = vld [vmem:[%s3400_s0 + $0x308] sm:$0xff] }
 0x102   :  { %1355 = vmatmul.bf16.gmra.mxu1 %v859_v42  ;;  %v715_v57 = vmax.f32 %v515_v8, %v2055_v45  ;;  %v370_v8 = vmul.f32 %v2007_v24, %v170_v21 }
 0x103   :  { %1524 = vmatmul.bf16.gmra.mxu2 %v860_v61  ;;  %v861_v61 = vpack.c.bf16 %v717_v51, %v714_v4  ;;  %v910_v7 = vpack.c.bf16 %v814_v53, %v811_v52  ;;  %v573_v51 = vadd.f32 %v2038_v40, %v373_v34  ;;  %v179_v34 = vld [vmem:[%s3400_s0 + $0x4d8] sm:$0xff] }
 0x104   :  { %v2868_v17 = vpop.f32.mrf.mxu3  ;;  %v862_v19 = vpack.c.bf16 %v718_v6, %v715_v57  ;;  %v570_v4 = vadd.f32 %v2038_v40, %v370_v8  ;;  %v524_v57 = vadd.f32 %v2030_v35, %v324_v33  ;;  %v130_v33 = vld [vmem:[%s3400_s0 + $0x350] sm:$0xff]  ;;  %v176_v8 = vld [vmem:[%s3400_s0 + $0x4c0] sm:$0xff] }
 0x105   :  { %v773_v62 = vmax.f32 %v573_v51, %v2067_v54  ;;  %v376_v51 = vmul.f32 %v2007_v24, %v176_v8  ;;  %v1240_v8 = vadd.f32 %v2509_v50, %v2563_v38 }
 0x106   :  { %v1485_v32 = vpop.f32.mrf.mxu2  ;;  %v1149_v39 = vpop.f32.mrf.mxu0 }
 0x107   :  { %v1486_v41 = vadd.f32 %v1485_v32, %v1317_v27  ;;  %v1318_v49 = vpop.f32.mrf.mxu1  ;;  %v1150_v55 = vadd.f32 %v2509_v50, %v1149_v39  ;;  %v122_v27 = vld [vmem:[%s3400_s0 + $0x310] sm:$0xff]  ;;  %v321_v32 = vmul.f32 %v2002_v22, %v121_v0  ;;  %v325_v39 = vmul.f32 %v2007_v24, %v125_v28 }
 0x108   :  { %v724_v0 = vmax.f32 %v524_v57, %v2055_v45 }
 0x109   :  { %1627 = vst [vmem:[#allocation2 + $0x60] sm:$0xff] %v1486_v41  ;;  %v1319_v2 = vadd.f32 %v1318_v49, %v1150_v55  ;;  %v322_v41 = vmul.f32 %v2007_v24, %v122_v27  ;;  %v523_v49 = vadd.f32 %v2022_v30, %v323_v31  ;;  %v521_v55 = vadd.f32 %v2030_v35, %v321_v32  ;;  %v127_v27 = vld [vmem:[%s3400_s0 + $0x338] sm:$0xff] }
 0x10a   :  { %v525_v58 = vadd.f32 %v2038_v40, %v325_v39  ;;  %v128_v39 = vld [vmem:[%s3400_s0 + $0x340] sm:$0xff] }
 0x10b   :  { %v522_v6 = vadd.f32 %v2038_v40, %v322_v41  ;;  %v721_v63 = vmax.f32 %v521_v55, %v2055_v45  ;;  %v327_v55 = vmul.f32 %v2002_v22, %v127_v27  ;;  %v328_v57 = vmul.f32 %v2007_v24, %v128_v39 }
 0x10c   :  { %v2887_v60 = vpop.f32.mrf.mxu3 }
 0x10d   :  { %v865_v31 = vpack.c.bf16 %v724_v0, %v721_v63  ;;  %v576_v63 = vadd.f32 %v2038_v40, %v376_v51 }
 0x10e   :  { %v1487_v42 = vpop.f32.mrf.mxu2  ;;  %v1152_v13 = vpop.f32.mrf.mxu0 }
 0x10f   :  { %v1488_v56 = vadd.f32 %v1487_v42, %v1319_v2  ;;  %v1153_v5 = vadd.f32 %v2509_v50, %v1152_v13  ;;  %v1321_v26 = vpop.f32.mrf.mxu1  ;;  %v720_v42 = vmax.f32 %v520_v46, %v2053_v44  ;;  %v725_v13 = vmax.f32 %v525_v58, %v2067_v54  ;;  %v131_v46 = vld [vmem:[%s3400_s0 + $0x358] sm:$0xff] }
 0x110   :  { %v1238_v58 = vadd.f32 %v2509_v50, %v2544_v15  ;;  %v528_v15 = vadd.f32 %v2038_v40, %v328_v57  ;;  %v776_v27 = vmax.f32 %v576_v63, %v2067_v54  ;;  %v182_v57 = vld [vmem:[%s3400_s0 + $0x4f0] sm:$0xff] }
 0x111   :  { %1628 = vst [vmem:[#allocation2 + $0x68] sm:$0xff] %v1488_v56  ;;  %1191 = vmatmul.bf16.gmra.mxu0 %v861_v61  ;;  %1440 = vmatmul.bf16.gmra.mxu3 %v910_v7  ;;  %v1322_v36 = vadd.f32 %v1321_v26, %v1153_v5  ;;  %v723_v61 = vmax.f32 %v523_v49, %v2053_v44  ;;  %v126_v5 = vld [vmem:[%s3400_s0 + $0x330] sm:$0xff]  ;;  %v129_v26 = vld [vmem:[%s3400_s0 + $0x348] sm:$0xff] }
 0x112   :  { %1360 = vmatmul.bf16.gmra.mxu1 %v862_v19  ;;  %v770_v7 = vmax.f32 %v570_v4, %v2067_v54  ;;  %v722_v56 = vmax.f32 %v522_v6, %v2067_v54  ;;  %v329_v49 = vmul.f32 %v1981_v16, %v129_v26  ;;  %v330_v4 = vmul.f32 %v2002_v22, %v130_v33 }
 0x113   :  { %1529 = vmatmul.bf16.gmra.mxu2 %v863_v20  ;;  %v864_v21 = vpack.c.bf16 %v723_v61, %v720_v42  ;;  %v331_v6 = vmul.f32 %v2007_v24, %v131_v46 }
 0x114   :  { %v2922_v43 = vpop.f32.mrf.mxu3  ;;  %v890_v25 = vpack.c.bf16 %v773_v62, %v770_v7  ;;  %v866_v32 = vpack.c.bf16 %v725_v13, %v722_v56  ;;  %v529_v42 = vadd.f32 %v2022_v30, %v329_v49  ;;  %v527_v62 = vadd.f32 %v2030_v35, %v327_v55  ;;  %v132_v49 = vld [vmem:[%s3400_s0 + $0x360] sm:$0xff]  ;;  %v135_v55 = vld [vmem:[%s3400_s0 + $0x378] sm:$0xff] }
 0x115   :  { %v335_v63 = vmul.f32 %v1981_v16, %v135_v55 }
 0x116   :  { %v1490_v48 = vpop.f32.mrf.mxu2  ;;  %v1154_v53 = vpop.f32.mrf.mxu0  ;;  %v729_v26 = vmax.f32 %v529_v42, %v2053_v44  ;;  %v134_v42 = vld [vmem:[%s3400_s0 + $0x370] sm:$0xff] }
 0x117   :  { %v1491_v52 = vadd.f32 %v1490_v48, %v1322_v36  ;;  %v1323_v59 = vpop.f32.mrf.mxu1  ;;  %v1155_v2 = vadd.f32 %v2509_v50, %v1154_v53  ;;  %v326_v48 = vmul.f32 %v1981_v16, %v126_v5 }
 0x119   :  { %1629 = vst [vmem:[#allocation2 + $0x70] sm:$0xff] %v1491_v52  ;;  %v1324_v19 = vadd.f32 %v1323_v59, %v1155_v2  ;;  %v379_v52 = vmul.f32 %v2007_v24, %v179_v34  ;;  %v526_v2 = vadd.f32 %v2022_v30, %v326_v48 }
 0x11b   :  { %v579_v0 = vadd.f32 %v2038_v40, %v379_v52  ;;  %v726_v5 = vmax.f32 %v526_v2, %v2053_v44 }
 0x11c   :  { %v2941_v20 = vpop.f32.mrf.mxu3 }
 0x11d   :  { %v867_v46 = vpack.c.bf16 %v729_v26, %v726_v5 }
 0x11e   :  { %v1492_v9 = vpop.f32.mrf.mxu2  ;;  %v1157_v29 = vpop.f32.mrf.mxu0 }
 0x11f   :  { %v1493_v28 = vadd.f32 %v1492_v9, %v1324_v19  ;;  %v1158_v36 = vadd.f32 %v2509_v50, %v1157_v29  ;;  %v1326_v41 = vpop.f32.mrf.mxu1  ;;  %v530_v19 = vadd.f32 %v2030_v35, %v330_v4  ;;  %v531_v9 = vadd.f32 %v2038_v40, %v331_v6  ;;  %v133_v4 = vld [vmem:[%s3400_s0 + $0x368] sm:$0xff] }
 0x120   :  { %v727_v29 = vmax.f32 %v527_v62, %v2055_v45  ;;  %v185_v6 = vld [vmem:[%s3400_s0 + $0x508] sm:$0xff]  ;;  %v332_v62 = vmul.f32 %v1981_v16, %v132_v49 }
 0x121   :  { %1630 = vst [vmem:[#allocation2 + $0x78] sm:$0xff] %v1493_v28  ;;  %1196 = vmatmul.bf16.gmra.mxu0 %v864_v21  ;;  %1574 = vmatmul.bf16.vlgmr.msra.gmra.mxu3 %v890_v25  ;;  %v1327_v53 = vadd.f32 %v1326_v41, %v1158_v36  ;;  %v779_v28 = vmax.f32 %v579_v0, %v2067_v54 }
 0x122   :  { %1365 = vmatmul.bf16.gmra.mxu1 %v865_v31  ;;  %v730_v31 = vmax.f32 %v530_v19, %v2055_v45  ;;  %v731_v33 = vmax.f32 %v531_v9, %v2067_v54  ;;  %v333_v0 = vmul.f32 %v2002_v22, %v133_v4  ;;  %v385_v19 = vmul.f32 %v2007_v24, %v185_v6 }
 0x123   :  { %1534 = vmatmul.bf16.gmra.mxu2 %v866_v32  ;;  %v728_v32 = vmax.f32 %v528_v15, %v2067_v54  ;;  %v893_v48 = vpack.c.bf16 %v779_v28, %v776_v27  ;;  %v334_v9 = vmul.f32 %v2007_v24, %v134_v42  ;;  %v532_v26 = vadd.f32 %v2022_v30, %v332_v62 }
 0x124   :  { %v1406_v59 = vpop.f32.mrf.mxu3  ;;  %v868_v51 = vpack.c.bf16 %v730_v31, %v727_v29  ;;  %v535_v27 = vadd.f32 %v2022_v30, %v335_v63  ;;  %v533_v31 = vadd.f32 %v2030_v35, %v333_v0  ;;  %v138_v63 = vld [vmem:[%s3400_s0 + $0x390] sm:$0xff]  ;;  %v141_v0 = vld [vmem:[%s3400_s0 + $0x3a8] sm:$0xff] }
 0x125   :  { %v2980_v61 = vadd.f32 %v1406_v59, %v1238_v58  ;;  %v869_v52 = vpack.c.bf16 %v731_v33, %v728_v32  ;;  %v3022_v58 = vld [vmem:[%s3405_s5] ss:$0 sm:$0xff]  ;;  %v585_v33 = vadd.f32 %v2038_v40, %v385_v19  ;;  %v732_v49 = vmax.f32 %v532_v26, %v2053_v44 }
 0x126   :  { %v1495_v7 = vpop.f32.mrf.mxu2  ;;  %v1159_v13 = vpop.f32.mrf.mxu0  ;;  %v735_v55 = vmax.f32 %v535_v27, %v2053_v44  ;;  %v140_v27 = vld [vmem:[%s3400_s0 + $0x3a0] sm:$0xff] }
 0x127   :  { %v1496_v56 = vadd.f32 %v1495_v7, %v1327_v53  ;;  %v1328_v21 = vpop.f32.mrf.mxu1  ;;  %v1160_v25 = vadd.f32 %v2509_v50, %v1159_v13  ;;  %v136_v53 = vld [vmem:[%s3400_s0 + $0x380] sm:$0xff]  ;;  %v137_v7 = vld [vmem:[%s3400_s0 + $0x388] sm:$0xff]  ;;  %v382_v13 = vmul.f32 %v2007_v24, %v182_v57  ;;  %v1245_v57 = vadd.f32 %v3022_v58, %v2617_v1 }
 0x129   :  { %1631 = vst [vmem:[#allocation2 + $0x80] sm:$0xff] %v1496_v56  ;;  %v1329_v34 = vadd.f32 %v1328_v21, %v1160_v25  ;;  %v336_v56 = vmul.f32 %v2002_v22, %v136_v53  ;;  %v337_v21 = vmul.f32 %v2007_v24, %v137_v7  ;;  %v1243_v25 = vadd.f32 %v3022_v58, %v2598_v11 }
 0x12a   :  { %v582_v32 = vadd.f32 %v2038_v40, %v382_v13  ;;  %v534_v11 = vadd.f32 %v2038_v40, %v334_v9  ;;  %v870_v7 = vpack.c.bf16 %v735_v55, %v732_v49  ;;  %v142_v9 = vld [vmem:[%s3400_s0 + $0x3b0] sm:$0xff] }
 0x12c   :  { %v1408_v36 = vpop.f32.mrf.mxu3  ;;  %v782_v4 = vmax.f32 %v582_v32, %v2067_v54  ;;  %v341_v32 = vmul.f32 %v1981_v16, %v141_v0 }
 0x12d   :  { %v2999_v41 = vadd.f32 %v1408_v36, %v1240_v8  ;;  %v536_v36 = vadd.f32 %v2030_v35, %v336_v56  ;;  %v139_v56 = vld [vmem:[%s3400_s0 + $0x398] sm:$0xff] }
 0x12e   :  { %v1497_v39 = vpop.f32.mrf.mxu2  ;;  %v1162_v38 = vpop.f32.mrf.mxu0 }
 0x12f   :  { %v1498_v50 = vadd.f32 %v1497_v39, %v1329_v34  ;;  %v1163_v59 = vadd.f32 %v3022_v58, %v1162_v38  ;;  %v1331_v2 = vpop.f32.mrf.mxu1  ;;  %v537_v39 = vadd.f32 %v2038_v40, %v337_v21  ;;  %v733_v38 = vmax.f32 %v533_v31, %v2055_v45  ;;  %v188_v21 = vld [vmem:[%s3400_s0 + $0x520] sm:$0xff] }
 0x130   :  { %v338_v31 = vmul.f32 %v1981_v16, %v138_v63 }
 0x131   :  { %1632 = vst [vmem:[#allocation2 + $0x88] sm:$0xff] %v1498_v50  ;;  %1201 = vmatmul.bf16.gmra.mxu0 %v867_v46  ;;  %1579 = vmatmul.bf16.gmra.mxu3 %v893_v48  ;;  %v1332_v15 = vadd.f32 %v1331_v2, %v1163_v59  ;;  %v785_v50 = vmax.f32 %v585_v33, %v2067_v54 }
 0x132   :  { %1370 = vmatmul.bf16.gmra.mxu1 %v868_v51  ;;  %v736_v51 = vmax.f32 %v536_v36, %v2055_v45  ;;  %v737_v53 = vmax.f32 %v537_v39, %v2067_v54  ;;  %v339_v33 = vmul.f32 %v2002_v22, %v139_v56  ;;  %v340_v39 = vmul.f32 %v2007_v24, %v140_v27 }
 0x133   :  { %1539 = vmatmul.bf16.gmra.mxu2 %v869_v52  ;;  %v734_v52 = vmax.f32 %v534_v11, %v2067_v54  ;;  %v896_v62 = vpack.c.bf16 %v785_v50, %v782_v4  ;;  %v538_v55 = vadd.f32 %v2022_v30, %v338_v31  ;;  %v541_v4 = vadd.f32 %v2022_v30, %v341_v32  ;;  %v144_v32 = vld [vmem:[%s3400_s0 + $0x3c0] sm:$0xff] }
 0x134   :  { %v1411_v5 = vpop.f32.mrf.mxu3  ;;  %v871_v19 = vpack.c.bf16 %v736_v51, %v733_v38  ;;  %v539_v51 = vadd.f32 %v2030_v35, %v339_v33  ;;  %v147_v33 = vld [vmem:[%s3400_s0 + $0x3d8] sm:$0xff] }
 0x135   :  { %v3043_v28 = vadd.f32 %v1411_v5, %v1243_v25  ;;  %v191_v25 = vld [vmem:[%s3400_s0 + $0x538] sm:$0xff]  ;;  %v738_v63 = vmax.f32 %v538_v55, %v2053_v44  ;;  %v741_v0 = vmax.f32 %v541_v4, %v2053_v44  ;;  %v146_v4 = vld [vmem:[%s3400_s0 + $0x3d0] sm:$0xff] }
 0x136   :  { %v1500_v29 = vpop.f32.mrf.mxu2  ;;  %v1164_v34 = vpop.f32.mrf.mxu0  ;;  %v391_v36 = vmul.f32 %v2007_v24, %v191_v25 }
 0x137   :  { %v1501_v8 = vadd.f32 %v1500_v29, %v1332_v15  ;;  %v1333_v46 = vpop.f32.mrf.mxu1  ;;  %v1165_v48 = vadd.f32 %v3022_v58, %v1164_v34  ;;  %v872_v15 = vpack.c.bf16 %v737_v53, %v734_v52  ;;  %v143_v29 = vld [vmem:[%s3400_s0 + $0x3b8] sm:$0xff]  ;;  %v388_v34 = vmul.f32 %v2007_v24, %v188_v21 }
 0x138   :  { %v591_v53 = vadd.f32 %v2038_v40, %v391_v36  ;;  %v1250_v21 = vadd.f32 %v3022_v58, %v2671_v37 }
 0x139   :  { %1633 = vst [vmem:[#allocation2 + $0x90] sm:$0xff] %v1501_v8  ;;  %v1334_v6 = vadd.f32 %v1333_v46, %v1165_v48  ;;  %v342_v8 = vmul.f32 %v2002_v22, %v142_v9  ;;  %v343_v46 = vmul.f32 %v2007_v24, %v143_v29  ;;  %v1248_v48 = vadd.f32 %v3022_v58, %v2652_v3 }
 0x13a   :  { %v588_v52 = vadd.f32 %v2038_v40, %v388_v34  ;;  %v540_v3 = vadd.f32 %v2038_v40, %v340_v39  ;;  %v873_v29 = vpack.c.bf16 %v741_v0, %v738_v63  ;;  %v148_v39 = vld [vmem:[%s3400_s0 + $0x3e0] sm:$0xff] }
 0x13c   :  { %v1413_v59 = vpop.f32.mrf.mxu3  ;;  %v788_v56 = vmax.f32 %v588_v52, %v2067_v54  ;;  %v347_v52 = vmul.f32 %v1981_v16, %v147_v33 }
 0x13d   :  { %v3062_v2 = vadd.f32 %v1413_v59, %v1245_v57  ;;  %v542_v59 = vadd.f32 %v2030_v35, %v342_v8  ;;  %v145_v8 = vld [vmem:[%s3400_s0 + $0x3c8] sm:$0xff] }
 0x13e   :  { %v1502_v42 = vpop.f32.mrf.mxu2  ;;  %v1167_v13 = vpop.f32.mrf.mxu0 }
 0x13f   :  { %v1503_v1 = vadd.f32 %v1502_v42, %v1334_v6  ;;  %v1168_v5 = vadd.f32 %v3022_v58, %v1167_v13  ;;  %v1336_v26 = vpop.f32.mrf.mxu1  ;;  %v543_v42 = vadd.f32 %v2038_v40, %v343_v46  ;;  %v739_v13 = vmax.f32 %v539_v51, %v2055_v45  ;;  %v194_v46 = vld [vmem:[%s3400_s0 + $0x550] sm:$0xff] }
 0x140   :  { %v344_v51 = vmul.f32 %v1981_v16, %v144_v32 }
 0x141   :  { %1634 = vst [vmem:[#allocation2 + $0x98] sm:$0xff] %v1503_v1  ;;  %1206 = vmatmul.bf16.gmra.mxu0 %v870_v7  ;;  %1584 = vmatmul.bf16.gmra.mxu3 %v896_v62  ;;  %v1337_v11 = vadd.f32 %v1336_v26, %v1168_v5  ;;  %v791_v1 = vmax.f32 %v591_v53, %v2067_v54 }
 0x142   :  { %1375 = vmatmul.bf16.gmra.mxu1 %v871_v19  ;;  %v742_v19 = vmax.f32 %v542_v59, %v2055_v45  ;;  %v743_v9 = vmax.f32 %v543_v42, %v2067_v54  ;;  %v345_v53 = vmul.f32 %v2002_v22, %v145_v8  ;;  %v346_v42 = vmul.f32 %v2007_v24, %v146_v4 }
 0x143   :  { %1544 = vmatmul.bf16.gmra.mxu2 %v872_v15  ;;  %v740_v15 = vmax.f32 %v540_v3, %v2067_v54  ;;  %v899_v31 = vpack.c.bf16 %v791_v1, %v788_v56  ;;  %v544_v0 = vadd.f32 %v2022_v30, %v344_v51  ;;  %v547_v56 = vadd.f32 %v2022_v30, %v347_v52  ;;  %v150_v52 = vld [vmem:[%s3400_s0 + $0x3f0] sm:$0xff] }
 0x144   :  { %v1416_v49 = vpop.f32.mrf.mxu3  ;;  %v874_v36 = vpack.c.bf16 %v742_v19, %v739_v13  ;;  %v545_v19 = vadd.f32 %v2030_v35, %v345_v53  ;;  %v153_v53 = vld [vmem:[%s3400_s0 + $0x408] sm:$0xff] }
 0x145   :  { %v3101_v50 = vadd.f32 %v1416_v49, %v1248_v48  ;;  %v197_v48 = vld [vmem:[%s3400_s0 + $0x568] sm:$0xff]  ;;  %v744_v32 = vmax.f32 %v544_v0, %v2053_v44  ;;  %v747_v33 = vmax.f32 %v547_v56, %v2053_v44  ;;  %v152_v56 = vld [vmem:[%s3400_s0 + $0x400] sm:$0xff] }
 0x146   :  { %v1505_v38 = vpop.f32.mrf.mxu2  ;;  %v1169_v6 = vpop.f32.mrf.mxu0  ;;  %v397_v59 = vmul.f32 %v2007_v24, %v197_v48 }
 0x147   :  { %v1506_v57 = vadd.f32 %v1505_v38, %v1337_v11  ;;  %v1338_v7 = vpop.f32.mrf.mxu1  ;;  %v1170_v62 = vadd.f32 %v3022_v58, %v1169_v6  ;;  %v875_v11 = vpack.c.bf16 %v743_v9, %v740_v15  ;;  %v149_v38 = vld [vmem:[%s3400_s0 + $0x3e8] sm:$0xff]  ;;  %v394_v6 = vmul.f32 %v2007_v24, %v194_v46 }
 0x148   :  { %v597_v9 = vadd.f32 %v2038_v40, %v397_v59  ;;  %v1255_v46 = vadd.f32 %v3022_v58, %v2725_v12 }
 0x149   :  { %1635 = vst [vmem:[#allocation2 + $0xa0] sm:$0xff] %v1506_v57  ;;  %v1339_v25 = vadd.f32 %v1338_v7, %v1170_v62  ;;  %v348_v57 = vmul.f32 %v2002_v22, %v148_v39  ;;  %v349_v7 = vmul.f32 %v2007_v24, %v149_v38  ;;  %v1253_v62 = vadd.f32 %v3022_v58, %v2706_v10 }
 0x14a   :  { %v594_v15 = vadd.f32 %v2038_v40, %v394_v6  ;;  %v546_v10 = vadd.f32 %v2038_v40, %v346_v42  ;;  %v876_v38 = vpack.c.bf16 %v747_v33, %v744_v32  ;;  %v154_v42 = vld [vmem:[%s3400_s0 + $0x410] sm:$0xff] }
 0x14c   :  { %v1418_v5 = vpop.f32.mrf.mxu3  ;;  %v794_v8 = vmax.f32 %v594_v15, %v2067_v54  ;;  %v353_v15 = vmul.f32 %v1981_v16, %v153_v53 }
 0x14d   :  { %v3120_v26 = vadd.f32 %v1418_v5, %v1250_v21  ;;  %v548_v5 = vadd.f32 %v2030_v35, %v348_v57  ;;  %v151_v57 = vld [vmem:[%s3400_s0 + $0x3f8] sm:$0xff] }
 0x14e   :  { %v1507_v27 = vpop.f32.mrf.mxu2  ;;  %v1172_v34 = vpop.f32.mrf.mxu0 }
 0x14f   :  { %v1508_v37 = vadd.f32 %v1507_v27, %v1339_v25  ;;  %v1173_v49 = vadd.f32 %v3022_v58, %v1172_v34  ;;  %v1341_v55 = vpop.f32.mrf.mxu1  ;;  %v549_v27 = vadd.f32 %v2038_v40, %v349_v7  ;;  %v745_v34 = vmax.f32 %v545_v19, %v2055_v45  ;;  %v200_v7 = vld [vmem:[%s3400_s0 + $0x580] sm:$0xff] }
 0x150   :  { %v350_v19 = vmul.f32 %v1981_v16, %v150_v52 }
 0x151   :  { %1636 = vst [vmem:[#allocation2 + $0xa8] sm:$0xff] %v1508_v37  ;;  %1211 = vmatmul.bf16.gmra.mxu0 %v873_v29  ;;  %1589 = vmatmul.bf16.gmra.mxu3 %v899_v31  ;;  %v1342_v3 = vadd.f32 %v1341_v55, %v1173_v49  ;;  %v797_v37 = vmax.f32 %v597_v9, %v2067_v54 }
 0x152   :  { %1380 = vmatmul.bf16.gmra.mxu1 %v874_v36  ;;  %v748_v36 = vmax.f32 %v548_v5, %v2055_v45  ;;  %v749_v39 = vmax.f32 %v549_v27, %v2067_v54  ;;  %v351_v9 = vmul.f32 %v2002_v22, %v151_v57  ;;  %v352_v27 = vmul.f32 %v2007_v24, %v152_v56 }
 0x153   :  { %1549 = vmatmul.bf16.gmra.mxu2 %v875_v11  ;;  %v746_v11 = vmax.f32 %v546_v10, %v2067_v54  ;;  %v902_v51 = vpack.c.bf16 %v797_v37, %v794_v8  ;;  %v550_v33 = vadd.f32 %v2022_v30, %v350_v19  ;;  %v553_v8 = vadd.f32 %v2022_v30, %v353_v15  ;;  %v156_v15 = vld [vmem:[%s3400_s0 + $0x420] sm:$0xff] }
 0x154   :  { %v1421_v63 = vpop.f32.mrf.mxu3  ;;  %v877_v59 = vpack.c.bf16 %v748_v36, %v745_v34  ;;  %v551_v36 = vadd.f32 %v2030_v35, %v351_v9  ;;  %v159_v9 = vld [vmem:[%s3400_s0 + $0x438] sm:$0xff] }
 0x155   :  { %v3159_v1 = vadd.f32 %v1421_v63, %v1253_v62  ;;  %v203_v62 = vld [vmem:[%s3400_s0 + $0x598] sm:$0xff]  ;;  %v750_v52 = vmax.f32 %v550_v33, %v2053_v44  ;;  %v753_v53 = vmax.f32 %v553_v8, %v2053_v44  ;;  %v158_v8 = vld [vmem:[%s3400_s0 + $0x430] sm:$0xff] }
 0x156   :  { %v1510_v13 = vpop.f32.mrf.mxu2  ;;  %v1174_v25 = vpop.f32.mrf.mxu0  ;;  %v403_v5 = vmul.f32 %v2007_v24, %v203_v62 }
 0x157   :  { %v1511_v21 = vadd.f32 %v1510_v13, %v1342_v3  ;;  %v1343_v29 = vpop.f32.mrf.mxu1  ;;  %v1175_v31 = vadd.f32 %v3022_v58, %v1174_v25  ;;  %v878_v3 = vpack.c.bf16 %v749_v39, %v746_v11  ;;  %v155_v13 = vld [vmem:[%s3400_s0 + $0x418] sm:$0xff]  ;;  %v400_v25 = vmul.f32 %v2007_v24, %v200_v7 }
 0x158   :  { %v603_v39 = vadd.f32 %v2038_v40, %v403_v5  ;;  %v1260_v7 = vadd.f32 %v3022_v58, %v2779_v47 }
 0x159   :  { %1637 = vst [vmem:[#allocation2 + $0xb0] sm:$0xff] %v1511_v21  ;;  %v1344_v48 = vadd.f32 %v1343_v29, %v1175_v31  ;;  %v354_v21 = vmul.f32 %v2002_v22, %v154_v42  ;;  %v355_v29 = vmul.f32 %v2007_v24, %v155_v13  ;;  %v1258_v31 = vadd.f32 %v3022_v58, %v2760_v14 }
 0x15a   :  { %v600_v11 = vadd.f32 %v2038_v40, %v400_v25  ;;  %v552_v14 = vadd.f32 %v2038_v40, %v352_v27  ;;  %v879_v13 = vpack.c.bf16 %v753_v53, %v750_v52  ;;  %v160_v27 = vld [vmem:[%s3400_s0 + $0x440] sm:$0xff] }
 0x15c   :  { %v1423_v49 = vpop.f32.mrf.mxu3  ;;  %v800_v57 = vmax.f32 %v600_v11, %v2067_v54  ;;  %v359_v11 = vmul.f32 %v1981_v16, %v159_v9 }
 0x15d   :  { %v3178_v55 = vadd.f32 %v1423_v49, %v1255_v46  ;;  %v554_v49 = vadd.f32 %v2030_v35, %v354_v21  ;;  %v157_v21 = vld [vmem:[%s3400_s0 + $0x428] sm:$0xff] }
 0x15e   :  { %v1512_v4 = vpop.f32.mrf.mxu2  ;;  %v1177_v6 = vpop.f32.mrf.mxu0 }
 0x15f   :  { %v1513_v12 = vadd.f32 %v1512_v4, %v1344_v48  ;;  %v1178_v63 = vadd.f32 %v3022_v58, %v1177_v6  ;;  %v1346_v0 = vpop.f32.mrf.mxu1  ;;  %v555_v4 = vadd.f32 %v2038_v40, %v355_v29  ;;  %v751_v6 = vmax.f32 %v551_v36, %v2055_v45  ;;  %v206_v29 = vld [vmem:[%s3400_s0 + $0x5b0] sm:$0xff] }
 0x160   :  { %v356_v36 = vmul.f32 %v1981_v16, %v156_v15 }
 0x161   :  { %1638 = vst [vmem:[#allocation2 + $0xb8] sm:$0xff] %v1513_v12  ;;  %1216 = vmatmul.bf16.gmra.mxu0 %v876_v38  ;;  %1594 = vmatmul.bf16.gmra.mxu3 %v902_v51  ;;  %v1347_v10 = vadd.f32 %v1346_v0, %v1178_v63  ;;  %v803_v12 = vmax.f32 %v603_v39, %v2067_v54 }
 0x162   :  { %1385 = vmatmul.bf16.gmra.mxu1 %v877_v59  ;;  %v754_v59 = vmax.f32 %v554_v49, %v2055_v45  ;;  %v755_v42 = vmax.f32 %v555_v4, %v2067_v54  ;;  %v357_v39 = vmul.f32 %v2002_v22, %v157_v21  ;;  %v358_v4 = vmul.f32 %v2007_v24, %v158_v8 }
 0x163   :  { %1554 = vmatmul.bf16.gmra.mxu2 %v878_v3  ;;  %v752_v3 = vmax.f32 %v552_v14, %v2067_v54  ;;  %v905_v19 = vpack.c.bf16 %v803_v12, %v800_v57  ;;  %v556_v53 = vadd.f32 %v2022_v30, %v356_v36  ;;  %v559_v57 = vadd.f32 %v2022_v30, %v359_v11  ;;  %v162_v11 = vld [vmem:[%s3400_s0 + $0x450] sm:$0xff] }
 0x164   :  { %v1426_v32 = vpop.f32.mrf.mxu3  ;;  %v880_v5 = vpack.c.bf16 %v754_v59, %v751_v6  ;;  %v557_v59 = vadd.f32 %v2030_v35, %v357_v39  ;;  %v165_v39 = vld [vmem:[%s3400_s0 + $0x468] sm:$0xff] }
 0x165   :  { %v3217_v37 = vadd.f32 %v1426_v32, %v1258_v31  ;;  %v209_v31 = vld [vmem:[%s3400_s0 + $0x5c8] sm:$0xff]  ;;  %v756_v15 = vmax.f32 %v556_v53, %v2053_v44  ;;  %v759_v9 = vmax.f32 %v559_v57, %v2053_v44  ;;  %v164_v57 = vld [vmem:[%s3400_s0 + $0x460] sm:$0xff] }
 0x166   :  { %v1515_v34 = vpop.f32.mrf.mxu2  ;;  %v1179_v48 = vpop.f32.mrf.mxu0  ;;  %v409_v49 = vmul.f32 %v2007_v24, %v209_v31 }
 0x167   :  { %v1516_v46 = vadd.f32 %v1515_v34, %v1347_v10  ;;  %v1348_v38 = vpop.f32.mrf.mxu1  ;;  %v1180_v51 = vadd.f32 %v3022_v58, %v1179_v48  ;;  %v881_v10 = vpack.c.bf16 %v755_v42, %v752_v3  ;;  %v161_v34 = vld [vmem:[%s3400_s0 + $0x448] sm:$0xff]  ;;  %v406_v48 = vmul.f32 %v2007_v24, %v206_v29 }
 0x168   :  { %v609_v42 = vadd.f32 %v2038_v40, %v409_v49  ;;  %v1265_v29 = vadd.f32 %v3022_v58, %v2833_v18 }
 0x169   :  { %1639 = vst [vmem:[#allocation2 + $0xc0] sm:$0xff] %v1516_v46  ;;  %v1349_v62 = vadd.f32 %v1348_v38, %v1180_v51  ;;  %v360_v46 = vmul.f32 %v2002_v22, %v160_v27  ;;  %v361_v38 = vmul.f32 %v2007_v24, %v161_v34  ;;  %v1263_v51 = vadd.f32 %v3022_v58, %v2814_v23 }
 0x16a   :  { %v606_v3 = vadd.f32 %v2038_v40, %v406_v48  ;;  %v558_v23 = vadd.f32 %v2038_v40, %v358_v4  ;;  %v882_v34 = vpack.c.bf16 %v759_v9, %v756_v15  ;;  %v166_v4 = vld [vmem:[%s3400_s0 + $0x470] sm:$0xff] }
 0x16c   :  { %v1428_v63 = vpop.f32.mrf.mxu3  ;;  %v806_v21 = vmax.f32 %v606_v3, %v2067_v54  ;;  %v365_v3 = vmul.f32 %v1981_v16, %v165_v39 }
 0x16d   :  { %v3236_v0 = vadd.f32 %v1428_v63, %v1260_v7  ;;  %v560_v63 = vadd.f32 %v2030_v35, %v360_v46  ;;  %v163_v46 = vld [vmem:[%s3400_s0 + $0x458] sm:$0xff] }
 0x16e   :  { %v1517_v56 = vpop.f32.mrf.mxu2  ;;  %v1182_v25 = vpop.f32.mrf.mxu0  ;;  %v565_v9 = vadd.f32 %v2022_v30, %v365_v3 }
 0x16f   :  { %v1518_v47 = vadd.f32 %v1517_v56, %v1349_v62  ;;  %v1183_v32 = vadd.f32 %v3022_v58, %v1182_v25  ;;  %v1351_v33 = vpop.f32.mrf.mxu1  ;;  %v561_v56 = vadd.f32 %v2038_v40, %v361_v38  ;;  %v757_v25 = vmax.f32 %v557_v59, %v2055_v45  ;;  %v212_v38 = vld [vmem:[%s3400_s0 + $0x5e0] sm:$0xff] }
 0x170   :  { %v362_v59 = vmul.f32 %v1981_v16, %v162_v11  ;;  %v1268_v16 = vadd.f32 %v3022_v58, %v2868_v17 }
 0x171   :  { %1640 = vst [vmem:[#allocation2 + $0xc8] sm:$0xff] %v1518_v47  ;;  %1221 = vmatmul.bf16.gmra.mxu0 %v879_v13  ;;  %1599 = vmatmul.bf16.gmra.mxu3 %v905_v19  ;;  %v1352_v14 = vadd.f32 %v1351_v33, %v1183_v32  ;;  %v809_v47 = vmax.f32 %v609_v42, %v2067_v54 }
 0x172   :  { %1390 = vmatmul.bf16.gmra.mxu1 %v880_v5  ;;  %v760_v5 = vmax.f32 %v560_v63, %v2055_v45  ;;  %v761_v27 = vmax.f32 %v561_v56, %v2067_v54  ;;  %v363_v42 = vmul.f32 %v2002_v22, %v163_v46  ;;  %v364_v56 = vmul.f32 %v2007_v24, %v164_v57 }
 0x173   :  { %1559 = vmatmul.bf16.gmra.mxu2 %v881_v10  ;;  %v758_v10 = vmax.f32 %v558_v23, %v2067_v54  ;;  %v908_v36 = vpack.c.bf16 %v809_v47, %v806_v21  ;;  %v562_v15 = vadd.f32 %v2022_v30, %v362_v59  ;;  %v1270_v46 = vadd.f32 %v3022_v58, %v2887_v60 }
 0x174   :  { %v1431_v52 = vpop.f32.mrf.mxu3  ;;  %v883_v49 = vpack.c.bf16 %v760_v5, %v757_v25  ;;  %v563_v47 = vadd.f32 %v2030_v35, %v363_v42  ;;  %v564_v17 = vadd.f32 %v2038_v40, %v364_v56  ;;  %v1273_v60 = vadd.f32 %v3022_v58, %v2922_v43 }
 0x175   :  { %v3275_v12 = vadd.f32 %v1431_v52, %v1263_v51  ;;  %v215_v51 = vld [vmem:[%s3400_s0 + $0x5f8] sm:$0xff] }
 0x176   :  { %v1520_v6 = vpop.f32.mrf.mxu2  ;;  %v1184_v62 = vpop.f32.mrf.mxu0  ;;  %v415_v63 = vmul.f32 %v2007_v24, %v215_v51  ;;  %v763_v11 = vmax.f32 %v563_v47, %v2055_v45  ;;  %v764_v39 = vmax.f32 %v564_v17, %v2067_v54 }
 0x177   :  { %v1521_v7 = vadd.f32 %v1520_v6, %v1352_v14  ;;  %v1353_v13 = vpop.f32.mrf.mxu1  ;;  %v1185_v19 = vadd.f32 %v3022_v58, %v1184_v62  ;;  %v884_v14 = vpack.c.bf16 %v761_v27, %v758_v10  ;;  %v167_v6 = vld [vmem:[%s3400_s0 + $0x478] sm:$0xff]  ;;  %v412_v62 = vmul.f32 %v2007_v24, %v212_v38 }
 0x178   :  { %v615_v5 = vadd.f32 %v2038_v40, %v415_v63 }
 0x179   :  { %1641 = vst [vmem:[#allocation2 + $0xd0] sm:$0xff] %v1521_v7  ;;  %v1354_v31 = vadd.f32 %v1353_v13, %v1185_v19  ;;  %v366_v7 = vmul.f32 %v2002_v22, %v166_v4  ;;  %v367_v13 = vmul.f32 %v2007_v24, %v167_v6  ;;  %v612_v25 = vadd.f32 %v2038_v40, %v412_v62 }
 0x17b   :  { %v566_v24 = vadd.f32 %v2030_v35, %v366_v7 }
 0x17c   :  { %v1433_v32 = vpop.f32.mrf.mxu3 }
 0x17d   :  { %v3294_v33 = vadd.f32 %v1433_v32, %v1265_v29  ;;  %v567_v29 = vadd.f32 %v2038_v40, %v367_v13  ;;  %v762_v32 = vmax.f32 %v562_v15, %v2053_v44  ;;  %v766_v35 = vmax.f32 %v566_v24, %v2055_v45 }
 0x17e   :  { %v1522_v8 = vpop.f32.mrf.mxu2  ;;  %v1187_v48 = vpop.f32.mrf.mxu0 }
 0x17f   :  { %v1523_v18 = vadd.f32 %v1522_v8, %v1354_v31  ;;  %v1188_v52 = vadd.f32 %v3022_v58, %v1187_v48  ;;  %v1356_v53 = vpop.f32.mrf.mxu1  ;;  %v765_v8 = vmax.f32 %v565_v9, %v2053_v44  ;;  %v767_v40 = vmax.f32 %v567_v29, %v2067_v54 }
 0x181   :  { %1642 = vst [vmem:[#allocation2 + $0xd8] sm:$0xff] %v1523_v18  ;;  %1226 = vmatmul.bf16.gmra.mxu0 %v882_v34  ;;  %1604 = vmatmul.bf16.gmra.mxu3 %v908_v36  ;;  %v1357_v23 = vadd.f32 %v1356_v53, %v1188_v52  ;;  %v812_v34 = vmax.f32 %v612_v25, %v2067_v54 }
 0x182   :  { %1395 = vmatmul.bf16.gmra.mxu1 %v883_v49  ;;  %v815_v36 = vmax.f32 %v615_v5, %v2067_v54  ;;  %v886_v52 = vpack.c.bf16 %v766_v35, %v763_v11  ;;  %v887_v53 = vpack.c.bf16 %v767_v40, %v764_v39 }
 0x183   :  { %1564 = vmatmul.bf16.gmra.mxu2 %v884_v14  ;;  %v885_v14 = vpack.c.bf16 %v765_v8, %v762_v32 }
 0x184   :  { %v1436_v19 = vpop.f32.mrf.mxu3  ;;  %v911_v4 = vpack.c.bf16 %v815_v36, %v812_v34 }
 0x185   :  { %v3333_v22 = vadd.f32 %v1436_v19, %v1268_v16 }
 0x186   :  { %v1525_v21 = vpop.f32.mrf.mxu2  ;;  %v1189_v27 = vpop.f32.mrf.mxu0 }
 0x187   :  { %v1526_v10 = vadd.f32 %v1525_v21, %v1357_v23  ;;  %v1358_v31 = vpop.f32.mrf.mxu1  ;;  %v1190_v30 = vadd.f32 %v3022_v58, %v1189_v27  ;;  %v1275_v23 = vadd.f32 %v3022_v58, %v2941_v20 }
 0x189   :  { %1643 = vst [vmem:[#allocation2 + $0xe0] sm:$0xff] %v1526_v10  ;;  %v1359_v18 = vadd.f32 %v1358_v31, %v1190_v30 }
 0x18c   :  { %v1438_v48 = vpop.f32.mrf.mxu3 }
 0x18d   :  { %v3352_v49 = vadd.f32 %v1438_v48, %v1270_v46 }
 0x18e   :  { %v1527_v44 = vpop.f32.mrf.mxu2  ;;  %v1192_v51 = vpop.f32.mrf.mxu0 }
 0x18f   :  { %v1528_v38 = vadd.f32 %v1527_v44, %v1359_v18  ;;  %v1193_v45 = vadd.f32 %v3022_v58, %v1192_v51  ;;  %v1361_v57 = vpop.f32.mrf.mxu1 }
 0x191   :  { %1644 = vst [vmem:[#allocation2 + $0xe8] sm:$0xff] %v1528_v38  ;;  %1231 = vmatmul.bf16.gmra.mxu0 %v885_v14  ;;  %1609 = vmatmul.bf16.gmra.mxu3 %v911_v4  ;;  %v1362_v54 = vadd.f32 %v1361_v57, %v1193_v45 }
 0x192   :  { %1400 = vmatmul.bf16.gmra.mxu1 %v886_v52 }
 0x193   :  { %1569 = vmatmul.bf16.gmra.mxu2 %v887_v53 }
 0x194   :  { %v1441_v6 = vpop.f32.mrf.mxu3 }
 0x195   :  { %v3357_v59 = vadd.f32 %v1441_v6, %v1273_v60 }
 0x196   :  { %v1530_v3 = vpop.f32.mrf.mxu2  ;;  %v1194_v7 = vpop.f32.mrf.mxu0 }
 0x197   :  { %v1531_v42 = vadd.f32 %v1530_v3, %v1362_v54  ;;  %v1363_v62 = vpop.f32.mrf.mxu1  ;;  %v1195_v63 = vadd.f32 %v3022_v58, %v1194_v7 }
 0x199   :  { %1645 = vst [vmem:[#allocation2 + $0xf0] sm:$0xff] %v1531_v42  ;;  %v1364_v56 = vadd.f32 %v1363_v62, %v1195_v63 }
 0x19c   :  { %v1443_v13 = vpop.f32.mrf.mxu3 }
 0x19d   :  { %v3362_v16 = vadd.f32 %v1443_v13, %v1275_v23 }
 0x19e   :  { %v1532_v19 = vpop.f32.mrf.mxu2  ;;  %v1197_v43 = vpop.f32.mrf.mxu0 }
 0x19f   :  { %v1533_v15 = vadd.f32 %v1532_v19, %v1364_v56  ;;  %v1198_v9 = vadd.f32 %v3022_v58, %v1197_v43  ;;  %v1366_v21 = vpop.f32.mrf.mxu1 }
 0x1a1   :  { %1646 = vst [vmem:[#allocation2 + $0xf8] sm:$0xff] %v1533_v15  ;;  %v1367_v47 = vadd.f32 %v1366_v21, %v1198_v9 }
 0x1a4   :  { %v1575_v25 = vpop.f32.mrf.mxu3 }
 0x1a5   :  { %v1576_v10 = vadd.f32 %v1575_v25, %v2980_v61 }
 0x1a6   :  { %v1535_v5 = vpop.f32.mrf.mxu2  ;;  %v1199_v24 = vpop.f32.mrf.mxu0 }
 0x1a7   :  { %v1536_v27 = vadd.f32 %v1535_v5, %v1367_v47  ;;  %1663 = vst [vmem:[#allocation2 + $0x180] sm:$0xff] %v1576_v10  ;;  %v1368_v20 = vpop.f32.mrf.mxu1  ;;  %v1200_v17 = vadd.f32 %v3022_v58, %v1199_v24 }
 0x1a9   :  { %1647 = vst [vmem:[#allocation2 + $0x100] sm:$0xff] %v1536_v27  ;;  %v1369_v29 = vadd.f32 %v1368_v20, %v1200_v17 }
 0x1ac   :  { %v1577_v31 = vpop.f32.mrf.mxu3 }
 0x1ad   :  { %v1578_v32 = vadd.f32 %v1577_v31, %v2999_v41 }
 0x1ae   :  { %v1537_v30 = vpop.f32.mrf.mxu2  ;;  %v1202_v34 = vpop.f32.mrf.mxu0 }
 0x1af   :  { %v1538_v8 = vadd.f32 %v1537_v30, %v1369_v29  ;;  %1664 = vst [vmem:[#allocation2 + $0x188] sm:$0xff] %v1578_v32  ;;  %v1203_v36 = vadd.f32 %v3022_v58, %v1202_v34  ;;  %v1371_v11 = vpop.f32.mrf.mxu1 }
 0x1b1   :  { %1648 = vst [vmem:[#allocation2 + $0x108] sm:$0xff] %v1538_v8  ;;  %v1372_v61 = vadd.f32 %v1371_v11, %v1203_v36 }
 0x1b4   :  { %v1580_v35 = vpop.f32.mrf.mxu3 }
 0x1b5   :  { %v1581_v40 = vadd.f32 %v1580_v35, %v3043_v28 }
 0x1b6   :  { %v1540_v39 = vpop.f32.mrf.mxu2  ;;  %v1204_v18 = vpop.f32.mrf.mxu0 }
 0x1b7   :  { %v1541_v46 = vadd.f32 %v1540_v39, %v1372_v61  ;;  %1665 = vst [vmem:[#allocation2 + $0x190] sm:$0xff] %v1581_v40  ;;  %v1373_v48 = vpop.f32.mrf.mxu1  ;;  %v1205_v44 = vadd.f32 %v3022_v58, %v1204_v18 }
 0x1b9   :  { %1649 = vst [vmem:[#allocation2 + $0x110] sm:$0xff] %v1541_v46  ;;  %v1374_v41 = vadd.f32 %v1373_v48, %v1205_v44 }
 0x1bc   :  { %v1582_v14 = vpop.f32.mrf.mxu3 }
 0x1bd   :  { %v1583_v38 = vadd.f32 %v1582_v14, %v3062_v2 }
 0x1be   :  { %v1542_v4 = vpop.f32.mrf.mxu2  ;;  %v1207_v52 = vpop.f32.mrf.mxu0 }
 0x1bf   :  { %v1543_v51 = vadd.f32 %v1542_v4, %v1374_v41  ;;  %1666 = vst [vmem:[#allocation2 + $0x198] sm:$0xff] %v1583_v38  ;;  %v1208_v53 = vadd.f32 %v3022_v58, %v1207_v52  ;;  %v1376_v45 = vpop.f32.mrf.mxu1 }
 0x1c1   :  { %1650 = vst [vmem:[#allocation2 + $0x118] sm:$0xff] %v1543_v51  ;;  %v1377_v28 = vadd.f32 %v1376_v45, %v1208_v53 }
 0x1c4   :  { %v1585_v57 = vpop.f32.mrf.mxu3 }
 0x1c5   :  { %v1586_v60 = vadd.f32 %v1585_v57, %v3101_v50 }
 0x1c6   :  { %v1545_v54 = vpop.f32.mrf.mxu2  ;;  %v1209_v3 = vpop.f32.mrf.mxu0 }
 0x1c7   :  { %v1546_v6 = vadd.f32 %v1545_v54, %v1377_v28  ;;  %1667 = vst [vmem:[#allocation2 + $0x1a0] sm:$0xff] %v1586_v60  ;;  %v1378_v42 = vpop.f32.mrf.mxu1  ;;  %v1210_v7 = vadd.f32 %v3022_v58, %v1209_v3 }
 0x1c9   :  { %1651 = vst [vmem:[#allocation2 + $0x120] sm:$0xff] %v1546_v6  ;;  %v1379_v2 = vadd.f32 %v1378_v42, %v1210_v7 }
 0x1cc   :  { %v1587_v62 = vpop.f32.mrf.mxu3 }
 0x1cd   :  { %v1588_v23 = vadd.f32 %v1587_v62, %v3120_v26 }
 0x1ce   :  { %v1547_v63 = vpop.f32.mrf.mxu2  ;;  %v1212_v13 = vpop.f32.mrf.mxu0 }
 0x1cf   :  { %v1548_v56 = vadd.f32 %v1547_v63, %v1379_v2  ;;  %1668 = vst [vmem:[#allocation2 + $0x1a8] sm:$0xff] %v1588_v23  ;;  %v1213_v19 = vadd.f32 %v3022_v58, %v1212_v13  ;;  %v1381_v15 = vpop.f32.mrf.mxu1 }
 0x1d1   :  { %1652 = vst [vmem:[#allocation2 + $0x128] sm:$0xff] %v1548_v56  ;;  %v1382_v50 = vadd.f32 %v1381_v15, %v1213_v19 }
 0x1d4   :  { %v1590_v43 = vpop.f32.mrf.mxu3 }
 0x1d5   :  { %v1591_v21 = vadd.f32 %v1590_v43, %v3159_v1 }
 0x1d6   :  { %v1550_v9 = vpop.f32.mrf.mxu2  ;;  %v1214_v25 = vpop.f32.mrf.mxu0 }
 0x1d7   :  { %v1551_v47 = vadd.f32 %v1550_v9, %v1382_v50  ;;  %1669 = vst [vmem:[#allocation2 + $0x1b0] sm:$0xff] %v1591_v21  ;;  %v1383_v5 = vpop.f32.mrf.mxu1  ;;  %v1215_v10 = vadd.f32 %v3022_v58, %v1214_v25  ;;  %v1846_v21 = vld [vmem:[%s3405_s5] ss:$0 sm:$0xff]  ;;  %s1874_s5 = smov 128  }
 0x1d9   :  { %1653 = vst [vmem:[#allocation2 + $0x130] sm:$0xff] %v1551_v47  ;;  %v1384_v26 = vadd.f32 %v1383_v5, %v1215_v10 }
 0x1dc   :  { %v1592_v27 = vpop.f32.mrf.mxu3 }
 0x1dd   :  { %v1593_v20 = vadd.f32 %v1592_v27, %v3178_v55 }
 0x1de   :  { %v1552_v24 = vpop.f32.mrf.mxu2  ;;  %v1217_v29 = vpop.f32.mrf.mxu0 }
 0x1df   :  { %v1553_v17 = vadd.f32 %v1552_v24, %v1384_v26  ;;  %1670 = vst [vmem:[#allocation2 + $0x1b8] sm:$0xff] %v1593_v20  ;;  %v1218_v31 = vadd.f32 %v3022_v58, %v1217_v29  ;;  %v1386_v30 = vpop.f32.mrf.mxu1 }
 0x1e1   :  { %1654 = vst [vmem:[#allocation2 + $0x138] sm:$0xff] %v1553_v17  ;;  %v1387_v1 = vadd.f32 %v1386_v30, %v1218_v31 }
 0x1e4   :  { %v1595_v32 = vpop.f32.mrf.mxu3 }
 0x1e5   :  { %v1596_v34 = vadd.f32 %v1595_v32, %v3217_v37 }
 0x1e6   :  { %v1555_v8 = vpop.f32.mrf.mxu2  ;;  %v1219_v11 = vpop.f32.mrf.mxu0 }
 0x1e7   :  { %v1556_v36 = vadd.f32 %v1555_v8, %v1387_v1  ;;  %1671 = vst [vmem:[#allocation2 + $0x1c0] sm:$0xff] %v1596_v34  ;;  %v1388_v61 = vpop.f32.mrf.mxu1  ;;  %v1220_v35 = vadd.f32 %v3022_v58, %v1219_v11 }
 0x1e9   :  { %1655 = vst [vmem:[#allocation2 + $0x140] sm:$0xff] %v1556_v36  ;;  %v1389_v55 = vadd.f32 %v1388_v61, %v1220_v35 }
 0x1ec   :  { %v1597_v39 = vpop.f32.mrf.mxu3 }
 0x1ed   :  { %v1598_v46 = vadd.f32 %v1597_v39, %v3236_v0 }
 0x1ee   :  { %v1557_v40 = vpop.f32.mrf.mxu2  ;;  %v1222_v48 = vpop.f32.mrf.mxu0 }
 0x1ef   :  { %v1558_v18 = vadd.f32 %v1557_v40, %v1389_v55  ;;  %1672 = vst [vmem:[#allocation2 + $0x1c8] sm:$0xff] %v1598_v46  ;;  %v1223_v44 = vadd.f32 %v3022_v58, %v1222_v48  ;;  %v1391_v41 = vpop.f32.mrf.mxu1 }
 0x1f1   :  { %1656 = vst [vmem:[#allocation2 + $0x148] sm:$0xff] %v1558_v18  ;;  %v1392_v37 = vadd.f32 %v1391_v41, %v1223_v44 }
 0x1f4   :  { %v1600_v14 = vpop.f32.mrf.mxu3 }
 0x1f5   :  { %v1601_v38 = vadd.f32 %v1600_v14, %v3275_v12 }
 0x1f6   :  { %v1560_v4 = vpop.f32.mrf.mxu2  ;;  %v1224_v52 = vpop.f32.mrf.mxu0 }
 0x1f7   :  { %v1561_v51 = vadd.f32 %v1560_v4, %v1392_v37  ;;  %1673 = vst [vmem:[#allocation2 + $0x1d0] sm:$0xff] %v1601_v38  ;;  %v1393_v53 = vpop.f32.mrf.mxu1  ;;  %v1225_v45 = vadd.f32 %v3022_v58, %v1224_v52 }
 0x1f9   :  { %1657 = vst [vmem:[#allocation2 + $0x150] sm:$0xff] %v1561_v51  ;;  %v1394_v0 = vadd.f32 %v1393_v53, %v1225_v45 }
 0x1fc   :  { %v1602_v28 = vpop.f32.mrf.mxu3 }
 0x1fd   :  { %v1603_v54 = vadd.f32 %v1602_v28, %v3294_v33 }
 0x1fe   :  { %v1562_v57 = vpop.f32.mrf.mxu2  ;;  %v1227_v6 = vpop.f32.mrf.mxu0 }
 0x1ff   :  { %v1563_v60 = vadd.f32 %v1562_v57, %v1394_v0  ;;  %1674 = vst [vmem:[#allocation2 + $0x1d8] sm:$0xff] %v1603_v54  ;;  %v1228_v3 = vadd.f32 %v3022_v58, %v1227_v6  ;;  %v1396_v42 = vpop.f32.mrf.mxu1 }
 0x201   :  { %1658 = vst [vmem:[#allocation2 + $0x158] sm:$0xff] %v1563_v60  ;;  %v1397_v12 = vadd.f32 %v1396_v42, %v1228_v3 }
 0x204   :  { %v1605_v7 = vpop.f32.mrf.mxu3 }
 0x205   :  { %v1606_v62 = vadd.f32 %v1605_v7, %v3333_v22 }
 0x206   :  { %v1565_v2 = vpop.f32.mrf.mxu2  ;;  %v1229_v23 = vpop.f32.mrf.mxu0 }
 0x207   :  { %v1566_v63 = vadd.f32 %v1565_v2, %v1397_v12  ;;  %1675 = vst [vmem:[#allocation2 + $0x1e0] sm:$0xff] %v1606_v62  ;;  %v1398_v56 = vpop.f32.mrf.mxu1  ;;  %v1230_v13 = vadd.f32 %v3022_v58, %v1229_v23 }
 0x209   :  { %1659 = vst [vmem:[#allocation2 + $0x160] sm:$0xff] %v1566_v63  ;;  %v1399_v33 = vadd.f32 %v1398_v56, %v1230_v13 }
 0x20c   :  { %v1607_v19 = vpop.f32.mrf.mxu3 }
 0x20d   :  { %v1608_v50 = vadd.f32 %v1607_v19, %v3352_v49 }
 0x20e   :  { %v1567_v15 = vpop.f32.mrf.mxu2  ;;  %v1232_v9 = vpop.f32.mrf.mxu0 }
 0x20f   :  { %v1568_v43 = vadd.f32 %v1567_v15, %v1399_v33  ;;  %1676 = vst [vmem:[#allocation2 + $0x1e8] sm:$0xff] %v1608_v50  ;;  %v1233_v22 = vadd.f32 %v1846_v21, %v1232_v9  ;;  %v1401_v47 = vpop.f32.mrf.mxu1 }
 0x211   :  { %1660 = vst [vmem:[#allocation2 + $0x168] sm:$0xff] %v1568_v43  ;;  %v1402_v25 = vadd.f32 %v1401_v47, %v1233_v22 }
 0x214   :  { %v1610_v5 = vpop.f32.mrf.mxu3 }
 0x215   :  { %v1611_v58 = vadd.f32 %v1610_v5, %v3357_v59 }
 0x216   :  { %v1570_v10 = vpop.f32.mrf.mxu2  ;;  %v1234_v27 = vpop.f32.mrf.mxu0 }
 0x217   :  { %v1571_v26 = vadd.f32 %v1570_v10, %v1402_v25  ;;  %1677 = vst [vmem:[#allocation2 + $0x1f0] sm:$0xff] %v1611_v58  ;;  %v1235_v49 = vadd.f32 %v1846_v21, %v1234_v27  ;;  %v1403_v24 = vpop.f32.mrf.mxu1 }
 0x219   :  { %1661 = vst [vmem:[#allocation2 + $0x170] sm:$0xff] %v1571_v26  ;;  %v1404_v20 = vadd.f32 %v1403_v24, %v1235_v49 }
 0x21c   :  { %v1612_v17 = vpop.f32.mrf.mxu3 }
 0x21d   :  { %v1613_v31 = vadd.f32 %v1612_v17, %v3362_v16 }
 0x21e   :  { %v1572_v29 = vpop.f32.mrf.mxu2 }
 0x21f   :  { %v1573_v59 = vadd.f32 %v1572_v29, %v1404_v20  ;;  %1678 = vst [vmem:[#allocation2 + $0x1f8] sm:$0xff] %v1613_v31 }
 0x221   :  { %1662 = vst [vmem:[#allocation2 + $0x178] sm:$0xff] %v1573_v59 }
 0x222   :  { %1691 = dma.vmem_to_hbm [thread:$0]  %s1684_s1, 8192, %s1686_s24, [#allocation3], %s1874_s5, %s1874_s5, %s1875_s25  }
 0x223   :  { %1871 = dma.done.wait [#allocation3], 8192  }
 0x224   :  { %1872 = vsyncadd [#allocation3], 4294959104 }
 0x225   :  { %1696 = vsyncpa [#allocation3], 1 }

</bundles_post_ra>
